<compile_context>
chip_gen: v6e
topology: v6e:2x2x1
jax: 0.10.0
libtpu: 0.0.40
codegen_flags: <defaults>
</compile_context>

<pallas_src>
import functools

import numpy as np

import jax
import jax.numpy as jnp
from jax.experimental import pallas as pl
from jax.experimental.pallas import tpu as pltpu

image_channels = 1
init_channels = 8
kernel_size = 4
latent_dim = 16

MXU_DTYPE = jnp.bfloat16     # MXU operand dtype (f32 accumulation everywhere)
LANE_TILE_TARGET = 2048      # target lanes per grid step (tiles are whole images)


# ----------------------------- Pallas kernel bodies -----------------------------

def _enc_conv_kernel(planes_ref, w_ref, b_ref, o_ref, *, oh, ow):
    """4x4 stride-2 pad-1 conv + bias + ReLU on space-to-depth parity planes.

    planes_ref: (4*Cin, M) bf16, plane order (row_parity, col_parity), lanes (b, oy, ox)
    w_ref:      (Cout, 16*Cin) bf16, columns ordered (ky, kx, cin)
    b_ref:      (Cout, 1) f32
    o_ref:      (Cout, M) bf16
    """
    cin = planes_ref.shape[0] // 4
    m = planes_ref.shape[1]
    planes = planes_ref[...]

    lane = jax.lax.broadcasted_iota(jnp.int32, (1, m), 1)
    ox = lane & (ow - 1)                                  # ow, oh are powers of two
    oy = (lane >> (ow.bit_length() - 1)) & (oh - 1)

    blocks = []
    for ky in range(4):
        ry, dy = (ky + 1) % 2, (ky - 1) // 2              # parity plane / row shift
        for kx in range(4):
            rx, dx = (kx + 1) % 2, (kx - 1) // 2
            p = ry * 2 + rx
            blk = planes[p * cin:(p + 1) * cin, :]
            s = dy * ow + dx                              # flat lane shift
            if s != 0:
                blk = jnp.roll(blk, -s, axis=1)
            conds = []
            if dy < 0:
                conds.append(oy >= -dy)
            if dy > 0:
                conds.append(oy < oh - dy)
            if dx < 0:
                conds.append(ox >= -dx)
            if dx > 0:
                conds.append(ox < ow - dx)
            if conds:
                valid = functools.reduce(lambda a, b: a & b, conds)
                blk = jnp.where(valid, blk, jnp.zeros_like(blk))
            blocks.append(blk)

    patch = jnp.concatenate(blocks, axis=0)               # (16*Cin, M), all in VMEM
    y = jnp.dot(w_ref[...], patch, preferred_element_type=jnp.float32)
    y = jnp.maximum(y + b_ref[...], 0.0)
    o_ref[...] = y.astype(o_ref.dtype)


def _deconv_kernel(x_ref, w_ref, b_ref, o_ref, *, u, v, act):
    """4x4 stride-2 pad-1 ConvTranspose (sub-pixel phase form) + bias + activation.

    x_ref: (Cin, M) bf16, lanes (b, u, v) over the coarse input grid
    w_ref: (rows, 9*Cin) bf16, rows (py, px, cout) [padded], cols (ty, tx, cin)
    b_ref: (rows, 1) f32
    o_ref: (rows, M)
    """
    m = x_ref.shape[1]
    x = x_ref[...]

    lane = jax.lax.broadcasted_iota(jnp.int32, (1, m), 1)
    xv = lane & (v - 1)
    yu = (lane >> (v.bit_length() - 1)) & (u - 1)

    blocks = []
    for ty in range(3):
        dy = ty - 1
        for tx in range(3):
            dx = tx - 1
            blk = x
            s = dy * v + dx
            if s != 0:
                blk = jnp.roll(blk, -s, axis=1)
            conds = []
            if dy < 0:
                conds.append(yu >= -dy)
            if dy > 0:
                conds.append(yu < u - dy)
            if dx < 0:
                conds.append(xv >= -dx)
            if dx > 0:
                conds.append(xv < v - dx)
            if conds:
                valid = functools.reduce(lambda a, b: a & b, conds)
                blk = jnp.where(valid, blk, jnp.zeros_like(blk))
            blocks.append(blk)

    patch = jnp.concatenate(blocks, axis=0)               # (9*Cin, M)
    y = jnp.dot(w_ref[...], patch, preferred_element_type=jnp.float32) + b_ref[...]
    if act == "relu":
        y = jnp.maximum(y, 0.0)
    else:                                                  # sigmoid (f32 epilogue, exp on EUP)
        y = 1.0 / (1.0 + jnp.exp(-y))
    o_ref[...] = y.astype(o_ref.dtype)


def _latent_kernel(feat_ref, eps_ref,
                   w4_ref, b4_ref, w1_ref, b1_ref,
                   wmu_ref, bmu_ref, wlv_ref, blv_ref,
                   w2_ref, b2_ref, wd_ref, bd_ref,
                   mu_ref, lv_ref, d1_ref):
    """Fused enc4 -> avg_pool(1x1 == identity) -> fc1 -> fc_mu/fc_log_var ->
    reparameterize -> fc2 -> dec1(+ReLU).  All intermediates stay in VMEM."""
    f32, bf16 = jnp.float32, jnp.bfloat16
    feat = feat_ref[...]                                                           # (B, 512) bf16
    x4 = jnp.dot(feat, w4_ref[...], preferred_element_type=f32) + b4_ref[...]
    x4 = jnp.maximum(x4, 0.0)                                                      # enc4 + ReLU
    hidden = jnp.dot(x4.astype(bf16), w1_ref[...], preferred_element_type=f32) + b1_ref[...]
    hb = hidden.astype(bf16)
    mu = jnp.dot(hb, wmu_ref[...], preferred_element_type=f32) + bmu_ref[...]
    lv = jnp.dot(hb, wlv_ref[...], preferred_element_type=f32) + blv_ref[...]
    z = mu + eps_ref[...] * jnp.exp(0.5 * lv)                                      # reparameterize
    z2 = jnp.dot(z.astype(bf16), w2_ref[...], preferred_element_type=f32) + b2_ref[...]
    d1 = jnp.dot(z2.astype(bf16), wd_ref[...], preferred_element_type=f32) + bd_ref[...]
    mu_ref[...] = mu
    lv_ref[...] = lv
    d1_ref[...] = jnp.maximum(d1, 0.0).astype(d1_ref.dtype)                        # dec1 + ReLU


# ------------------------------- kernel wrappers ---------------------------------

def _conv_grid(batch, sites):
    """Tile the lane axis by whole images so in-kernel rolls never need halos."""
    bt = min(batch, max(1, LANE_TILE_TARGET // sites))
    if batch % bt != 0:
        bt = batch
    return bt, batch // bt


def space_to_depth(x):
    """(C, B, H, W) -> parity planes (4*C, B*(H/2)*(W/2)), plane order (ry, rx)."""
    c, b, h, w = x.shape
    t = x.reshape(c, b, h // 2, 2, w // 2, 2)
    t = jnp.transpose(t, (3, 5, 0, 1, 2, 4))
    return t.reshape(4 * c, b * (h // 2) * (w // 2))


def depth_to_space(o, cout, b, u, v):
    """(4*Cout, B*u*v) phases-on-sublanes -> (Cout, B, 2u, 2v) interleaved."""
    t = o.reshape(2, 2, cout, b, u, v)
    t = jnp.transpose(t, (2, 3, 4, 0, 5, 1))
    return t.reshape(cout, b, 2 * u, 2 * v)


def enc_conv(x_cbhw, w, b_col):
    cin, B, H, W = x_cbhw.shape
    oh, ow = H // 2, W // 2
    assert (oh & (oh - 1)) == 0 and (ow & (ow - 1)) == 0
    cout = w.shape[0]
    planes = space_to_depth(x_cbhw)                          # (4*Cin, M), one XLA transpose
    m = B * oh * ow
    bt, ntiles = _conv_grid(B, oh * ow)
    tm = bt * oh * ow
    out = pl.pallas_call(
        functools.partial(_enc_conv_kernel, oh=oh, ow=ow),
        out_shape=jax.ShapeDtypeStruct((cout, m), jnp.bfloat16),
        grid=(ntiles,),
        in_specs=[pl.BlockSpec((4 * cin, tm), lambda i: (0, i)),
                  pl.BlockSpec((cout, 16 * cin), lambda i: (0, 0)),
                  pl.BlockSpec((cout, 1), lambda i: (0, 0))],
        out_specs=pl.BlockSpec((cout, tm), lambda i: (0, i)),
        compiler_params=pltpu.CompilerParams(dimension_semantics=("parallel",)),
        cost_estimate=pl.CostEstimate(
            flops=2 * cout * 16 * cin * m,
            transcendentals=0,
            bytes_accessed=(4 * cin * m + cout * 16 * cin + cout * m) * 2 + cout * 4),
    )(planes, w, b_col)
    return out.reshape(cout, B, oh, ow)


def deconv(x_flat, w_all, b_all, u, v, B, act, out_dtype):
    cin, m = x_flat.shape
    assert (u & (u - 1)) == 0 and (v & (v - 1)) == 0
    rows = w_all.shape[0]
    bt, ntiles = _conv_grid(B, u * v)
    tm = bt * u * v
    osize = jnp.dtype(out_dtype).itemsize
    return pl.pallas_call(
        functools.partial(_deconv_kernel, u=u, v=v, act=act),
        out_shape=jax.ShapeDtypeStruct((rows, m), out_dtype),
        grid=(ntiles,),
        in_specs=[pl.BlockSpec((cin, tm), lambda i: (0, i)),
                  pl.BlockSpec((rows, 9 * cin), lambda i: (0, 0)),
                  pl.BlockSpec((rows, 1), lambda i: (0, 0))],
        out_specs=pl.BlockSpec((rows, tm), lambda i: (0, i)),
        compiler_params=pltpu.CompilerParams(dimension_semantics=("parallel",)),
        cost_estimate=pl.CostEstimate(
            flops=2 * rows * 9 * cin * m,
            transcendentals=(rows * m if act == "sigmoid" else 0),
            bytes_accessed=(cin * m + rows * 9 * cin) * 2 + rows * m * osize + rows * 4),
    )(x_flat, w_all, b_all)


def latent_chain(feat, eps, kp):
    B = feat.shape[0]
    ins = (feat, eps,
           kp["enc4_w"], kp["enc4_b"], kp["fc1_w"], kp["fc1_b"],
           kp["fc_mu_w"], kp["fc_mu_b"], kp["fc_lv_w"], kp["fc_lv_b"],
           kp["fc2_w"], kp["fc2_b"], kp["dec1_w"], kp["dec1_b"])
    out_shape = (jax.ShapeDtypeStruct((B, latent_dim), jnp.float32),
                 jax.ShapeDtypeStruct((B, latent_dim), jnp.float32),
                 jax.ShapeDtypeStruct((B, 64 * kernel_size * kernel_size), jnp.bfloat16))
    vspec = pl.BlockSpec(memory_space=pltpu.MemorySpace.VMEM)
    fl = 2 * B * (512 * 64 + 64 * 128 + 128 * latent_dim * 2 + latent_dim * 64 + 64 * 1024)
    return pl.pallas_call(
        _latent_kernel,
        out_shape=out_shape,
        in_specs=[vspec] * len(ins),
        out_specs=(vspec, vspec, vspec),
        cost_estimate=pl.CostEstimate(flops=fl, transcendentals=B * latent_dim,
                                      bytes_accessed=2 * (512 * 64 + 64 * 128 + 128 * 32
                                                          + 16 * 64 + 64 * 1024 + B * 1600)),
    )(*ins)


# --------------------------------- parameters ------------------------------------

def init_params(key):
    """PyTorch-layout parameters (Conv2d (Cout,Cin,KH,KW), ConvTranspose2d
    (Cin,Cout,KH,KW), Linear (out,in)) — also consumed by the f32 reference."""
    scale = 0.05

    def nrm(k, shape):
        return scale * jax.random.normal(k, shape, dtype=jnp.float32)

    ks = iter(jax.random.split(key, 24))
    ic, k4 = init_channels, kernel_size
    return {
        "enc1_w": nrm(next(ks), (ic, image_channels, k4, k4)), "enc1_b": nrm(next(ks), (ic,)),
        "enc2_w": nrm(next(ks), (ic * 2, ic, k4, k4)), "enc2_b": nrm(next(ks), (ic * 2,)),
        "enc3_w": nrm(next(ks), (ic * 4, ic * 2, k4, k4)), "enc3_b": nrm(next(ks), (ic * 4,)),
        "enc4_w": nrm(next(ks), (64, ic * 4, k4, k4)), "enc4_b": nrm(next(ks), (64,)),
        "fc1_w": nrm(next(ks), (128, 64)), "fc1_b": nrm(next(ks), (128,)),
        "fc_mu_w": nrm(next(ks), (latent_dim, 128)), "fc_mu_b": nrm(next(ks), (latent_dim,)),
        "fc_lv_w": nrm(next(ks), (latent_dim, 128)), "fc_lv_b": nrm(next(ks), (latent_dim,)),
        "fc2_w": nrm(next(ks), (64, latent_dim)), "fc2_b": nrm(next(ks), (64,)),
        "dec1_w": nrm(next(ks), (64, ic * 8, k4, k4)), "dec1_b": nrm(next(ks), (ic * 8,)),
        "dec2_w": nrm(next(ks), (ic * 8, ic * 4, k4, k4)), "dec2_b": nrm(next(ks), (ic * 4,)),
        "dec3_w": nrm(next(ks), (ic * 4, ic * 2, k4, k4)), "dec3_b": nrm(next(ks), (ic * 2,)),
        "dec4_w": nrm(next(ks), (ic * 2, image_channels, k4, k4)),
        "dec4_b": nrm(next(ks), (image_channels,)),
    }


def prepare_params(p):
    """One-time re-layout of PyTorch-shaped weights into kernel-ready (bf16) form."""
    f32, bf16 = jnp.float32, jnp.bfloat16

    def enc_w(w):                      # (Cout,Cin,4,4) -> (Cout, 16*Cin); cols (ky,kx,ci)
        co, ci, kh, kw = w.shape
        return jnp.transpose(w, (0, 2, 3, 1)).reshape(co, kh * kw * ci).astype(bf16)

    def phase_w(w):                    # (Cin,Cout,4,4) -> (4*Cout, 9*Cin) phase-packed
        ci, co, _, _ = w.shape
        w6 = jnp.zeros((2, 2, co, 3, 3, ci), f32)
        for py in range(2):
            for dy in range(2):
                ty, ky = py + dy, 3 - py - 2 * dy
                for px in range(2):
                    for dx in range(2):
                        tx, kx = px + dx, 3 - px - 2 * dx
                        w6 = w6.at[py, px, :, ty, tx, :].set(jnp.transpose(w[:, :, ky, kx]))
        return w6.reshape(4 * co, 9 * ci)

    def col(b):
        return b.reshape(-1, 1).astype(f32)

    def row(b):
        return b.reshape(1, -1).astype(f32)

    # dec4 has only 4 output rows (4 phases x 1 channel): zero-pad to 8 for a
    # sublane-dense store; the pad rows are dropped in the wrapper.
    dec4_w = phase_w(p["dec4_w"])
    dec4_w = jnp.concatenate([dec4_w, jnp.zeros_like(dec4_w)], axis=0)
    dec4_b = jnp.concatenate([jnp.tile(p["dec4_b"], 4), jnp.zeros((4,), f32)])

    return {
        "enc1_w": enc_w(p["enc1_w"]), "enc1_b": col(p["enc1_b"]),
        "enc2_w": enc_w(p["enc2_w"]), "enc2_b": col(p["enc2_b"]),
        "enc3_w": enc_w(p["enc3_w"]), "enc3_b": col(p["enc3_b"]),
        # enc4 sees a 4x4 input with pad=0 -> one (B,512)@(512,64) matmul, rows (ci,ky,kx).
        "enc4_w": jnp.transpose(p["enc4_w"], (1, 2, 3, 0)).reshape(-1, 64).astype(bf16),
        "enc4_b": row(p["enc4_b"]),
        "fc1_w": p["fc1_w"].T.astype(bf16), "fc1_b": row(p["fc1_b"]),
        "fc_mu_w": p["fc_mu_w"].T.astype(bf16), "fc_mu_b": row(p["fc_mu_b"]),
        "fc_lv_w": p["fc_lv_w"].T.astype(bf16), "fc_lv_b": row(p["fc_lv_b"]),
        "fc2_w": p["fc2_w"].T.astype(bf16), "fc2_b": row(p["fc2_b"]),
        # dec1 sees a 1x1 input -> one (B,64)@(64,1024) matmul; cols (co,i,j).
        "dec1_w": p["dec1_w"].reshape(64, -1).astype(bf16),
        "dec1_b": jnp.repeat(p["dec1_b"], kernel_size * kernel_size).reshape(1, -1).astype(f32),
        "dec2_w": phase_w(p["dec2_w"]).astype(bf16),
        "dec2_b": jnp.tile(p["dec2_b"], 4).reshape(-1, 1).astype(f32),
        "dec3_w": phase_w(p["dec3_w"]).astype(bf16),
        "dec3_b": jnp.tile(p["dec3_b"], 4).reshape(-1, 1).astype(f32),
        "dec4_w": dec4_w.astype(bf16),
        "dec4_b": dec4_b.reshape(-1, 1).astype(f32),
    }


# ----------------------------------- forward -------------------------------------

@jax.jit
def conv_vae_forward(kp, x_nchw, eps):
    B = x_nchw.shape[0]
    x = jnp.transpose(x_nchw, (1, 0, 2, 3)).astype(MXU_DTYPE)        # channel-major (C,B,H,W)

    # encoder: lane-dense channel-major conv matmuls, patches built in VMEM
    x = enc_conv(x, kp["enc1_w"], kp["enc1_b"])                      # (8,  B, 16, 16)
    x = enc_conv(x, kp["enc2_w"], kp["enc2_b"])                      # (16, B, 8,  8)
    x = enc_conv(x, kp["enc3_w"], kp["enc3_b"])                      # (32, B, 4,  4)

    # fused enc4 + pool + fc1 + fc_mu/fc_log_var + reparameterize + fc2 + dec1
    feat = jnp.transpose(x.reshape(32, B, 16), (1, 0, 2)).reshape(B, 512)   # (ci,ky,kx) order
    mu, log_var, d1 = latent_chain(feat, eps.astype(jnp.float32), kp)

    # decoder: phase-decomposed transposed convs, patches built in VMEM
    xd = jnp.transpose(d1.reshape(B, 64, 16), (1, 0, 2)).reshape(64, B * 16)   # (64, B*4*4)
    o = deconv(xd, kp["dec2_w"], kp["dec2_b"], 4, 4, B, "relu", jnp.bfloat16)      # (128, B*16)
    xd = depth_to_space(o, 32, B, 4, 4).reshape(32, B * 64)
    o = deconv(xd, kp["dec3_w"], kp["dec3_b"], 8, 8, B, "relu", jnp.bfloat16)      # (64, B*64)
    xd = depth_to_space(o, 16, B, 8, 8).reshape(16, B * 256)
    o = deconv(xd, kp["dec4_w"], kp["dec4_b"], 16, 16, B, "sigmoid", jnp.float32)  # (8, B*256)

    recon = depth_to_space(o[:4], 1, B, 16, 16)                      # (1, B, 32, 32), f32
    return jnp.transpose(recon, (1, 0, 2, 3)), mu, log_var


# --------------------------- pure-JAX f32 golden reference ------------------------

def reference_forward(p, x, eps):
    dn = ("NCHW", "OIHW", "NCHW")
    relu = jax.nn.relu

    def conv(x, w, b, pad):
        y = jax.lax.conv_general_dilated(x, w, (2, 2), ((pad, pad), (pad, pad)),
                                         dimension_numbers=dn)
        return y + b.reshape(1, -1, 1, 1)

    def tconv(x, w, b):   # ConvTranspose2d(k=4, s=2, p=1) as a dilated forward conv
        rhs = jnp.transpose(jnp.flip(w, (2, 3)), (1, 0, 2, 3))
        y = jax.lax.conv_general_dilated(x, rhs, (1, 1), ((2, 2), (2, 2)),
                                         lhs_dilation=(2, 2), dimension_numbers=dn)
        return y + b.reshape(1, -1, 1, 1)

    x = x.astype(jnp.float32)
    x = relu(conv(x, p["enc1_w"], p["enc1_b"], 1))
    x = relu(conv(x, p["enc2_w"], p["enc2_b"], 1))
    x = relu(conv(x, p["enc3_w"], p["enc3_b"], 1))
    x = relu(conv(x, p["enc4_w"], p["enc4_b"], 0))
    batch = x.shape[0]
    x = jnp.mean(x, axis=(2, 3)).reshape(batch, -1)       # adaptive_avg_pool2d(1) on 1x1
    hidden = x @ p["fc1_w"].T + p["fc1_b"]
    mu = hidden @ p["fc_mu_w"].T + p["fc_mu_b"]
    log_var = hidden @ p["fc_lv_w"].T + p["fc_lv_b"]
    z = mu + eps * jnp.exp(0.5 * log_var)
    z = z @ p["fc2_w"].T + p["fc2_b"]
    d1 = jnp.einsum("bi,iojk->bojk", z, p["dec1_w"]) + p["dec1_b"].reshape(1, -1, 1, 1)
    x = relu(d1)
    x = relu(tconv(x, p["dec2_w"], p["dec2_b"]))
    x = relu(tconv(x, p["dec3_w"], p["dec3_b"]))
    recon = jax.nn.sigmoid(tconv(x, p["dec4_w"], p["dec4_b"]))
    return recon, mu, log_var


# ------------------------------------ driver -------------------------------------

if __name__ == "__main__":
    root = jax.random.PRNGKey(0)
    k_x, k_p, k_eps = jax.random.split(root, 3)

    B, H, W = 2, 32, 32  # 32x32 so enc4 (k=4, s=2, p=0) reaches 1x1 as the module assumes
    x = jax.random.uniform(k_x, (B, image_channels, H, W), dtype=jnp.float32)
    eps = jax.random.normal(k_eps, (B, latent_dim), dtype=jnp.float32)

    torch_layout_params = init_params(k_p)
    kparams = prepare_params(torch_layout_params)          # one-time weight re-layout

    recon, mu, log_var = conv_vae_forward(kparams, x, eps)
    jax.block_until_ready((recon, mu, log_var))

    # shape / sanity checks
    assert recon.shape == (B, image_channels, H, W), recon.shape
    assert mu.shape == (B, latent_dim), mu.shape
    assert log_var.shape == (B, latent_dim), log_var.shape
    assert bool(jnp.all(jnp.isfinite(recon)))
    assert bool(jnp.all(jnp.isfinite(mu))) and bool(jnp.all(jnp.isfinite(log_var)))
    assert bool(jnp.all((recon >= 0.0) & (recon <= 1.0)))  # exact sigmoid output range

    # golden comparison against a pure-JAX f32 reference of the PyTorch module
    r_ref, mu_ref, lv_ref = reference_forward(torch_layout_params, x, eps)
    np.testing.assert_allclose(np.asarray(recon, np.float32), np.asarray(r_ref),
                               atol=3e-2, rtol=3e-2)
    np.testing.assert_allclose(np.asarray(mu, np.float32), np.asarray(mu_ref),
                               atol=3e-2, rtol=3e-2)
    np.testing.assert_allclose(np.asarray(log_var, np.float32), np.asarray(lv_ref),
                               atol=3e-2, rtol=3e-2)

    print("KERNEL_OK")
</pallas_src>

<mosaic_0001>
module attributes {stable_mosaic.version = 11 : i64} {
  func.func @_enc_conv_kernel(%arg0: i32, %arg1: memref<4x512xbf16, #tpu.memory_space<vmem>>, %arg2: memref<8x16xbf16, #tpu.memory_space<vmem>>, %arg3: memref<8x1xf32, #tpu.memory_space<vmem>>, %arg4: memref<8x512xbf16, #tpu.memory_space<vmem>>) attributes {dimension_semantics = [#tpu.dimension_semantics<parallel>], iteration_bounds = array<i64: 1>, scalar_prefetch = 0 : i64, scratch_operands = 0 : i64, tpu.core_type = #tpu.core_type<tc>, window_params = [{transform_indices = @transform_0, window_bounds = array<i64: 4, 512>}, {pipeline_mode = #tpu.pipeline_mode<synchronous>, transform_indices = @transform_1, window_bounds = array<i64: 8, 16>}, {pipeline_mode = #tpu.pipeline_mode<synchronous>, transform_indices = @transform_2, window_bounds = array<i64: 8, 1>}, {transform_indices = @transform_3, window_bounds = array<i64: 8, 512>}]} {
    %c0 = arith.constant 0 : index
    %c0_0 = arith.constant 0 : index
    %0 = vector.load %arg1[%c0, %c0_0] : memref<4x512xbf16, #tpu.memory_space<vmem>>, vector<4x512xbf16>
    %1 = tpu.iota {dimensions = array<i32: 1>} : vector<1x512xi32>
    %c15_i32 = arith.constant 15 : i32
    %2 = vector.broadcast %c15_i32 : i32 to vector<1x512xi32>
    %3 = arith.andi %1, %2 : vector<1x512xi32>
    %c4_i32 = arith.constant 4 : i32
    %4 = vector.broadcast %c4_i32 : i32 to vector<1x512xi32>
    %5 = arith.shrsi %1, %4 : vector<1x512xi32>
    %c15_i32_1 = arith.constant 15 : i32
    %6 = vector.broadcast %c15_i32_1 : i32 to vector<1x512xi32>
    %7 = arith.andi %5, %6 : vector<1x512xi32>
    %8 = vector.extract_strided_slice %0 {offsets = [3, 0], sizes = [1, 512], strides = [1, 1]} : vector<4x512xbf16> to vector<1x512xbf16>
    %9 = vector.extract_strided_slice %8 {offsets = [0, 495], sizes = [1, 17], strides = [1, 1]} : vector<1x512xbf16> to vector<1x17xbf16>
    %10 = vector.extract_strided_slice %8 {offsets = [0, 0], sizes = [1, 495], strides = [1, 1]} : vector<1x512xbf16> to vector<1x495xbf16>
    %11 = tpu.concatenate %9, %10 in 1 : vector<1x17xbf16>, vector<1x495xbf16> -> vector<1x512xbf16>
    %c1_i32 = arith.constant 1 : i32
    %12 = vector.broadcast %c1_i32 : i32 to vector<1x512xi32>
    %13 = arith.cmpi sge, %7, %12 : vector<1x512xi32>
    %c1_i32_2 = arith.constant 1 : i32
    %14 = vector.broadcast %c1_i32_2 : i32 to vector<1x512xi32>
    %15 = arith.cmpi sge, %3, %14 : vector<1x512xi32>
    %16 = arith.andi %13, %15 : vector<1x512xi1>
    %cst = arith.constant 0.000000e+00 : bf16
    %17 = vector.broadcast %cst : bf16 to vector<1x512xbf16>
    %18 = arith.select %16, %11, %17 : vector<1x512xi1>, vector<1x512xbf16>
    %19 = vector.extract_strided_slice %0 {offsets = [2, 0], sizes = [1, 512], strides = [1, 1]} : vector<4x512xbf16> to vector<1x512xbf16>
    %20 = vector.extract_strided_slice %19 {offsets = [0, 496], sizes = [1, 16], strides = [1, 1]} : vector<1x512xbf16> to vector<1x16xbf16>
    %21 = vector.extract_strided_slice %19 {offsets = [0, 0], sizes = [1, 496], strides = [1, 1]} : vector<1x512xbf16> to vector<1x496xbf16>
    %22 = tpu.concatenate %20, %21 in 1 : vector<1x16xbf16>, vector<1x496xbf16> -> vector<1x512xbf16>
    %c1_i32_3 = arith.constant 1 : i32
    %23 = vector.broadcast %c1_i32_3 : i32 to vector<1x512xi32>
    %24 = arith.cmpi sge, %7, %23 : vector<1x512xi32>
    %cst_4 = arith.constant 0.000000e+00 : bf16
    %25 = vector.broadcast %cst_4 : bf16 to vector<1x512xbf16>
    %26 = arith.select %24, %22, %25 : vector<1x512xi1>, vector<1x512xbf16>
    %27 = vector.extract_strided_slice %0 {offsets = [3, 0], sizes = [1, 512], strides = [1, 1]} : vector<4x512xbf16> to vector<1x512xbf16>
    %28 = vector.extract_strided_slice %27 {offsets = [0, 496], sizes = [1, 16], strides = [1, 1]} : vector<1x512xbf16> to vector<1x16xbf16>
    %29 = vector.extract_strided_slice %27 {offsets = [0, 0], sizes = [1, 496], strides = [1, 1]} : vector<1x512xbf16> to vector<1x496xbf16>
    %30 = tpu.concatenate %28, %29 in 1 : vector<1x16xbf16>, vector<1x496xbf16> -> vector<1x512xbf16>
    %c1_i32_5 = arith.constant 1 : i32
    %31 = vector.broadcast %c1_i32_5 : i32 to vector<1x512xi32>
    %32 = arith.cmpi sge, %7, %31 : vector<1x512xi32>
    %cst_6 = arith.constant 0.000000e+00 : bf16
    %33 = vector.broadcast %cst_6 : bf16 to vector<1x512xbf16>
    %34 = arith.select %32, %30, %33 : vector<1x512xi1>, vector<1x512xbf16>
    %35 = vector.extract_strided_slice %0 {offsets = [2, 0], sizes = [1, 512], strides = [1, 1]} : vector<4x512xbf16> to vector<1x512xbf16>
    %36 = vector.extract_strided_slice %35 {offsets = [0, 497], sizes = [1, 15], strides = [1, 1]} : vector<1x512xbf16> to vector<1x15xbf16>
    %37 = vector.extract_strided_slice %35 {offsets = [0, 0], sizes = [1, 497], strides = [1, 1]} : vector<1x512xbf16> to vector<1x497xbf16>
    %38 = tpu.concatenate %36, %37 in 1 : vector<1x15xbf16>, vector<1x497xbf16> -> vector<1x512xbf16>
    %c1_i32_7 = arith.constant 1 : i32
    %39 = vector.broadcast %c1_i32_7 : i32 to vector<1x512xi32>
    %40 = arith.cmpi sge, %7, %39 : vector<1x512xi32>
    %c15_i32_8 = arith.constant 15 : i32
    %41 = vector.broadcast %c15_i32_8 : i32 to vector<1x512xi32>
    %42 = arith.cmpi slt, %3, %41 : vector<1x512xi32>
    %43 = arith.andi %40, %42 : vector<1x512xi1>
    %cst_9 = arith.constant 0.000000e+00 : bf16
    %44 = vector.broadcast %cst_9 : bf16 to vector<1x512xbf16>
    %45 = arith.select %43, %38, %44 : vector<1x512xi1>, vector<1x512xbf16>
    %46 = vector.extract_strided_slice %0 {offsets = [1, 0], sizes = [1, 512], strides = [1, 1]} : vector<4x512xbf16> to vector<1x512xbf16>
    %47 = vector.extract_strided_slice %46 {offsets = [0, 511], sizes = [1, 1], strides = [1, 1]} : vector<1x512xbf16> to vector<1x1xbf16>
    %48 = vector.extract_strided_slice %46 {offsets = [0, 0], sizes = [1, 511], strides = [1, 1]} : vector<1x512xbf16> to vector<1x511xbf16>
    %49 = tpu.concatenate %47, %48 in 1 : vector<1x1xbf16>, vector<1x511xbf16> -> vector<1x512xbf16>
    %c1_i32_10 = arith.constant 1 : i32
    %50 = vector.broadcast %c1_i32_10 : i32 to vector<1x512xi32>
    %51 = arith.cmpi sge, %3, %50 : vector<1x512xi32>
    %cst_11 = arith.constant 0.000000e+00 : bf16
    %52 = vector.broadcast %cst_11 : bf16 to vector<1x512xbf16>
    %53 = arith.select %51, %49, %52 : vector<1x512xi1>, vector<1x512xbf16>
    %54 = vector.extract_strided_slice %0 {offsets = [0, 0], sizes = [1, 512], strides = [1, 1]} : vector<4x512xbf16> to vector<1x512xbf16>
    %55 = vector.extract_strided_slice %0 {offsets = [1, 0], sizes = [1, 512], strides = [1, 1]} : vector<4x512xbf16> to vector<1x512xbf16>
    %56 = vector.extract_strided_slice %0 {offsets = [0, 0], sizes = [1, 512], strides = [1, 1]} : vector<4x512xbf16> to vector<1x512xbf16>
    %57 = vector.extract_strided_slice %56 {offsets = [0, 1], sizes = [1, 511], strides = [1, 1]} : vector<1x512xbf16> to vector<1x511xbf16>
    %58 = vector.extract_strided_slice %56 {offsets = [0, 0], sizes = [1, 1], strides = [1, 1]} : vector<1x512xbf16> to vector<1x1xbf16>
    %59 = tpu.concatenate %57, %58 in 1 : vector<1x511xbf16>, vector<1x1xbf16> -> vector<1x512xbf16>
    %c15_i32_12 = arith.constant 15 : i32
    %60 = vector.broadcast %c15_i32_12 : i32 to vector<1x512xi32>
    %61 = arith.cmpi slt, %3, %60 : vector<1x512xi32>
    %cst_13 = arith.constant 0.000000e+00 : bf16
    %62 = vector.broadcast %cst_13 : bf16 to vector<1x512xbf16>
    %63 = arith.select %61, %59, %62 : vector<1x512xi1>, vector<1x512xbf16>
    %64 = vector.extract_strided_slice %0 {offsets = [3, 0], sizes = [1, 512], strides = [1, 1]} : vector<4x512xbf16> to vector<1x512xbf16>
    %65 = vector.extract_strided_slice %64 {offsets = [0, 511], sizes = [1, 1], strides = [1, 1]} : vector<1x512xbf16> to vector<1x1xbf16>
    %66 = vector.extract_strided_slice %64 {offsets = [0, 0], sizes = [1, 511], strides = [1, 1]} : vector<1x512xbf16> to vector<1x511xbf16>
    %67 = tpu.concatenate %65, %66 in 1 : vector<1x1xbf16>, vector<1x511xbf16> -> vector<1x512xbf16>
    %c1_i32_14 = arith.constant 1 : i32
    %68 = vector.broadcast %c1_i32_14 : i32 to vector<1x512xi32>
    %69 = arith.cmpi sge, %3, %68 : vector<1x512xi32>
    %cst_15 = arith.constant 0.000000e+00 : bf16
    %70 = vector.broadcast %cst_15 : bf16 to vector<1x512xbf16>
    %71 = arith.select %69, %67, %70 : vector<1x512xi1>, vector<1x512xbf16>
    %72 = vector.extract_strided_slice %0 {offsets = [2, 0], sizes = [1, 512], strides = [1, 1]} : vector<4x512xbf16> to vector<1x512xbf16>
    %73 = vector.extract_strided_slice %0 {offsets = [3, 0], sizes = [1, 512], strides = [1, 1]} : vector<4x512xbf16> to vector<1x512xbf16>
    %74 = vector.extract_strided_slice %0 {offsets = [2, 0], sizes = [1, 512], strides = [1, 1]} : vector<4x512xbf16> to vector<1x512xbf16>
    %75 = vector.extract_strided_slice %74 {offsets = [0, 1], sizes = [1, 511], strides = [1, 1]} : vector<1x512xbf16> to vector<1x511xbf16>
    %76 = vector.extract_strided_slice %74 {offsets = [0, 0], sizes = [1, 1], strides = [1, 1]} : vector<1x512xbf16> to vector<1x1xbf16>
    %77 = tpu.concatenate %75, %76 in 1 : vector<1x511xbf16>, vector<1x1xbf16> -> vector<1x512xbf16>
    %c15_i32_16 = arith.constant 15 : i32
    %78 = vector.broadcast %c15_i32_16 : i32 to vector<1x512xi32>
    %79 = arith.cmpi slt, %3, %78 : vector<1x512xi32>
    %cst_17 = arith.constant 0.000000e+00 : bf16
    %80 = vector.broadcast %cst_17 : bf16 to vector<1x512xbf16>
    %81 = arith.select %79, %77, %80 : vector<1x512xi1>, vector<1x512xbf16>
    %82 = vector.extract_strided_slice %0 {offsets = [1, 0], sizes = [1, 512], strides = [1, 1]} : vector<4x512xbf16> to vector<1x512xbf16>
    %83 = vector.extract_strided_slice %82 {offsets = [0, 15], sizes = [1, 497], strides = [1, 1]} : vector<1x512xbf16> to vector<1x497xbf16>
    %84 = vector.extract_strided_slice %82 {offsets = [0, 0], sizes = [1, 15], strides = [1, 1]} : vector<1x512xbf16> to vector<1x15xbf16>
    %85 = tpu.concatenate %83, %84 in 1 : vector<1x497xbf16>, vector<1x15xbf16> -> vector<1x512xbf16>
    %c15_i32_18 = arith.constant 15 : i32
    %86 = vector.broadcast %c15_i32_18 : i32 to vector<1x512xi32>
    %87 = arith.cmpi slt, %7, %86 : vector<1x512xi32>
    %c1_i32_19 = arith.constant 1 : i32
    %88 = vector.broadcast %c1_i32_19 : i32 to vector<1x512xi32>
    %89 = arith.cmpi sge, %3, %88 : vector<1x512xi32>
    %90 = arith.andi %87, %89 : vector<1x512xi1>
    %cst_20 = arith.constant 0.000000e+00 : bf16
    %91 = vector.broadcast %cst_20 : bf16 to vector<1x512xbf16>
    %92 = arith.select %90, %85, %91 : vector<1x512xi1>, vector<1x512xbf16>
    %93 = vector.extract_strided_slice %0 {offsets = [0, 0], sizes = [1, 512], strides = [1, 1]} : vector<4x512xbf16> to vector<1x512xbf16>
    %94 = vector.extract_strided_slice %93 {offsets = [0, 16], sizes = [1, 496], strides = [1, 1]} : vector<1x512xbf16> to vector<1x496xbf16>
    %95 = vector.extract_strided_slice %93 {offsets = [0, 0], sizes = [1, 16], strides = [1, 1]} : vector<1x512xbf16> to vector<1x16xbf16>
    %96 = tpu.concatenate %94, %95 in 1 : vector<1x496xbf16>, vector<1x16xbf16> -> vector<1x512xbf16>
    %c15_i32_21 = arith.constant 15 : i32
    %97 = vector.broadcast %c15_i32_21 : i32 to vector<1x512xi32>
    %98 = arith.cmpi slt, %7, %97 : vector<1x512xi32>
    %cst_22 = arith.constant 0.000000e+00 : bf16
    %99 = vector.broadcast %cst_22 : bf16 to vector<1x512xbf16>
    %100 = arith.select %98, %96, %99 : vector<1x512xi1>, vector<1x512xbf16>
    %101 = vector.extract_strided_slice %0 {offsets = [1, 0], sizes = [1, 512], strides = [1, 1]} : vector<4x512xbf16> to vector<1x512xbf16>
    %102 = vector.extract_strided_slice %101 {offsets = [0, 16], sizes = [1, 496], strides = [1, 1]} : vector<1x512xbf16> to vector<1x496xbf16>
    %103 = vector.extract_strided_slice %101 {offsets = [0, 0], sizes = [1, 16], strides = [1, 1]} : vector<1x512xbf16> to vector<1x16xbf16>
    %104 = tpu.concatenate %102, %103 in 1 : vector<1x496xbf16>, vector<1x16xbf16> -> vector<1x512xbf16>
    %c15_i32_23 = arith.constant 15 : i32
    %105 = vector.broadcast %c15_i32_23 : i32 to vector<1x512xi32>
    %106 = arith.cmpi slt, %7, %105 : vector<1x512xi32>
    %cst_24 = arith.constant 0.000000e+00 : bf16
    %107 = vector.broadcast %cst_24 : bf16 to vector<1x512xbf16>
    %108 = arith.select %106, %104, %107 : vector<1x512xi1>, vector<1x512xbf16>
    %109 = vector.extract_strided_slice %0 {offsets = [0, 0], sizes = [1, 512], strides = [1, 1]} : vector<4x512xbf16> to vector<1x512xbf16>
    %110 = vector.extract_strided_slice %109 {offsets = [0, 17], sizes = [1, 495], strides = [1, 1]} : vector<1x512xbf16> to vector<1x495xbf16>
    %111 = vector.extract_strided_slice %109 {offsets = [0, 0], sizes = [1, 17], strides = [1, 1]} : vector<1x512xbf16> to vector<1x17xbf16>
    %112 = tpu.concatenate %110, %111 in 1 : vector<1x495xbf16>, vector<1x17xbf16> -> vector<1x512xbf16>
    %c15_i32_25 = arith.constant 15 : i32
    %113 = vector.broadcast %c15_i32_25 : i32 to vector<1x512xi32>
    %114 = arith.cmpi slt, %7, %113 : vector<1x512xi32>
    %c15_i32_26 = arith.constant 15 : i32
    %115 = vector.broadcast %c15_i32_26 : i32 to vector<1x512xi32>
    %116 = arith.cmpi slt, %3, %115 : vector<1x512xi32>
    %117 = arith.andi %114, %116 : vector<1x512xi1>
    %cst_27 = arith.constant 0.000000e+00 : bf16
    %118 = vector.broadcast %cst_27 : bf16 to vector<1x512xbf16>
    %119 = arith.select %117, %112, %118 : vector<1x512xi1>, vector<1x512xbf16>
    %120 = tpu.concatenate %18, %26, %34, %45, %53, %54, %55, %63, %71, %72, %73, %81, %92, %100, %108, %119 in 0 : vector<1x512xbf16>, vector<1x512xbf16>, vector<1x512xbf16>, vector<1x512xbf16>, vector<1x512xbf16>, vector<1x512xbf16>, vector<1x512xbf16>, vector<1x512xbf16>, vector<1x512xbf16>, vector<1x512xbf16>, vector<1x512xbf16>, vector<1x512xbf16>, vector<1x512xbf16>, vector<1x512xbf16>, vector<1x512xbf16>, vector<1x512xbf16> -> vector<16x512xbf16>
    %c0_28 = arith.constant 0 : index
    %c0_29 = arith.constant 0 : index
    %121 = vector.load %arg2[%c0_28, %c0_29] : memref<8x16xbf16, #tpu.memory_space<vmem>>, vector<8x16xbf16>
    %cst_30 = arith.constant dense<0.000000e+00> : vector<8x512xf32>
    %122 = tpu.matmul %121, %120, %cst_30 {dimension_numbers = #tpu.dot_dimension_numbers<[1], [0], [0], [1], [0, 0, 1, 1], [], []>} : vector<8x16xbf16>, vector<16x512xbf16>, vector<8x512xf32> -> vector<8x512xf32>
    %c0_31 = arith.constant 0 : index
    %c0_32 = arith.constant 0 : index
    %123 = vector.load %arg3[%c0_31, %c0_32] : memref<8x1xf32, #tpu.memory_space<vmem>>, vector<8x1xf32>
    %124 = vector.broadcast %123 : vector<8x1xf32> to vector<8x512xf32>
    %125 = arith.addf %122, %124 : vector<8x512xf32>
    %cst_33 = arith.constant 0.000000e+00 : f32
    %126 = vector.broadcast %cst_33 : f32 to vector<8x512xf32>
    %127 = arith.maximumf %125, %126 : vector<8x512xf32>
    %128 = arith.truncf %127 : vector<8x512xf32> to vector<8x512xbf16>
    %c0_34 = arith.constant 0 : index
    %c0_35 = arith.constant 0 : index
    %129 = vector.load %arg4[%c0_34, %c0_35] : memref<8x512xbf16, #tpu.memory_space<vmem>>, vector<8x512xbf16>
    tpu.vector_store %arg4[%c0_34, %c0_35], %128 {strides = array<i32>} : memref<8x512xbf16, #tpu.memory_space<vmem>>, vector<8x512xbf16>,
    return
  }
  func.func @transform_0(%arg0: i32) -> (i32, i32) {
    %c0_i32 = arith.constant 0 : i32
    %c0_i32_0 = arith.constant 0 : i32
    return %c0_i32, %arg0 : i32, i32
  }
  func.func @transform_1(%arg0: i32) -> (i32, i32) {
    %c0_i32 = arith.constant 0 : i32
    %c0_i32_0 = arith.constant 0 : i32
    %c0_i32_1 = arith.constant 0 : i32
    return %c0_i32, %c0_i32_0 : i32, i32
  }
  func.func @transform_2(%arg0: i32) -> (i32, i32) {
    %c0_i32 = arith.constant 0 : i32
    %c0_i32_0 = arith.constant 0 : i32
    %c0_i32_1 = arith.constant 0 : i32
    return %c0_i32, %c0_i32_0 : i32, i32
  }
  func.func @transform_3(%arg0: i32) -> (i32, i32) {
    %c0_i32 = arith.constant 0 : i32
    %c0_i32_0 = arith.constant 0 : i32
    return %c0_i32, %arg0 : i32, i32
  }
}

module attributes {stable_mosaic.version = 11 : i64} {
  func.func @_enc_conv_kernel(%arg0: i32, %arg1: memref<32x128xbf16, #tpu.memory_space<vmem>>, %arg2: memref<16x128xbf16, #tpu.memory_space<vmem>>, %arg3: memref<16x1xf32, #tpu.memory_space<vmem>>, %arg4: memref<16x128xbf16, #tpu.memory_space<vmem>>) attributes {dimension_semantics = [#tpu.dimension_semantics<parallel>], iteration_bounds = array<i64: 1>, scalar_prefetch = 0 : i64, scratch_operands = 0 : i64, tpu.core_type = #tpu.core_type<tc>, window_params = [{transform_indices = @transform_0, window_bounds = array<i64: 32, 128>}, {pipeline_mode = #tpu.pipeline_mode<synchronous>, transform_indices = @transform_1, window_bounds = array<i64: 16, 128>}, {pipeline_mode = #tpu.pipeline_mode<synchronous>, transform_indices = @transform_2, window_bounds = array<i64: 16, 1>}, {transform_indices = @transform_3, window_bounds = array<i64: 16, 128>}]} {
    %c0 = arith.constant 0 : index
    %c0_0 = arith.constant 0 : index
    %0 = vector.load %arg1[%c0, %c0_0] : memref<32x128xbf16, #tpu.memory_space<vmem>>, vector<32x128xbf16>
    %1 = tpu.iota {dimensions = array<i32: 1>} : vector<1x128xi32>
    %c7_i32 = arith.constant 7 : i32
    %2 = vector.broadcast %c7_i32 : i32 to vector<1x128xi32>
    %3 = arith.andi %1, %2 : vector<1x128xi32>
    %c3_i32 = arith.constant 3 : i32
    %4 = vector.broadcast %c3_i32 : i32 to vector<1x128xi32>
    %5 = arith.shrsi %1, %4 : vector<1x128xi32>
    %c7_i32_1 = arith.constant 7 : i32
    %6 = vector.broadcast %c7_i32_1 : i32 to vector<1x128xi32>
    %7 = arith.andi %5, %6 : vector<1x128xi32>
    %8 = vector.extract_strided_slice %0 {offsets = [24, 0], sizes = [8, 128], strides = [1, 1]} : vector<32x128xbf16> to vector<8x128xbf16>
    %9 = vector.extract_strided_slice %8 {offsets = [0, 119], sizes = [8, 9], strides = [1, 1]} : vector<8x128xbf16> to vector<8x9xbf16>
    %10 = vector.extract_strided_slice %8 {offsets = [0, 0], sizes = [8, 119], strides = [1, 1]} : vector<8x128xbf16> to vector<8x119xbf16>
    %11 = tpu.concatenate %9, %10 in 1 : vector<8x9xbf16>, vector<8x119xbf16> -> vector<8x128xbf16>
    %c1_i32 = arith.constant 1 : i32
    %12 = vector.broadcast %c1_i32 : i32 to vector<1x128xi32>
    %13 = arith.cmpi sge, %7, %12 : vector<1x128xi32>
    %c1_i32_2 = arith.constant 1 : i32
    %14 = vector.broadcast %c1_i32_2 : i32 to vector<1x128xi32>
    %15 = arith.cmpi sge, %3, %14 : vector<1x128xi32>
    %16 = arith.andi %13, %15 : vector<1x128xi1>
    %cst = arith.constant 0.000000e+00 : bf16
    %17 = vector.broadcast %cst : bf16 to vector<8x128xbf16>
    %18 = vector.shape_cast %16 : vector<1x128xi1> to vector<1x128xi1>
    %19 = vector.broadcast %18 : vector<1x128xi1> to vector<8x128xi1>
    %20 = arith.select %19, %11, %17 : vector<8x128xi1>, vector<8x128xbf16>
    %21 = vector.extract_strided_slice %0 {offsets = [16, 0], sizes = [8, 128], strides = [1, 1]} : vector<32x128xbf16> to vector<8x128xbf16>
    %22 = vector.extract_strided_slice %21 {offsets = [0, 120], sizes = [8, 8], strides = [1, 1]} : vector<8x128xbf16> to vector<8x8xbf16>
    %23 = vector.extract_strided_slice %21 {offsets = [0, 0], sizes = [8, 120], strides = [1, 1]} : vector<8x128xbf16> to vector<8x120xbf16>
    %24 = tpu.concatenate %22, %23 in 1 : vector<8x8xbf16>, vector<8x120xbf16> -> vector<8x128xbf16>
    %c1_i32_3 = arith.constant 1 : i32
    %25 = vector.broadcast %c1_i32_3 : i32 to vector<1x128xi32>
    %26 = arith.cmpi sge, %7, %25 : vector<1x128xi32>
    %cst_4 = arith.constant 0.000000e+00 : bf16
    %27 = vector.broadcast %cst_4 : bf16 to vector<8x128xbf16>
    %28 = vector.shape_cast %26 : vector<1x128xi1> to vector<1x128xi1>
    %29 = vector.broadcast %28 : vector<1x128xi1> to vector<8x128xi1>
    %30 = arith.select %29, %24, %27 : vector<8x128xi1>, vector<8x128xbf16>
    %31 = vector.extract_strided_slice %0 {offsets = [24, 0], sizes = [8, 128], strides = [1, 1]} : vector<32x128xbf16> to vector<8x128xbf16>
    %32 = vector.extract_strided_slice %31 {offsets = [0, 120], sizes = [8, 8], strides = [1, 1]} : vector<8x128xbf16> to vector<8x8xbf16>
    %33 = vector.extract_strided_slice %31 {offsets = [0, 0], sizes = [8, 120], strides = [1, 1]} : vector<8x128xbf16> to vector<8x120xbf16>
    %34 = tpu.concatenate %32, %33 in 1 : vector<8x8xbf16>, vector<8x120xbf16> -> vector<8x128xbf16>
    %c1_i32_5 = arith.constant 1 : i32
    %35 = vector.broadcast %c1_i32_5 : i32 to vector<1x128xi32>
    %36 = arith.cmpi sge, %7, %35 : vector<1x128xi32>
    %cst_6 = arith.constant 0.000000e+00 : bf16
    %37 = vector.broadcast %cst_6 : bf16 to vector<8x128xbf16>
    %38 = vector.shape_cast %36 : vector<1x128xi1> to vector<1x128xi1>
    %39 = vector.broadcast %38 : vector<1x128xi1> to vector<8x128xi1>
    %40 = arith.select %39, %34, %37 : vector<8x128xi1>, vector<8x128xbf16>
    %41 = vector.extract_strided_slice %0 {offsets = [16, 0], sizes = [8, 128], strides = [1, 1]} : vector<32x128xbf16> to vector<8x128xbf16>
    %42 = vector.extract_strided_slice %41 {offsets = [0, 121], sizes = [8, 7], strides = [1, 1]} : vector<8x128xbf16> to vector<8x7xbf16>
    %43 = vector.extract_strided_slice %41 {offsets = [0, 0], sizes = [8, 121], strides = [1, 1]} : vector<8x128xbf16> to vector<8x121xbf16>
    %44 = tpu.concatenate %42, %43 in 1 : vector<8x7xbf16>, vector<8x121xbf16> -> vector<8x128xbf16>
    %c1_i32_7 = arith.constant 1 : i32
    %45 = vector.broadcast %c1_i32_7 : i32 to vector<1x128xi32>
    %46 = arith.cmpi sge, %7, %45 : vector<1x128xi32>
    %c7_i32_8 = arith.constant 7 : i32
    %47 = vector.broadcast %c7_i32_8 : i32 to vector<1x128xi32>
    %48 = arith.cmpi slt, %3, %47 : vector<1x128xi32>
    %49 = arith.andi %46, %48 : vector<1x128xi1>
    %cst_9 = arith.constant 0.000000e+00 : bf16
    %50 = vector.broadcast %cst_9 : bf16 to vector<8x128xbf16>
    %51 = vector.shape_cast %49 : vector<1x128xi1> to vector<1x128xi1>
    %52 = vector.broadcast %51 : vector<1x128xi1> to vector<8x128xi1>
    %53 = arith.select %52, %44, %50 : vector<8x128xi1>, vector<8x128xbf16>
    %54 = vector.extract_strided_slice %0 {offsets = [8, 0], sizes = [8, 128], strides = [1, 1]} : vector<32x128xbf16> to vector<8x128xbf16>
    %55 = vector.extract_strided_slice %54 {offsets = [0, 127], sizes = [8, 1], strides = [1, 1]} : vector<8x128xbf16> to vector<8x1xbf16>
    %56 = vector.extract_strided_slice %54 {offsets = [0, 0], sizes = [8, 127], strides = [1, 1]} : vector<8x128xbf16> to vector<8x127xbf16>
    %57 = tpu.concatenate %55, %56 in 1 : vector<8x1xbf16>, vector<8x127xbf16> -> vector<8x128xbf16>
    %c1_i32_10 = arith.constant 1 : i32
    %58 = vector.broadcast %c1_i32_10 : i32 to vector<1x128xi32>
    %59 = arith.cmpi sge, %3, %58 : vector<1x128xi32>
    %cst_11 = arith.constant 0.000000e+00 : bf16
    %60 = vector.broadcast %cst_11 : bf16 to vector<8x128xbf16>
    %61 = vector.shape_cast %59 : vector<1x128xi1> to vector<1x128xi1>
    %62 = vector.broadcast %61 : vector<1x128xi1> to vector<8x128xi1>
    %63 = arith.select %62, %57, %60 : vector<8x128xi1>, vector<8x128xbf16>
    %64 = vector.extract_strided_slice %0 {offsets = [0, 0], sizes = [8, 128], strides = [1, 1]} : vector<32x128xbf16> to vector<8x128xbf16>
    %65 = vector.extract_strided_slice %0 {offsets = [8, 0], sizes = [8, 128], strides = [1, 1]} : vector<32x128xbf16> to vector<8x128xbf16>
    %66 = vector.extract_strided_slice %0 {offsets = [0, 0], sizes = [8, 128], strides = [1, 1]} : vector<32x128xbf16> to vector<8x128xbf16>
    %67 = vector.extract_strided_slice %66 {offsets = [0, 1], sizes = [8, 127], strides = [1, 1]} : vector<8x128xbf16> to vector<8x127xbf16>
    %68 = vector.extract_strided_slice %66 {offsets = [0, 0], sizes = [8, 1], strides = [1, 1]} : vector<8x128xbf16> to vector<8x1xbf16>
    %69 = tpu.concatenate %67, %68 in 1 : vector<8x127xbf16>, vector<8x1xbf16> -> vector<8x128xbf16>
    %c7_i32_12 = arith.constant 7 : i32
    %70 = vector.broadcast %c7_i32_12 : i32 to vector<1x128xi32>
    %71 = arith.cmpi slt, %3, %70 : vector<1x128xi32>
    %cst_13 = arith.constant 0.000000e+00 : bf16
    %72 = vector.broadcast %cst_13 : bf16 to vector<8x128xbf16>
    %73 = vector.shape_cast %71 : vector<1x128xi1> to vector<1x128xi1>
    %74 = vector.broadcast %73 : vector<1x128xi1> to vector<8x128xi1>
    %75 = arith.select %74, %69, %72 : vector<8x128xi1>, vector<8x128xbf16>
    %76 = vector.extract_strided_slice %0 {offsets = [24, 0], sizes = [8, 128], strides = [1, 1]} : vector<32x128xbf16> to vector<8x128xbf16>
    %77 = vector.extract_strided_slice %76 {offsets = [0, 127], sizes = [8, 1], strides = [1, 1]} : vector<8x128xbf16> to vector<8x1xbf16>
    %78 = vector.extract_strided_slice %76 {offsets = [0, 0], sizes = [8, 127], strides = [1, 1]} : vector<8x128xbf16> to vector<8x127xbf16>
    %79 = tpu.concatenate %77, %78 in 1 : vector<8x1xbf16>, vector<8x127xbf16> -> vector<8x128xbf16>
    %c1_i32_14 = arith.constant 1 : i32
    %80 = vector.broadcast %c1_i32_14 : i32 to vector<1x128xi32>
    %81 = arith.cmpi sge, %3, %80 : vector<1x128xi32>
    %cst_15 = arith.constant 0.000000e+00 : bf16
    %82 = vector.broadcast %cst_15 : bf16 to vector<8x128xbf16>
    %83 = vector.shape_cast %81 : vector<1x128xi1> to vector<1x128xi1>
    %84 = vector.broadcast %83 : vector<1x128xi1> to vector<8x128xi1>
    %85 = arith.select %84, %79, %82 : vector<8x128xi1>, vector<8x128xbf16>
    %86 = vector.extract_strided_slice %0 {offsets = [16, 0], sizes = [8, 128], strides = [1, 1]} : vector<32x128xbf16> to vector<8x128xbf16>
    %87 = vector.extract_strided_slice %0 {offsets = [24, 0], sizes = [8, 128], strides = [1, 1]} : vector<32x128xbf16> to vector<8x128xbf16>
    %88 = vector.extract_strided_slice %0 {offsets = [16, 0], sizes = [8, 128], strides = [1, 1]} : vector<32x128xbf16> to vector<8x128xbf16>
    %89 = vector.extract_strided_slice %88 {offsets = [0, 1], sizes = [8, 127], strides = [1, 1]} : vector<8x128xbf16> to vector<8x127xbf16>
    %90 = vector.extract_strided_slice %88 {offsets = [0, 0], sizes = [8, 1], strides = [1, 1]} : vector<8x128xbf16> to vector<8x1xbf16>
    %91 = tpu.concatenate %89, %90 in 1 : vector<8x127xbf16>, vector<8x1xbf16> -> vector<8x128xbf16>
    %c7_i32_16 = arith.constant 7 : i32
    %92 = vector.broadcast %c7_i32_16 : i32 to vector<1x128xi32>
    %93 = arith.cmpi slt, %3, %92 : vector<1x128xi32>
    %cst_17 = arith.constant 0.000000e+00 : bf16
    %94 = vector.broadcast %cst_17 : bf16 to vector<8x128xbf16>
    %95 = vector.shape_cast %93 : vector<1x128xi1> to vector<1x128xi1>
    %96 = vector.broadcast %95 : vector<1x128xi1> to vector<8x128xi1>
    %97 = arith.select %96, %91, %94 : vector<8x128xi1>, vector<8x128xbf16>
    %98 = vector.extract_strided_slice %0 {offsets = [8, 0], sizes = [8, 128], strides = [1, 1]} : vector<32x128xbf16> to vector<8x128xbf16>
    %99 = vector.extract_strided_slice %98 {offsets = [0, 7], sizes = [8, 121], strides = [1, 1]} : vector<8x128xbf16> to vector<8x121xbf16>
    %100 = vector.extract_strided_slice %98 {offsets = [0, 0], sizes = [8, 7], strides = [1, 1]} : vector<8x128xbf16> to vector<8x7xbf16>
    %101 = tpu.concatenate %99, %100 in 1 : vector<8x121xbf16>, vector<8x7xbf16> -> vector<8x128xbf16>
    %c7_i32_18 = arith.constant 7 : i32
    %102 = vector.broadcast %c7_i32_18 : i32 to vector<1x128xi32>
    %103 = arith.cmpi slt, %7, %102 : vector<1x128xi32>
    %c1_i32_19 = arith.constant 1 : i32
    %104 = vector.broadcast %c1_i32_19 : i32 to vector<1x128xi32>
    %105 = arith.cmpi sge, %3, %104 : vector<1x128xi32>
    %106 = arith.andi %103, %105 : vector<1x128xi1>
    %cst_20 = arith.constant 0.000000e+00 : bf16
    %107 = vector.broadcast %cst_20 : bf16 to vector<8x128xbf16>
    %108 = vector.shape_cast %106 : vector<1x128xi1> to vector<1x128xi1>
    %109 = vector.broadcast %108 : vector<1x128xi1> to vector<8x128xi1>
    %110 = arith.select %109, %101, %107 : vector<8x128xi1>, vector<8x128xbf16>
    %111 = vector.extract_strided_slice %0 {offsets = [0, 0], sizes = [8, 128], strides = [1, 1]} : vector<32x128xbf16> to vector<8x128xbf16>
    %112 = vector.extract_strided_slice %111 {offsets = [0, 8], sizes = [8, 120], strides = [1, 1]} : vector<8x128xbf16> to vector<8x120xbf16>
    %113 = vector.extract_strided_slice %111 {offsets = [0, 0], sizes = [8, 8], strides = [1, 1]} : vector<8x128xbf16> to vector<8x8xbf16>
    %114 = tpu.concatenate %112, %113 in 1 : vector<8x120xbf16>, vector<8x8xbf16> -> vector<8x128xbf16>
    %c7_i32_21 = arith.constant 7 : i32
    %115 = vector.broadcast %c7_i32_21 : i32 to vector<1x128xi32>
    %116 = arith.cmpi slt, %7, %115 : vector<1x128xi32>
    %cst_22 = arith.constant 0.000000e+00 : bf16
    %117 = vector.broadcast %cst_22 : bf16 to vector<8x128xbf16>
    %118 = vector.shape_cast %116 : vector<1x128xi1> to vector<1x128xi1>
    %119 = vector.broadcast %118 : vector<1x128xi1> to vector<8x128xi1>
    %120 = arith.select %119, %114, %117 : vector<8x128xi1>, vector<8x128xbf16>
    %121 = vector.extract_strided_slice %0 {offsets = [8, 0], sizes = [8, 128], strides = [1, 1]} : vector<32x128xbf16> to vector<8x128xbf16>
    %122 = vector.extract_strided_slice %121 {offsets = [0, 8], sizes = [8, 120], strides = [1, 1]} : vector<8x128xbf16> to vector<8x120xbf16>
    %123 = vector.extract_strided_slice %121 {offsets = [0, 0], sizes = [8, 8], strides = [1, 1]} : vector<8x128xbf16> to vector<8x8xbf16>
    %124 = tpu.concatenate %122, %123 in 1 : vector<8x120xbf16>, vector<8x8xbf16> -> vector<8x128xbf16>
    %c7_i32_23 = arith.constant 7 : i32
    %125 = vector.broadcast %c7_i32_23 : i32 to vector<1x128xi32>
    %126 = arith.cmpi slt, %7, %125 : vector<1x128xi32>
    %cst_24 = arith.constant 0.000000e+00 : bf16
    %127 = vector.broadcast %cst_24 : bf16 to vector<8x128xbf16>
    %128 = vector.shape_cast %126 : vector<1x128xi1> to vector<1x128xi1>
    %129 = vector.broadcast %128 : vector<1x128xi1> to vector<8x128xi1>
    %130 = arith.select %129, %124, %127 : vector<8x128xi1>, vector<8x128xbf16>
    %131 = vector.extract_strided_slice %0 {offsets = [0, 0], sizes = [8, 128], strides = [1, 1]} : vector<32x128xbf16> to vector<8x128xbf16>
    %132 = vector.extract_strided_slice %131 {offsets = [0, 9], sizes = [8, 119], strides = [1, 1]} : vector<8x128xbf16> to vector<8x119xbf16>
    %133 = vector.extract_strided_slice %131 {offsets = [0, 0], sizes = [8, 9], strides = [1, 1]} : vector<8x128xbf16> to vector<8x9xbf16>
    %134 = tpu.concatenate %132, %133 in 1 : vector<8x119xbf16>, vector<8x9xbf16> -> vector<8x128xbf16>
    %c7_i32_25 = arith.constant 7 : i32
    %135 = vector.broadcast %c7_i32_25 : i32 to vector<1x128xi32>
    %136 = arith.cmpi slt, %7, %135 : vector<1x128xi32>
    %c7_i32_26 = arith.constant 7 : i32
    %137 = vector.broadcast %c7_i32_26 : i32 to vector<1x128xi32>
    %138 = arith.cmpi slt, %3, %137 : vector<1x128xi32>
    %139 = arith.andi %136, %138 : vector<1x128xi1>
    %cst_27 = arith.constant 0.000000e+00 : bf16
    %140 = vector.broadcast %cst_27 : bf16 to vector<8x128xbf16>
    %141 = vector.shape_cast %139 : vector<1x128xi1> to vector<1x128xi1>
    %142 = vector.broadcast %141 : vector<1x128xi1> to vector<8x128xi1>
    %143 = arith.select %142, %134, %140 : vector<8x128xi1>, vector<8x128xbf16>
    %144 = tpu.concatenate %20, %30, %40, %53, %63, %64, %65, %75, %85, %86, %87, %97, %110, %120, %130, %143 in 0 : vector<8x128xbf16>, vector<8x128xbf16>, vector<8x128xbf16>, vector<8x128xbf16>, vector<8x128xbf16>, vector<8x128xbf16>, vector<8x128xbf16>, vector<8x128xbf16>, vector<8x128xbf16>, vector<8x128xbf16>, vector<8x128xbf16>, vector<8x128xbf16>, vector<8x128xbf16>, vector<8x128xbf16>, vector<8x128xbf16>, vector<8x128xbf16> -> vector<128x128xbf16>
    %c0_28 = arith.constant 0 : index
    %c0_29 = arith.constant 0 : index
    %145 = vector.load %arg2[%c0_28, %c0_29] : memref<16x128xbf16, #tpu.memory_space<vmem>>, vector<16x128xbf16>
    %cst_30 = arith.constant dense<0.000000e+00> : vector<16x128xf32>
    %146 = tpu.matmul %145, %144, %cst_30 {dimension_numbers = #tpu.dot_dimension_numbers<[1], [0], [0], [1], [0, 0, 1, 1], [], []>} : vector<16x128xbf16>, vector<128x128xbf16>, vector<16x128xf32> -> vector<16x128xf32>
    %c0_31 = arith.constant 0 : index
    %c0_32 = arith.constant 0 : index
    %147 = vector.load %arg3[%c0_31, %c0_32] : memref<16x1xf32, #tpu.memory_space<vmem>>, vector<16x1xf32>
    %148 = vector.broadcast %147 : vector<16x1xf32> to vector<16x128xf32>
    %149 = arith.addf %146, %148 : vector<16x128xf32>
    %cst_33 = arith.constant 0.000000e+00 : f32
    %150 = vector.broadcast %cst_33 : f32 to vector<16x128xf32>
    %151 = arith.maximumf %149, %150 : vector<16x128xf32>
    %152 = arith.truncf %151 : vector<16x128xf32> to vector<16x128xbf16>
    %c0_34 = arith.constant 0 : index
    %c0_35 = arith.constant 0 : index
    %153 = vector.load %arg4[%c0_34, %c0_35] : memref<16x128xbf16, #tpu.memory_space<vmem>>, vector<16x128xbf16>
    tpu.vector_store %arg4[%c0_34, %c0_35], %152 {strides = array<i32>} : memref<16x128xbf16, #tpu.memory_space<vmem>>, vector<16x128xbf16>,
    return
  }
  func.func @transform_0(%arg0: i32) -> (i32, i32) {
    %c0_i32 = arith.constant 0 : i32
    %c0_i32_0 = arith.constant 0 : i32
    return %c0_i32, %arg0 : i32, i32
  }
  func.func @transform_1(%arg0: i32) -> (i32, i32) {
    %c0_i32 = arith.constant 0 : i32
    %c0_i32_0 = arith.constant 0 : i32
    %c0_i32_1 = arith.constant 0 : i32
    return %c0_i32, %c0_i32_0 : i32, i32
  }
  func.func @transform_2(%arg0: i32) -> (i32, i32) {
    %c0_i32 = arith.constant 0 : i32
    %c0_i32_0 = arith.constant 0 : i32
    %c0_i32_1 = arith.constant 0 : i32
    return %c0_i32, %c0_i32_0 : i32, i32
  }
  func.func @transform_3(%arg0: i32) -> (i32, i32) {
    %c0_i32 = arith.constant 0 : i32
    %c0_i32_0 = arith.constant 0 : i32
    return %c0_i32, %arg0 : i32, i32
  }
}

module attributes {stable_mosaic.version = 11 : i64} {
  func.func @_enc_conv_kernel(%arg0: i32, %arg1: memref<64x32xbf16, #tpu.memory_space<vmem>>, %arg2: memref<32x256xbf16, #tpu.memory_space<vmem>>, %arg3: memref<32x1xf32, #tpu.memory_space<vmem>>, %arg4: memref<32x32xbf16, #tpu.memory_space<vmem>>) attributes {dimension_semantics = [#tpu.dimension_semantics<parallel>], iteration_bounds = array<i64: 1>, scalar_prefetch = 0 : i64, scratch_operands = 0 : i64, tpu.core_type = #tpu.core_type<tc>, window_params = [{transform_indices = @transform_0, window_bounds = array<i64: 64, 32>}, {pipeline_mode = #tpu.pipeline_mode<synchronous>, transform_indices = @transform_1, window_bounds = array<i64: 32, 256>}, {pipeline_mode = #tpu.pipeline_mode<synchronous>, transform_indices = @transform_2, window_bounds = array<i64: 32, 1>}, {transform_indices = @transform_3, window_bounds = array<i64: 32, 32>}]} {
    %c0 = arith.constant 0 : index
    %c0_0 = arith.constant 0 : index
    %0 = vector.load %arg1[%c0, %c0_0] : memref<64x32xbf16, #tpu.memory_space<vmem>>, vector<64x32xbf16>
    %1 = tpu.iota {dimensions = array<i32: 1>} : vector<1x32xi32>
    %c3_i32 = arith.constant 3 : i32
    %2 = vector.broadcast %c3_i32 : i32 to vector<1x32xi32>
    %3 = arith.andi %1, %2 : vector<1x32xi32>
    %c2_i32 = arith.constant 2 : i32
    %4 = vector.broadcast %c2_i32 : i32 to vector<1x32xi32>
    %5 = arith.shrsi %1, %4 : vector<1x32xi32>
    %c3_i32_1 = arith.constant 3 : i32
    %6 = vector.broadcast %c3_i32_1 : i32 to vector<1x32xi32>
    %7 = arith.andi %5, %6 : vector<1x32xi32>
    %8 = vector.extract_strided_slice %0 {offsets = [48, 0], sizes = [16, 32], strides = [1, 1]} : vector<64x32xbf16> to vector<16x32xbf16>
    %9 = vector.extract_strided_slice %8 {offsets = [0, 27], sizes = [16, 5], strides = [1, 1]} : vector<16x32xbf16> to vector<16x5xbf16>
    %10 = vector.extract_strided_slice %8 {offsets = [0, 0], sizes = [16, 27], strides = [1, 1]} : vector<16x32xbf16> to vector<16x27xbf16>
    %11 = tpu.concatenate %9, %10 in 1 : vector<16x5xbf16>, vector<16x27xbf16> -> vector<16x32xbf16>
    %c1_i32 = arith.constant 1 : i32
    %12 = vector.broadcast %c1_i32 : i32 to vector<1x32xi32>
    %13 = arith.cmpi sge, %7, %12 : vector<1x32xi32>
    %c1_i32_2 = arith.constant 1 : i32
    %14 = vector.broadcast %c1_i32_2 : i32 to vector<1x32xi32>
    %15 = arith.cmpi sge, %3, %14 : vector<1x32xi32>
    %16 = arith.andi %13, %15 : vector<1x32xi1>
    %cst = arith.constant 0.000000e+00 : bf16
    %17 = vector.broadcast %cst : bf16 to vector<16x32xbf16>
    %18 = vector.shape_cast %16 : vector<1x32xi1> to vector<1x32xi1>
    %19 = vector.broadcast %18 : vector<1x32xi1> to vector<16x32xi1>
    %20 = arith.select %19, %11, %17 : vector<16x32xi1>, vector<16x32xbf16>
    %21 = vector.extract_strided_slice %0 {offsets = [32, 0], sizes = [16, 32], strides = [1, 1]} : vector<64x32xbf16> to vector<16x32xbf16>
    %22 = vector.extract_strided_slice %21 {offsets = [0, 28], sizes = [16, 4], strides = [1, 1]} : vector<16x32xbf16> to vector<16x4xbf16>
    %23 = vector.extract_strided_slice %21 {offsets = [0, 0], sizes = [16, 28], strides = [1, 1]} : vector<16x32xbf16> to vector<16x28xbf16>
    %24 = tpu.concatenate %22, %23 in 1 : vector<16x4xbf16>, vector<16x28xbf16> -> vector<16x32xbf16>
    %c1_i32_3 = arith.constant 1 : i32
    %25 = vector.broadcast %c1_i32_3 : i32 to vector<1x32xi32>
    %26 = arith.cmpi sge, %7, %25 : vector<1x32xi32>
    %cst_4 = arith.constant 0.000000e+00 : bf16
    %27 = vector.broadcast %cst_4 : bf16 to vector<16x32xbf16>
    %28 = vector.shape_cast %26 : vector<1x32xi1> to vector<1x32xi1>
    %29 = vector.broadcast %28 : vector<1x32xi1> to vector<16x32xi1>
    %30 = arith.select %29, %24, %27 : vector<16x32xi1>, vector<16x32xbf16>
    %31 = vector.extract_strided_slice %0 {offsets = [48, 0], sizes = [16, 32], strides = [1, 1]} : vector<64x32xbf16> to vector<16x32xbf16>
    %32 = vector.extract_strided_slice %31 {offsets = [0, 28], sizes = [16, 4], strides = [1, 1]} : vector<16x32xbf16> to vector<16x4xbf16>
    %33 = vector.extract_strided_slice %31 {offsets = [0, 0], sizes = [16, 28], strides = [1, 1]} : vector<16x32xbf16> to vector<16x28xbf16>
    %34 = tpu.concatenate %32, %33 in 1 : vector<16x4xbf16>, vector<16x28xbf16> -> vector<16x32xbf16>
    %c1_i32_5 = arith.constant 1 : i32
    %35 = vector.broadcast %c1_i32_5 : i32 to vector<1x32xi32>
    %36 = arith.cmpi sge, %7, %35 : vector<1x32xi32>
    %cst_6 = arith.constant 0.000000e+00 : bf16
    %37 = vector.broadcast %cst_6 : bf16 to vector<16x32xbf16>
    %38 = vector.shape_cast %36 : vector<1x32xi1> to vector<1x32xi1>
    %39 = vector.broadcast %38 : vector<1x32xi1> to vector<16x32xi1>
    %40 = arith.select %39, %34, %37 : vector<16x32xi1>, vector<16x32xbf16>
    %41 = vector.extract_strided_slice %0 {offsets = [32, 0], sizes = [16, 32], strides = [1, 1]} : vector<64x32xbf16> to vector<16x32xbf16>
    %42 = vector.extract_strided_slice %41 {offsets = [0, 29], sizes = [16, 3], strides = [1, 1]} : vector<16x32xbf16> to vector<16x3xbf16>
    %43 = vector.extract_strided_slice %41 {offsets = [0, 0], sizes = [16, 29], strides = [1, 1]} : vector<16x32xbf16> to vector<16x29xbf16>
    %44 = tpu.concatenate %42, %43 in 1 : vector<16x3xbf16>, vector<16x29xbf16> -> vector<16x32xbf16>
    %c1_i32_7 = arith.constant 1 : i32
    %45 = vector.broadcast %c1_i32_7 : i32 to vector<1x32xi32>
    %46 = arith.cmpi sge, %7, %45 : vector<1x32xi32>
    %c3_i32_8 = arith.constant 3 : i32
    %47 = vector.broadcast %c3_i32_8 : i32 to vector<1x32xi32>
    %48 = arith.cmpi slt, %3, %47 : vector<1x32xi32>
    %49 = arith.andi %46, %48 : vector<1x32xi1>
    %cst_9 = arith.constant 0.000000e+00 : bf16
    %50 = vector.broadcast %cst_9 : bf16 to vector<16x32xbf16>
    %51 = vector.shape_cast %49 : vector<1x32xi1> to vector<1x32xi1>
    %52 = vector.broadcast %51 : vector<1x32xi1> to vector<16x32xi1>
    %53 = arith.select %52, %44, %50 : vector<16x32xi1>, vector<16x32xbf16>
    %54 = vector.extract_strided_slice %0 {offsets = [16, 0], sizes = [16, 32], strides = [1, 1]} : vector<64x32xbf16> to vector<16x32xbf16>
    %55 = vector.extract_strided_slice %54 {offsets = [0, 31], sizes = [16, 1], strides = [1, 1]} : vector<16x32xbf16> to vector<16x1xbf16>
    %56 = vector.extract_strided_slice %54 {offsets = [0, 0], sizes = [16, 31], strides = [1, 1]} : vector<16x32xbf16> to vector<16x31xbf16>
    %57 = tpu.concatenate %55, %56 in 1 : vector<16x1xbf16>, vector<16x31xbf16> -> vector<16x32xbf16>
    %c1_i32_10 = arith.constant 1 : i32
    %58 = vector.broadcast %c1_i32_10 : i32 to vector<1x32xi32>
    %59 = arith.cmpi sge, %3, %58 : vector<1x32xi32>
    %cst_11 = arith.constant 0.000000e+00 : bf16
    %60 = vector.broadcast %cst_11 : bf16 to vector<16x32xbf16>
    %61 = vector.shape_cast %59 : vector<1x32xi1> to vector<1x32xi1>
    %62 = vector.broadcast %61 : vector<1x32xi1> to vector<16x32xi1>
    %63 = arith.select %62, %57, %60 : vector<16x32xi1>, vector<16x32xbf16>
    %64 = vector.extract_strided_slice %0 {offsets = [0, 0], sizes = [16, 32], strides = [1, 1]} : vector<64x32xbf16> to vector<16x32xbf16>
    %65 = vector.extract_strided_slice %0 {offsets = [16, 0], sizes = [16, 32], strides = [1, 1]} : vector<64x32xbf16> to vector<16x32xbf16>
    %66 = vector.extract_strided_slice %0 {offsets = [0, 0], sizes = [16, 32], strides = [1, 1]} : vector<64x32xbf16> to vector<16x32xbf16>
    %67 = vector.extract_strided_slice %66 {offsets = [0, 1], sizes = [16, 31], strides = [1, 1]} : vector<16x32xbf16> to vector<16x31xbf16>
    %68 = vector.extract_strided_slice %66 {offsets = [0, 0], sizes = [16, 1], strides = [1, 1]} : vector<16x32xbf16> to vector<16x1xbf16>
    %69 = tpu.concatenate %67, %68 in 1 : vector<16x31xbf16>, vector<16x1xbf16> -> vector<16x32xbf16>
    %c3_i32_12 = arith.constant 3 : i32
    %70 = vector.broadcast %c3_i32_12 : i32 to vector<1x32xi32>
    %71 = arith.cmpi slt, %3, %70 : vector<1x32xi32>
    %cst_13 = arith.constant 0.000000e+00 : bf16
    %72 = vector.broadcast %cst_13 : bf16 to vector<16x32xbf16>
    %73 = vector.shape_cast %71 : vector<1x32xi1> to vector<1x32xi1>
    %74 = vector.broadcast %73 : vector<1x32xi1> to vector<16x32xi1>
    %75 = arith.select %74, %69, %72 : vector<16x32xi1>, vector<16x32xbf16>
    %76 = vector.extract_strided_slice %0 {offsets = [48, 0], sizes = [16, 32], strides = [1, 1]} : vector<64x32xbf16> to vector<16x32xbf16>
    %77 = vector.extract_strided_slice %76 {offsets = [0, 31], sizes = [16, 1], strides = [1, 1]} : vector<16x32xbf16> to vector<16x1xbf16>
    %78 = vector.extract_strided_slice %76 {offsets = [0, 0], sizes = [16, 31], strides = [1, 1]} : vector<16x32xbf16> to vector<16x31xbf16>
    %79 = tpu.concatenate %77, %78 in 1 : vector<16x1xbf16>, vector<16x31xbf16> -> vector<16x32xbf16>
    %c1_i32_14 = arith.constant 1 : i32
    %80 = vector.broadcast %c1_i32_14 : i32 to vector<1x32xi32>
    %81 = arith.cmpi sge, %3, %80 : vector<1x32xi32>
    %cst_15 = arith.constant 0.000000e+00 : bf16
    %82 = vector.broadcast %cst_15 : bf16 to vector<16x32xbf16>
    %83 = vector.shape_cast %81 : vector<1x32xi1> to vector<1x32xi1>
    %84 = vector.broadcast %83 : vector<1x32xi1> to vector<16x32xi1>
    %85 = arith.select %84, %79, %82 : vector<16x32xi1>, vector<16x32xbf16>
    %86 = vector.extract_strided_slice %0 {offsets = [32, 0], sizes = [16, 32], strides = [1, 1]} : vector<64x32xbf16> to vector<16x32xbf16>
    %87 = vector.extract_strided_slice %0 {offsets = [48, 0], sizes = [16, 32], strides = [1, 1]} : vector<64x32xbf16> to vector<16x32xbf16>
    %88 = vector.extract_strided_slice %0 {offsets = [32, 0], sizes = [16, 32], strides = [1, 1]} : vector<64x32xbf16> to vector<16x32xbf16>
    %89 = vector.extract_strided_slice %88 {offsets = [0, 1], sizes = [16, 31], strides = [1, 1]} : vector<16x32xbf16> to vector<16x31xbf16>
    %90 = vector.extract_strided_slice %88 {offsets = [0, 0], sizes = [16, 1], strides = [1, 1]} : vector<16x32xbf16> to vector<16x1xbf16>
    %91 = tpu.concatenate %89, %90 in 1 : vector<16x31xbf16>, vector<16x1xbf16> -> vector<16x32xbf16>
    %c3_i32_16 = arith.constant 3 : i32
    %92 = vector.broadcast %c3_i32_16 : i32 to vector<1x32xi32>
    %93 = arith.cmpi slt, %3, %92 : vector<1x32xi32>
    %cst_17 = arith.constant 0.000000e+00 : bf16
    %94 = vector.broadcast %cst_17 : bf16 to vector<16x32xbf16>
    %95 = vector.shape_cast %93 : vector<1x32xi1> to vector<1x32xi1>
    %96 = vector.broadcast %95 : vector<1x32xi1> to vector<16x32xi1>
    %97 = arith.select %96, %91, %94 : vector<16x32xi1>, vector<16x32xbf16>
    %98 = vector.extract_strided_slice %0 {offsets = [16, 0], sizes = [16, 32], strides = [1, 1]} : vector<64x32xbf16> to vector<16x32xbf16>
    %99 = vector.extract_strided_slice %98 {offsets = [0, 3], sizes = [16, 29], strides = [1, 1]} : vector<16x32xbf16> to vector<16x29xbf16>
    %100 = vector.extract_strided_slice %98 {offsets = [0, 0], sizes = [16, 3], strides = [1, 1]} : vector<16x32xbf16> to vector<16x3xbf16>
    %101 = tpu.concatenate %99, %100 in 1 : vector<16x29xbf16>, vector<16x3xbf16> -> vector<16x32xbf16>
    %c3_i32_18 = arith.constant 3 : i32
    %102 = vector.broadcast %c3_i32_18 : i32 to vector<1x32xi32>
    %103 = arith.cmpi slt, %7, %102 : vector<1x32xi32>
    %c1_i32_19 = arith.constant 1 : i32
    %104 = vector.broadcast %c1_i32_19 : i32 to vector<1x32xi32>
    %105 = arith.cmpi sge, %3, %104 : vector<1x32xi32>
    %106 = arith.andi %103, %105 : vector<1x32xi1>
    %cst_20 = arith.constant 0.000000e+00 : bf16
    %107 = vector.broadcast %cst_20 : bf16 to vector<16x32xbf16>
    %108 = vector.shape_cast %106 : vector<1x32xi1> to vector<1x32xi1>
    %109 = vector.broadcast %108 : vector<1x32xi1> to vector<16x32xi1>
    %110 = arith.select %109, %101, %107 : vector<16x32xi1>, vector<16x32xbf16>
    %111 = vector.extract_strided_slice %0 {offsets = [0, 0], sizes = [16, 32], strides = [1, 1]} : vector<64x32xbf16> to vector<16x32xbf16>
    %112 = vector.extract_strided_slice %111 {offsets = [0, 4], sizes = [16, 28], strides = [1, 1]} : vector<16x32xbf16> to vector<16x28xbf16>
    %113 = vector.extract_strided_slice %111 {offsets = [0, 0], sizes = [16, 4], strides = [1, 1]} : vector<16x32xbf16> to vector<16x4xbf16>
    %114 = tpu.concatenate %112, %113 in 1 : vector<16x28xbf16>, vector<16x4xbf16> -> vector<16x32xbf16>
    %c3_i32_21 = arith.constant 3 : i32
    %115 = vector.broadcast %c3_i32_21 : i32 to vector<1x32xi32>
    %116 = arith.cmpi slt, %7, %115 : vector<1x32xi32>
    %cst_22 = arith.constant 0.000000e+00 : bf16
    %117 = vector.broadcast %cst_22 : bf16 to vector<16x32xbf16>
    %118 = vector.shape_cast %116 : vector<1x32xi1> to vector<1x32xi1>
    %119 = vector.broadcast %118 : vector<1x32xi1> to vector<16x32xi1>
    %120 = arith.select %119, %114, %117 : vector<16x32xi1>, vector<16x32xbf16>
    %121 = vector.extract_strided_slice %0 {offsets = [16, 0], sizes = [16, 32], strides = [1, 1]} : vector<64x32xbf16> to vector<16x32xbf16>
    %122 = vector.extract_strided_slice %121 {offsets = [0, 4], sizes = [16, 28], strides = [1, 1]} : vector<16x32xbf16> to vector<16x28xbf16>
    %123 = vector.extract_strided_slice %121 {offsets = [0, 0], sizes = [16, 4], strides = [1, 1]} : vector<16x32xbf16> to vector<16x4xbf16>
    %124 = tpu.concatenate %122, %123 in 1 : vector<16x28xbf16>, vector<16x4xbf16> -> vector<16x32xbf16>
    %c3_i32_23 = arith.constant 3 : i32
    %125 = vector.broadcast %c3_i32_23 : i32 to vector<1x32xi32>
    %126 = arith.cmpi slt, %7, %125 : vector<1x32xi32>
    %cst_24 = arith.constant 0.000000e+00 : bf16
    %127 = vector.broadcast %cst_24 : bf16 to vector<16x32xbf16>
    %128 = vector.shape_cast %126 : vector<1x32xi1> to vector<1x32xi1>
    %129 = vector.broadcast %128 : vector<1x32xi1> to vector<16x32xi1>
    %130 = arith.select %129, %124, %127 : vector<16x32xi1>, vector<16x32xbf16>
    %131 = vector.extract_strided_slice %0 {offsets = [0, 0], sizes = [16, 32], strides = [1, 1]} : vector<64x32xbf16> to vector<16x32xbf16>
    %132 = vector.extract_strided_slice %131 {offsets = [0, 5], sizes = [16, 27], strides = [1, 1]} : vector<16x32xbf16> to vector<16x27xbf16>
    %133 = vector.extract_strided_slice %131 {offsets = [0, 0], sizes = [16, 5], strides = [1, 1]} : vector<16x32xbf16> to vector<16x5xbf16>
    %134 = tpu.concatenate %132, %133 in 1 : vector<16x27xbf16>, vector<16x5xbf16> -> vector<16x32xbf16>
    %c3_i32_25 = arith.constant 3 : i32
    %135 = vector.broadcast %c3_i32_25 : i32 to vector<1x32xi32>
    %136 = arith.cmpi slt, %7, %135 : vector<1x32xi32>
    %c3_i32_26 = arith.constant 3 : i32
    %137 = vector.broadcast %c3_i32_26 : i32 to vector<1x32xi32>
    %138 = arith.cmpi slt, %3, %137 : vector<1x32xi32>
    %139 = arith.andi %136, %138 : vector<1x32xi1>
    %cst_27 = arith.constant 0.000000e+00 : bf16
    %140 = vector.broadcast %cst_27 : bf16 to vector<16x32xbf16>
    %141 = vector.shape_cast %139 : vector<1x32xi1> to vector<1x32xi1>
    %142 = vector.broadcast %141 : vector<1x32xi1> to vector<16x32xi1>
    %143 = arith.select %142, %134, %140 : vector<16x32xi1>, vector<16x32xbf16>
    %144 = tpu.concatenate %20, %30, %40, %53, %63, %64, %65, %75, %85, %86, %87, %97, %110, %120, %130, %143 in 0 : vector<16x32xbf16>, vector<16x32xbf16>, vector<16x32xbf16>, vector<16x32xbf16>, vector<16x32xbf16>, vector<16x32xbf16>, vector<16x32xbf16>, vector<16x32xbf16>, vector<16x32xbf16>, vector<16x32xbf16>, vector<16x32xbf16>, vector<16x32xbf16>, vector<16x32xbf16>, vector<16x32xbf16>, vector<16x32xbf16>, vector<16x32xbf16> -> vector<256x32xbf16>
    %c0_28 = arith.constant 0 : index
    %c0_29 = arith.constant 0 : index
    %145 = vector.load %arg2[%c0_28, %c0_29] : memref<32x256xbf16, #tpu.memory_space<vmem>>, vector<32x256xbf16>
    %cst_30 = arith.constant dense<0.000000e+00> : vector<32x32xf32>
    %146 = tpu.matmul %145, %144, %cst_30 {dimension_numbers = #tpu.dot_dimension_numbers<[1], [0], [0], [1], [0, 0, 1, 1], [], []>} : vector<32x256xbf16>, vector<256x32xbf16>, vector<32x32xf32> -> vector<32x32xf32>
    %c0_31 = arith.constant 0 : index
    %c0_32 = arith.constant 0 : index
    %147 = vector.load %arg3[%c0_31, %c0_32] : memref<32x1xf32, #tpu.memory_space<vmem>>, vector<32x1xf32>
    %148 = vector.broadcast %147 : vector<32x1xf32> to vector<32x32xf32>
    %149 = arith.addf %146, %148 : vector<32x32xf32>
    %cst_33 = arith.constant 0.000000e+00 : f32
    %150 = vector.broadcast %cst_33 : f32 to vector<32x32xf32>
    %151 = arith.maximumf %149, %150 : vector<32x32xf32>
    %152 = arith.truncf %151 : vector<32x32xf32> to vector<32x32xbf16>
    %c0_34 = arith.constant 0 : index
    %c0_35 = arith.constant 0 : index
    %153 = vector.load %arg4[%c0_34, %c0_35] : memref<32x32xbf16, #tpu.memory_space<vmem>>, vector<32x32xbf16>
    tpu.vector_store %arg4[%c0_34, %c0_35], %152 {strides = array<i32>} : memref<32x32xbf16, #tpu.memory_space<vmem>>, vector<32x32xbf16>,
    return
  }
  func.func @transform_0(%arg0: i32) -> (i32, i32) {
    %c0_i32 = arith.constant 0 : i32
    %c0_i32_0 = arith.constant 0 : i32
    return %c0_i32, %arg0 : i32, i32
  }
  func.func @transform_1(%arg0: i32) -> (i32, i32) {
    %c0_i32 = arith.constant 0 : i32
    %c0_i32_0 = arith.constant 0 : i32
    %c0_i32_1 = arith.constant 0 : i32
    return %c0_i32, %c0_i32_0 : i32, i32
  }
  func.func @transform_2(%arg0: i32) -> (i32, i32) {
    %c0_i32 = arith.constant 0 : i32
    %c0_i32_0 = arith.constant 0 : i32
    %c0_i32_1 = arith.constant 0 : i32
    return %c0_i32, %c0_i32_0 : i32, i32
  }
  func.func @transform_3(%arg0: i32) -> (i32, i32) {
    %c0_i32 = arith.constant 0 : i32
    %c0_i32_0 = arith.constant 0 : i32
    return %c0_i32, %arg0 : i32, i32
  }
}

module attributes {stable_mosaic.version = 11 : i64} {
  func.func @_latent_kernel(%arg0: memref<2x512xbf16, #tpu.memory_space<vmem>>, %arg1: memref<2x16xf32, #tpu.memory_space<vmem>>, %arg2: memref<512x64xbf16, #tpu.memory_space<vmem>>, %arg3: memref<1x64xf32, #tpu.memory_space<vmem>>, %arg4: memref<64x128xbf16, #tpu.memory_space<vmem>>, %arg5: memref<1x128xf32, #tpu.memory_space<vmem>>, %arg6: memref<128x16xbf16, #tpu.memory_space<vmem>>, %arg7: memref<1x16xf32, #tpu.memory_space<vmem>>, %arg8: memref<128x16xbf16, #tpu.memory_space<vmem>>, %arg9: memref<1x16xf32, #tpu.memory_space<vmem>>, %arg10: memref<16x64xbf16, #tpu.memory_space<vmem>>, %arg11: memref<1x64xf32, #tpu.memory_space<vmem>>, %arg12: memref<64x1024xbf16, #tpu.memory_space<vmem>>, %arg13: memref<1x1024xf32, #tpu.memory_space<vmem>>, %arg14: memref<2x16xf32, #tpu.memory_space<vmem>>, %arg15: memref<2x16xf32, #tpu.memory_space<vmem>>, %arg16: memref<2x1024xbf16, #tpu.memory_space<vmem>>) attributes {dimension_semantics = [], scalar_prefetch = 0 : i64, scratch_operands = 0 : i64, tpu.core_type = #tpu.core_type<tc>} {
    %c0 = arith.constant 0 : index
    %c0_0 = arith.constant 0 : index
    %0 = vector.load %arg0[%c0, %c0_0] : memref<2x512xbf16, #tpu.memory_space<vmem>>, vector<2x512xbf16>
    %c0_1 = arith.constant 0 : index
    %c0_2 = arith.constant 0 : index
    %1 = vector.load %arg2[%c0_1, %c0_2] : memref<512x64xbf16, #tpu.memory_space<vmem>>, vector<512x64xbf16>
    %cst = arith.constant dense<0.000000e+00> : vector<2x64xf32>
    %2 = tpu.matmul %0, %1, %cst {dimension_numbers = #tpu.dot_dimension_numbers<[1], [0], [0], [1], [0, 0, 1, 1], [], []>} : vector<2x512xbf16>, vector<512x64xbf16>, vector<2x64xf32> -> vector<2x64xf32>
    %c0_3 = arith.constant 0 : index
    %c0_4 = arith.constant 0 : index
    %3 = vector.load %arg3[%c0_3, %c0_4] : memref<1x64xf32, #tpu.memory_space<vmem>>, vector<1x64xf32>
    %4 = vector.broadcast %3 : vector<1x64xf32> to vector<2x64xf32>
    %5 = arith.addf %2, %4 : vector<2x64xf32>
    %cst_5 = arith.constant 0.000000e+00 : f32
    %6 = vector.broadcast %cst_5 : f32 to vector<2x64xf32>
    %7 = arith.maximumf %5, %6 : vector<2x64xf32>
    %8 = arith.truncf %7 : vector<2x64xf32> to vector<2x64xbf16>
    %c0_6 = arith.constant 0 : index
    %c0_7 = arith.constant 0 : index
    %9 = vector.load %arg4[%c0_6, %c0_7] : memref<64x128xbf16, #tpu.memory_space<vmem>>, vector<64x128xbf16>
    %cst_8 = arith.constant dense<0.000000e+00> : vector<2x128xf32>
    %10 = tpu.matmul %8, %9, %cst_8 {dimension_numbers = #tpu.dot_dimension_numbers<[1], [0], [0], [1], [0, 0, 1, 1], [], []>} : vector<2x64xbf16>, vector<64x128xbf16>, vector<2x128xf32> -> vector<2x128xf32>
    %c0_9 = arith.constant 0 : index
    %c0_10 = arith.constant 0 : index
    %11 = vector.load %arg5[%c0_9, %c0_10] : memref<1x128xf32, #tpu.memory_space<vmem>>, vector<1x128xf32>
    %12 = vector.broadcast %11 : vector<1x128xf32> to vector<2x128xf32>
    %13 = arith.addf %10, %12 : vector<2x128xf32>
    %14 = arith.truncf %13 : vector<2x128xf32> to vector<2x128xbf16>
    %c0_11 = arith.constant 0 : index
    %c0_12 = arith.constant 0 : index
    %15 = vector.load %arg6[%c0_11, %c0_12] : memref<128x16xbf16, #tpu.memory_space<vmem>>, vector<128x16xbf16>
    %cst_13 = arith.constant dense<0.000000e+00> : vector<2x16xf32>
    %16 = tpu.matmul %14, %15, %cst_13 {dimension_numbers = #tpu.dot_dimension_numbers<[1], [0], [0], [1], [0, 0, 1, 1], [], []>} : vector<2x128xbf16>, vector<128x16xbf16>, vector<2x16xf32> -> vector<2x16xf32>
    %c0_14 = arith.constant 0 : index
    %c0_15 = arith.constant 0 : index
    %17 = vector.load %arg7[%c0_14, %c0_15] : memref<1x16xf32, #tpu.memory_space<vmem>>, vector<1x16xf32>
    %18 = vector.broadcast %17 : vector<1x16xf32> to vector<2x16xf32>
    %19 = arith.addf %16, %18 : vector<2x16xf32>
    %c0_16 = arith.constant 0 : index
    %c0_17 = arith.constant 0 : index
    %20 = vector.load %arg8[%c0_16, %c0_17] : memref<128x16xbf16, #tpu.memory_space<vmem>>, vector<128x16xbf16>
    %cst_18 = arith.constant dense<0.000000e+00> : vector<2x16xf32>
    %21 = tpu.matmul %14, %20, %cst_18 {dimension_numbers = #tpu.dot_dimension_numbers<[1], [0], [0], [1], [0, 0, 1, 1], [], []>} : vector<2x128xbf16>, vector<128x16xbf16>, vector<2x16xf32> -> vector<2x16xf32>
    %c0_19 = arith.constant 0 : index
    %c0_20 = arith.constant 0 : index
    %22 = vector.load %arg9[%c0_19, %c0_20] : memref<1x16xf32, #tpu.memory_space<vmem>>, vector<1x16xf32>
    %23 = vector.broadcast %22 : vector<1x16xf32> to vector<2x16xf32>
    %24 = arith.addf %21, %23 : vector<2x16xf32>
    %c0_21 = arith.constant 0 : index
    %c0_22 = arith.constant 0 : index
    %25 = vector.load %arg1[%c0_21, %c0_22] : memref<2x16xf32, #tpu.memory_space<vmem>>, vector<2x16xf32>
    %cst_23 = arith.constant 5.000000e-01 : f32
    %26 = vector.broadcast %cst_23 : f32 to vector<2x16xf32>
    %27 = arith.mulf %26, %24 : vector<2x16xf32>
    %28 = math.exp %27 : vector<2x16xf32>
    %29 = arith.mulf %25, %28 : vector<2x16xf32>
    %30 = arith.addf %19, %29 : vector<2x16xf32>
    %31 = arith.truncf %30 : vector<2x16xf32> to vector<2x16xbf16>
    %c0_24 = arith.constant 0 : index
    %c0_25 = arith.constant 0 : index
    %32 = vector.load %arg10[%c0_24, %c0_25] : memref<16x64xbf16, #tpu.memory_space<vmem>>, vector<16x64xbf16>
    %cst_26 = arith.constant dense<0.000000e+00> : vector<2x64xf32>
    %33 = tpu.matmul %31, %32, %cst_26 {dimension_numbers = #tpu.dot_dimension_numbers<[1], [0], [0], [1], [0, 0, 1, 1], [], []>} : vector<2x16xbf16>, vector<16x64xbf16>, vector<2x64xf32> -> vector<2x64xf32>
    %c0_27 = arith.constant 0 : index
    %c0_28 = arith.constant 0 : index
    %34 = vector.load %arg11[%c0_27, %c0_28] : memref<1x64xf32, #tpu.memory_space<vmem>>, vector<1x64xf32>
    %35 = vector.broadcast %34 : vector<1x64xf32> to vector<2x64xf32>
    %36 = arith.addf %33, %35 : vector<2x64xf32>
    %37 = arith.truncf %36 : vector<2x64xf32> to vector<2x64xbf16>
    %c0_29 = arith.constant 0 : index
    %c0_30 = arith.constant 0 : index
    %38 = vector.load %arg12[%c0_29, %c0_30] : memref<64x1024xbf16, #tpu.memory_space<vmem>>, vector<64x1024xbf16>
    %cst_31 = arith.constant dense<0.000000e+00> : vector<2x1024xf32>
    %39 = tpu.matmul %37, %38, %cst_31 {dimension_numbers = #tpu.dot_dimension_numbers<[1], [0], [0], [1], [0, 0, 1, 1], [], []>} : vector<2x64xbf16>, vector<64x1024xbf16>, vector<2x1024xf32> -> vector<2x1024xf32>
    %c0_32 = arith.constant 0 : index
    %c0_33 = arith.constant 0 : index
    %40 = vector.load %arg13[%c0_32, %c0_33] : memref<1x1024xf32, #tpu.memory_space<vmem>>, vector<1x1024xf32>
    %41 = vector.broadcast %40 : vector<1x1024xf32> to vector<2x1024xf32>
    %42 = arith.addf %39, %41 : vector<2x1024xf32>
    %c0_34 = arith.constant 0 : index
    %c0_35 = arith.constant 0 : index
    %43 = vector.load %arg14[%c0_34, %c0_35] : memref<2x16xf32, #tpu.memory_space<vmem>>, vector<2x16xf32>
    tpu.vector_store %arg14[%c0_34, %c0_35], %19 {strides = array<i32>} : memref<2x16xf32, #tpu.memory_space<vmem>>, vector<2x16xf32>,
    %c0_36 = arith.constant 0 : index
    %c0_37 = arith.constant 0 : index
    %44 = vector.load %arg15[%c0_36, %c0_37] : memref<2x16xf32, #tpu.memory_space<vmem>>, vector<2x16xf32>
    tpu.vector_store %arg15[%c0_36, %c0_37], %24 {strides = array<i32>} : memref<2x16xf32, #tpu.memory_space<vmem>>, vector<2x16xf32>,
    %cst_38 = arith.constant 0.000000e+00 : f32
    %45 = vector.broadcast %cst_38 : f32 to vector<2x1024xf32>
    %46 = arith.maximumf %42, %45 : vector<2x1024xf32>
    %47 = arith.truncf %46 : vector<2x1024xf32> to vector<2x1024xbf16>
    %c0_39 = arith.constant 0 : index
    %c0_40 = arith.constant 0 : index
    %48 = vector.load %arg16[%c0_39, %c0_40] : memref<2x1024xbf16, #tpu.memory_space<vmem>>, vector<2x1024xbf16>
    tpu.vector_store %arg16[%c0_39, %c0_40], %47 {strides = array<i32>} : memref<2x1024xbf16, #tpu.memory_space<vmem>>, vector<2x1024xbf16>,
    return
  }
}

module attributes {stable_mosaic.version = 11 : i64} {
  func.func @_deconv_kernel(%arg0: i32, %arg1: memref<64x32xbf16, #tpu.memory_space<vmem>>, %arg2: memref<128x576xbf16, #tpu.memory_space<vmem>>, %arg3: memref<128x1xf32, #tpu.memory_space<vmem>>, %arg4: memref<128x32xbf16, #tpu.memory_space<vmem>>) attributes {dimension_semantics = [#tpu.dimension_semantics<parallel>], iteration_bounds = array<i64: 1>, scalar_prefetch = 0 : i64, scratch_operands = 0 : i64, tpu.core_type = #tpu.core_type<tc>, window_params = [{transform_indices = @transform_0, window_bounds = array<i64: 64, 32>}, {pipeline_mode = #tpu.pipeline_mode<synchronous>, transform_indices = @transform_1, window_bounds = array<i64: 128, 576>}, {pipeline_mode = #tpu.pipeline_mode<synchronous>, transform_indices = @transform_2, window_bounds = array<i64: 128, 1>}, {transform_indices = @transform_3, window_bounds = array<i64: 128, 32>}]} {
    %c0 = arith.constant 0 : index
    %c0_0 = arith.constant 0 : index
    %0 = vector.load %arg1[%c0, %c0_0] : memref<64x32xbf16, #tpu.memory_space<vmem>>, vector<64x32xbf16>
    %1 = tpu.iota {dimensions = array<i32: 1>} : vector<1x32xi32>
    %c3_i32 = arith.constant 3 : i32
    %2 = vector.broadcast %c3_i32 : i32 to vector<1x32xi32>
    %3 = arith.andi %1, %2 : vector<1x32xi32>
    %c2_i32 = arith.constant 2 : i32
    %4 = vector.broadcast %c2_i32 : i32 to vector<1x32xi32>
    %5 = arith.shrsi %1, %4 : vector<1x32xi32>
    %c3_i32_1 = arith.constant 3 : i32
    %6 = vector.broadcast %c3_i32_1 : i32 to vector<1x32xi32>
    %7 = arith.andi %5, %6 : vector<1x32xi32>
    %8 = vector.extract_strided_slice %0 {offsets = [0, 27], sizes = [64, 5], strides = [1, 1]} : vector<64x32xbf16> to vector<64x5xbf16>
    %9 = vector.extract_strided_slice %0 {offsets = [0, 0], sizes = [64, 27], strides = [1, 1]} : vector<64x32xbf16> to vector<64x27xbf16>
    %10 = tpu.concatenate %8, %9 in 1 : vector<64x5xbf16>, vector<64x27xbf16> -> vector<64x32xbf16>
    %c1_i32 = arith.constant 1 : i32
    %11 = vector.broadcast %c1_i32 : i32 to vector<1x32xi32>
    %12 = arith.cmpi sge, %7, %11 : vector<1x32xi32>
    %c1_i32_2 = arith.constant 1 : i32
    %13 = vector.broadcast %c1_i32_2 : i32 to vector<1x32xi32>
    %14 = arith.cmpi sge, %3, %13 : vector<1x32xi32>
    %15 = arith.andi %12, %14 : vector<1x32xi1>
    %cst = arith.constant 0.000000e+00 : bf16
    %16 = vector.broadcast %cst : bf16 to vector<64x32xbf16>
    %17 = vector.shape_cast %15 : vector<1x32xi1> to vector<1x32xi1>
    %18 = vector.broadcast %17 : vector<1x32xi1> to vector<64x32xi1>
    %19 = arith.select %18, %10, %16 : vector<64x32xi1>, vector<64x32xbf16>
    %20 = vector.extract_strided_slice %0 {offsets = [0, 28], sizes = [64, 4], strides = [1, 1]} : vector<64x32xbf16> to vector<64x4xbf16>
    %21 = vector.extract_strided_slice %0 {offsets = [0, 0], sizes = [64, 28], strides = [1, 1]} : vector<64x32xbf16> to vector<64x28xbf16>
    %22 = tpu.concatenate %20, %21 in 1 : vector<64x4xbf16>, vector<64x28xbf16> -> vector<64x32xbf16>
    %c1_i32_3 = arith.constant 1 : i32
    %23 = vector.broadcast %c1_i32_3 : i32 to vector<1x32xi32>
    %24 = arith.cmpi sge, %7, %23 : vector<1x32xi32>
    %cst_4 = arith.constant 0.000000e+00 : bf16
    %25 = vector.broadcast %cst_4 : bf16 to vector<64x32xbf16>
    %26 = vector.shape_cast %24 : vector<1x32xi1> to vector<1x32xi1>
    %27 = vector.broadcast %26 : vector<1x32xi1> to vector<64x32xi1>
    %28 = arith.select %27, %22, %25 : vector<64x32xi1>, vector<64x32xbf16>
    %29 = vector.extract_strided_slice %0 {offsets = [0, 29], sizes = [64, 3], strides = [1, 1]} : vector<64x32xbf16> to vector<64x3xbf16>
    %30 = vector.extract_strided_slice %0 {offsets = [0, 0], sizes = [64, 29], strides = [1, 1]} : vector<64x32xbf16> to vector<64x29xbf16>
    %31 = tpu.concatenate %29, %30 in 1 : vector<64x3xbf16>, vector<64x29xbf16> -> vector<64x32xbf16>
    %c1_i32_5 = arith.constant 1 : i32
    %32 = vector.broadcast %c1_i32_5 : i32 to vector<1x32xi32>
    %33 = arith.cmpi sge, %7, %32 : vector<1x32xi32>
    %c3_i32_6 = arith.constant 3 : i32
    %34 = vector.broadcast %c3_i32_6 : i32 to vector<1x32xi32>
    %35 = arith.cmpi slt, %3, %34 : vector<1x32xi32>
    %36 = arith.andi %33, %35 : vector<1x32xi1>
    %cst_7 = arith.constant 0.000000e+00 : bf16
    %37 = vector.broadcast %cst_7 : bf16 to vector<64x32xbf16>
    %38 = vector.shape_cast %36 : vector<1x32xi1> to vector<1x32xi1>
    %39 = vector.broadcast %38 : vector<1x32xi1> to vector<64x32xi1>
    %40 = arith.select %39, %31, %37 : vector<64x32xi1>, vector<64x32xbf16>
    %41 = vector.extract_strided_slice %0 {offsets = [0, 31], sizes = [64, 1], strides = [1, 1]} : vector<64x32xbf16> to vector<64x1xbf16>
    %42 = vector.extract_strided_slice %0 {offsets = [0, 0], sizes = [64, 31], strides = [1, 1]} : vector<64x32xbf16> to vector<64x31xbf16>
    %43 = tpu.concatenate %41, %42 in 1 : vector<64x1xbf16>, vector<64x31xbf16> -> vector<64x32xbf16>
    %c1_i32_8 = arith.constant 1 : i32
    %44 = vector.broadcast %c1_i32_8 : i32 to vector<1x32xi32>
    %45 = arith.cmpi sge, %3, %44 : vector<1x32xi32>
    %cst_9 = arith.constant 0.000000e+00 : bf16
    %46 = vector.broadcast %cst_9 : bf16 to vector<64x32xbf16>
    %47 = vector.shape_cast %45 : vector<1x32xi1> to vector<1x32xi1>
    %48 = vector.broadcast %47 : vector<1x32xi1> to vector<64x32xi1>
    %49 = arith.select %48, %43, %46 : vector<64x32xi1>, vector<64x32xbf16>
    %50 = vector.extract_strided_slice %0 {offsets = [0, 1], sizes = [64, 31], strides = [1, 1]} : vector<64x32xbf16> to vector<64x31xbf16>
    %51 = vector.extract_strided_slice %0 {offsets = [0, 0], sizes = [64, 1], strides = [1, 1]} : vector<64x32xbf16> to vector<64x1xbf16>
    %52 = tpu.concatenate %50, %51 in 1 : vector<64x31xbf16>, vector<64x1xbf16> -> vector<64x32xbf16>
    %c3_i32_10 = arith.constant 3 : i32
    %53 = vector.broadcast %c3_i32_10 : i32 to vector<1x32xi32>
    %54 = arith.cmpi slt, %3, %53 : vector<1x32xi32>
    %cst_11 = arith.constant 0.000000e+00 : bf16
    %55 = vector.broadcast %cst_11 : bf16 to vector<64x32xbf16>
    %56 = vector.shape_cast %54 : vector<1x32xi1> to vector<1x32xi1>
    %57 = vector.broadcast %56 : vector<1x32xi1> to vector<64x32xi1>
    %58 = arith.select %57, %52, %55 : vector<64x32xi1>, vector<64x32xbf16>
    %59 = vector.extract_strided_slice %0 {offsets = [0, 3], sizes = [64, 29], strides = [1, 1]} : vector<64x32xbf16> to vector<64x29xbf16>
    %60 = vector.extract_strided_slice %0 {offsets = [0, 0], sizes = [64, 3], strides = [1, 1]} : vector<64x32xbf16> to vector<64x3xbf16>
    %61 = tpu.concatenate %59, %60 in 1 : vector<64x29xbf16>, vector<64x3xbf16> -> vector<64x32xbf16>
    %c3_i32_12 = arith.constant 3 : i32
    %62 = vector.broadcast %c3_i32_12 : i32 to vector<1x32xi32>
    %63 = arith.cmpi slt, %7, %62 : vector<1x32xi32>
    %c1_i32_13 = arith.constant 1 : i32
    %64 = vector.broadcast %c1_i32_13 : i32 to vector<1x32xi32>
    %65 = arith.cmpi sge, %3, %64 : vector<1x32xi32>
    %66 = arith.andi %63, %65 : vector<1x32xi1>
    %cst_14 = arith.constant 0.000000e+00 : bf16
    %67 = vector.broadcast %cst_14 : bf16 to vector<64x32xbf16>
    %68 = vector.shape_cast %66 : vector<1x32xi1> to vector<1x32xi1>
    %69 = vector.broadcast %68 : vector<1x32xi1> to vector<64x32xi1>
    %70 = arith.select %69, %61, %67 : vector<64x32xi1>, vector<64x32xbf16>
    %71 = vector.extract_strided_slice %0 {offsets = [0, 4], sizes = [64, 28], strides = [1, 1]} : vector<64x32xbf16> to vector<64x28xbf16>
    %72 = vector.extract_strided_slice %0 {offsets = [0, 0], sizes = [64, 4], strides = [1, 1]} : vector<64x32xbf16> to vector<64x4xbf16>
    %73 = tpu.concatenate %71, %72 in 1 : vector<64x28xbf16>, vector<64x4xbf16> -> vector<64x32xbf16>
    %c3_i32_15 = arith.constant 3 : i32
    %74 = vector.broadcast %c3_i32_15 : i32 to vector<1x32xi32>
    %75 = arith.cmpi slt, %7, %74 : vector<1x32xi32>
    %cst_16 = arith.constant 0.000000e+00 : bf16
    %76 = vector.broadcast %cst_16 : bf16 to vector<64x32xbf16>
    %77 = vector.shape_cast %75 : vector<1x32xi1> to vector<1x32xi1>
    %78 = vector.broadcast %77 : vector<1x32xi1> to vector<64x32xi1>
    %79 = arith.select %78, %73, %76 : vector<64x32xi1>, vector<64x32xbf16>
    %80 = vector.extract_strided_slice %0 {offsets = [0, 5], sizes = [64, 27], strides = [1, 1]} : vector<64x32xbf16> to vector<64x27xbf16>
    %81 = vector.extract_strided_slice %0 {offsets = [0, 0], sizes = [64, 5], strides = [1, 1]} : vector<64x32xbf16> to vector<64x5xbf16>
    %82 = tpu.concatenate %80, %81 in 1 : vector<64x27xbf16>, vector<64x5xbf16> -> vector<64x32xbf16>
    %c3_i32_17 = arith.constant 3 : i32
    %83 = vector.broadcast %c3_i32_17 : i32 to vector<1x32xi32>
    %84 = arith.cmpi slt, %7, %83 : vector<1x32xi32>
    %c3_i32_18 = arith.constant 3 : i32
    %85 = vector.broadcast %c3_i32_18 : i32 to vector<1x32xi32>
    %86 = arith.cmpi slt, %3, %85 : vector<1x32xi32>
    %87 = arith.andi %84, %86 : vector<1x32xi1>
    %cst_19 = arith.constant 0.000000e+00 : bf16
    %88 = vector.broadcast %cst_19 : bf16 to vector<64x32xbf16>
    %89 = vector.shape_cast %87 : vector<1x32xi1> to vector<1x32xi1>
    %90 = vector.broadcast %89 : vector<1x32xi1> to vector<64x32xi1>
    %91 = arith.select %90, %82, %88 : vector<64x32xi1>, vector<64x32xbf16>
    %92 = tpu.concatenate %19, %28, %40, %49, %0, %58, %70, %79, %91 in 0 : vector<64x32xbf16>, vector<64x32xbf16>, vector<64x32xbf16>, vector<64x32xbf16>, vector<64x32xbf16>, vector<64x32xbf16>, vector<64x32xbf16>, vector<64x32xbf16>, vector<64x32xbf16> -> vector<576x32xbf16>
    %c0_20 = arith.constant 0 : index
    %c0_21 = arith.constant 0 : index
    %93 = vector.load %arg2[%c0_20, %c0_21] : memref<128x576xbf16, #tpu.memory_space<vmem>>, vector<128x576xbf16>
    %cst_22 = arith.constant dense<0.000000e+00> : vector<128x32xf32>
    %94 = tpu.matmul %93, %92, %cst_22 {dimension_numbers = #tpu.dot_dimension_numbers<[1], [0], [0], [1], [0, 0, 1, 1], [], []>} : vector<128x576xbf16>, vector<576x32xbf16>, vector<128x32xf32> -> vector<128x32xf32>
    %c0_23 = arith.constant 0 : index
    %c0_24 = arith.constant 0 : index
    %95 = vector.load %arg3[%c0_23, %c0_24] : memref<128x1xf32, #tpu.memory_space<vmem>>, vector<128x1xf32>
    %96 = vector.broadcast %95 : vector<128x1xf32> to vector<128x32xf32>
    %97 = arith.addf %94, %96 : vector<128x32xf32>
    %cst_25 = arith.constant 0.000000e+00 : f32
    %98 = vector.broadcast %cst_25 : f32 to vector<128x32xf32>
    %99 = arith.maximumf %97, %98 : vector<128x32xf32>
    %100 = arith.truncf %99 : vector<128x32xf32> to vector<128x32xbf16>
    %c0_26 = arith.constant 0 : index
    %c0_27 = arith.constant 0 : index
    %101 = vector.load %arg4[%c0_26, %c0_27] : memref<128x32xbf16, #tpu.memory_space<vmem>>, vector<128x32xbf16>
    tpu.vector_store %arg4[%c0_26, %c0_27], %100 {strides = array<i32>} : memref<128x32xbf16, #tpu.memory_space<vmem>>, vector<128x32xbf16>,
    return
  }
  func.func @transform_0(%arg0: i32) -> (i32, i32) {
    %c0_i32 = arith.constant 0 : i32
    %c0_i32_0 = arith.constant 0 : i32
    return %c0_i32, %arg0 : i32, i32
  }
  func.func @transform_1(%arg0: i32) -> (i32, i32) {
    %c0_i32 = arith.constant 0 : i32
    %c0_i32_0 = arith.constant 0 : i32
    %c0_i32_1 = arith.constant 0 : i32
    return %c0_i32, %c0_i32_0 : i32, i32
  }
  func.func @transform_2(%arg0: i32) -> (i32, i32) {
    %c0_i32 = arith.constant 0 : i32
    %c0_i32_0 = arith.constant 0 : i32
    %c0_i32_1 = arith.constant 0 : i32
    return %c0_i32, %c0_i32_0 : i32, i32
  }
  func.func @transform_3(%arg0: i32) -> (i32, i32) {
    %c0_i32 = arith.constant 0 : i32
    %c0_i32_0 = arith.constant 0 : i32
    return %c0_i32, %arg0 : i32, i32
  }
}

module attributes {stable_mosaic.version = 11 : i64} {
  func.func @_deconv_kernel(%arg0: i32, %arg1: memref<32x128xbf16, #tpu.memory_space<vmem>>, %arg2: memref<64x288xbf16, #tpu.memory_space<vmem>>, %arg3: memref<64x1xf32, #tpu.memory_space<vmem>>, %arg4: memref<64x128xbf16, #tpu.memory_space<vmem>>) attributes {dimension_semantics = [#tpu.dimension_semantics<parallel>], iteration_bounds = array<i64: 1>, scalar_prefetch = 0 : i64, scratch_operands = 0 : i64, tpu.core_type = #tpu.core_type<tc>, window_params = [{transform_indices = @transform_0, window_bounds = array<i64: 32, 128>}, {pipeline_mode = #tpu.pipeline_mode<synchronous>, transform_indices = @transform_1, window_bounds = array<i64: 64, 288>}, {pipeline_mode = #tpu.pipeline_mode<synchronous>, transform_indices = @transform_2, window_bounds = array<i64: 64, 1>}, {transform_indices = @transform_3, window_bounds = array<i64: 64, 128>}]} {
    %c0 = arith.constant 0 : index
    %c0_0 = arith.constant 0 : index
    %0 = vector.load %arg1[%c0, %c0_0] : memref<32x128xbf16, #tpu.memory_space<vmem>>, vector<32x128xbf16>
    %1 = tpu.iota {dimensions = array<i32: 1>} : vector<1x128xi32>
    %c7_i32 = arith.constant 7 : i32
    %2 = vector.broadcast %c7_i32 : i32 to vector<1x128xi32>
    %3 = arith.andi %1, %2 : vector<1x128xi32>
    %c3_i32 = arith.constant 3 : i32
    %4 = vector.broadcast %c3_i32 : i32 to vector<1x128xi32>
    %5 = arith.shrsi %1, %4 : vector<1x128xi32>
    %c7_i32_1 = arith.constant 7 : i32
    %6 = vector.broadcast %c7_i32_1 : i32 to vector<1x128xi32>
    %7 = arith.andi %5, %6 : vector<1x128xi32>
    %8 = vector.extract_strided_slice %0 {offsets = [0, 119], sizes = [32, 9], strides = [1, 1]} : vector<32x128xbf16> to vector<32x9xbf16>
    %9 = vector.extract_strided_slice %0 {offsets = [0, 0], sizes = [32, 119], strides = [1, 1]} : vector<32x128xbf16> to vector<32x119xbf16>
    %10 = tpu.concatenate %8, %9 in 1 : vector<32x9xbf16>, vector<32x119xbf16> -> vector<32x128xbf16>
    %c1_i32 = arith.constant 1 : i32
    %11 = vector.broadcast %c1_i32 : i32 to vector<1x128xi32>
    %12 = arith.cmpi sge, %7, %11 : vector<1x128xi32>
    %c1_i32_2 = arith.constant 1 : i32
    %13 = vector.broadcast %c1_i32_2 : i32 to vector<1x128xi32>
    %14 = arith.cmpi sge, %3, %13 : vector<1x128xi32>
    %15 = arith.andi %12, %14 : vector<1x128xi1>
    %cst = arith.constant 0.000000e+00 : bf16
    %16 = vector.broadcast %cst : bf16 to vector<32x128xbf16>
    %17 = vector.shape_cast %15 : vector<1x128xi1> to vector<1x128xi1>
    %18 = vector.broadcast %17 : vector<1x128xi1> to vector<32x128xi1>
    %19 = arith.select %18, %10, %16 : vector<32x128xi1>, vector<32x128xbf16>
    %20 = vector.extract_strided_slice %0 {offsets = [0, 120], sizes = [32, 8], strides = [1, 1]} : vector<32x128xbf16> to vector<32x8xbf16>
    %21 = vector.extract_strided_slice %0 {offsets = [0, 0], sizes = [32, 120], strides = [1, 1]} : vector<32x128xbf16> to vector<32x120xbf16>
    %22 = tpu.concatenate %20, %21 in 1 : vector<32x8xbf16>, vector<32x120xbf16> -> vector<32x128xbf16>
    %c1_i32_3 = arith.constant 1 : i32
    %23 = vector.broadcast %c1_i32_3 : i32 to vector<1x128xi32>
    %24 = arith.cmpi sge, %7, %23 : vector<1x128xi32>
    %cst_4 = arith.constant 0.000000e+00 : bf16
    %25 = vector.broadcast %cst_4 : bf16 to vector<32x128xbf16>
    %26 = vector.shape_cast %24 : vector<1x128xi1> to vector<1x128xi1>
    %27 = vector.broadcast %26 : vector<1x128xi1> to vector<32x128xi1>
    %28 = arith.select %27, %22, %25 : vector<32x128xi1>, vector<32x128xbf16>
    %29 = vector.extract_strided_slice %0 {offsets = [0, 121], sizes = [32, 7], strides = [1, 1]} : vector<32x128xbf16> to vector<32x7xbf16>
    %30 = vector.extract_strided_slice %0 {offsets = [0, 0], sizes = [32, 121], strides = [1, 1]} : vector<32x128xbf16> to vector<32x121xbf16>
    %31 = tpu.concatenate %29, %30 in 1 : vector<32x7xbf16>, vector<32x121xbf16> -> vector<32x128xbf16>
    %c1_i32_5 = arith.constant 1 : i32
    %32 = vector.broadcast %c1_i32_5 : i32 to vector<1x128xi32>
    %33 = arith.cmpi sge, %7, %32 : vector<1x128xi32>
    %c7_i32_6 = arith.constant 7 : i32
    %34 = vector.broadcast %c7_i32_6 : i32 to vector<1x128xi32>
    %35 = arith.cmpi slt, %3, %34 : vector<1x128xi32>
    %36 = arith.andi %33, %35 : vector<1x128xi1>
    %cst_7 = arith.constant 0.000000e+00 : bf16
    %37 = vector.broadcast %cst_7 : bf16 to vector<32x128xbf16>
    %38 = vector.shape_cast %36 : vector<1x128xi1> to vector<1x128xi1>
    %39 = vector.broadcast %38 : vector<1x128xi1> to vector<32x128xi1>
    %40 = arith.select %39, %31, %37 : vector<32x128xi1>, vector<32x128xbf16>
    %41 = vector.extract_strided_slice %0 {offsets = [0, 127], sizes = [32, 1], strides = [1, 1]} : vector<32x128xbf16> to vector<32x1xbf16>
    %42 = vector.extract_strided_slice %0 {offsets = [0, 0], sizes = [32, 127], strides = [1, 1]} : vector<32x128xbf16> to vector<32x127xbf16>
    %43 = tpu.concatenate %41, %42 in 1 : vector<32x1xbf16>, vector<32x127xbf16> -> vector<32x128xbf16>
    %c1_i32_8 = arith.constant 1 : i32
    %44 = vector.broadcast %c1_i32_8 : i32 to vector<1x128xi32>
    %45 = arith.cmpi sge, %3, %44 : vector<1x128xi32>
    %cst_9 = arith.constant 0.000000e+00 : bf16
    %46 = vector.broadcast %cst_9 : bf16 to vector<32x128xbf16>
    %47 = vector.shape_cast %45 : vector<1x128xi1> to vector<1x128xi1>
    %48 = vector.broadcast %47 : vector<1x128xi1> to vector<32x128xi1>
    %49 = arith.select %48, %43, %46 : vector<32x128xi1>, vector<32x128xbf16>
    %50 = vector.extract_strided_slice %0 {offsets = [0, 1], sizes = [32, 127], strides = [1, 1]} : vector<32x128xbf16> to vector<32x127xbf16>
    %51 = vector.extract_strided_slice %0 {offsets = [0, 0], sizes = [32, 1], strides = [1, 1]} : vector<32x128xbf16> to vector<32x1xbf16>
    %52 = tpu.concatenate %50, %51 in 1 : vector<32x127xbf16>, vector<32x1xbf16> -> vector<32x128xbf16>
    %c7_i32_10 = arith.constant 7 : i32
    %53 = vector.broadcast %c7_i32_10 : i32 to vector<1x128xi32>
    %54 = arith.cmpi slt, %3, %53 : vector<1x128xi32>
    %cst_11 = arith.constant 0.000000e+00 : bf16
    %55 = vector.broadcast %cst_11 : bf16 to vector<32x128xbf16>
    %56 = vector.shape_cast %54 : vector<1x128xi1> to vector<1x128xi1>
    %57 = vector.broadcast %56 : vector<1x128xi1> to vector<32x128xi1>
    %58 = arith.select %57, %52, %55 : vector<32x128xi1>, vector<32x128xbf16>
    %59 = vector.extract_strided_slice %0 {offsets = [0, 7], sizes = [32, 121], strides = [1, 1]} : vector<32x128xbf16> to vector<32x121xbf16>
    %60 = vector.extract_strided_slice %0 {offsets = [0, 0], sizes = [32, 7], strides = [1, 1]} : vector<32x128xbf16> to vector<32x7xbf16>
    %61 = tpu.concatenate %59, %60 in 1 : vector<32x121xbf16>, vector<32x7xbf16> -> vector<32x128xbf16>
    %c7_i32_12 = arith.constant 7 : i32
    %62 = vector.broadcast %c7_i32_12 : i32 to vector<1x128xi32>
    %63 = arith.cmpi slt, %7, %62 : vector<1x128xi32>
    %c1_i32_13 = arith.constant 1 : i32
    %64 = vector.broadcast %c1_i32_13 : i32 to vector<1x128xi32>
    %65 = arith.cmpi sge, %3, %64 : vector<1x128xi32>
    %66 = arith.andi %63, %65 : vector<1x128xi1>
    %cst_14 = arith.constant 0.000000e+00 : bf16
    %67 = vector.broadcast %cst_14 : bf16 to vector<32x128xbf16>
    %68 = vector.shape_cast %66 : vector<1x128xi1> to vector<1x128xi1>
    %69 = vector.broadcast %68 : vector<1x128xi1> to vector<32x128xi1>
    %70 = arith.select %69, %61, %67 : vector<32x128xi1>, vector<32x128xbf16>
    %71 = vector.extract_strided_slice %0 {offsets = [0, 8], sizes = [32, 120], strides = [1, 1]} : vector<32x128xbf16> to vector<32x120xbf16>
    %72 = vector.extract_strided_slice %0 {offsets = [0, 0], sizes = [32, 8], strides = [1, 1]} : vector<32x128xbf16> to vector<32x8xbf16>
    %73 = tpu.concatenate %71, %72 in 1 : vector<32x120xbf16>, vector<32x8xbf16> -> vector<32x128xbf16>
    %c7_i32_15 = arith.constant 7 : i32
    %74 = vector.broadcast %c7_i32_15 : i32 to vector<1x128xi32>
    %75 = arith.cmpi slt, %7, %74 : vector<1x128xi32>
    %cst_16 = arith.constant 0.000000e+00 : bf16
    %76 = vector.broadcast %cst_16 : bf16 to vector<32x128xbf16>
    %77 = vector.shape_cast %75 : vector<1x128xi1> to vector<1x128xi1>
    %78 = vector.broadcast %77 : vector<1x128xi1> to vector<32x128xi1>
    %79 = arith.select %78, %73, %76 : vector<32x128xi1>, vector<32x128xbf16>
    %80 = vector.extract_strided_slice %0 {offsets = [0, 9], sizes = [32, 119], strides = [1, 1]} : vector<32x128xbf16> to vector<32x119xbf16>
    %81 = vector.extract_strided_slice %0 {offsets = [0, 0], sizes = [32, 9], strides = [1, 1]} : vector<32x128xbf16> to vector<32x9xbf16>
    %82 = tpu.concatenate %80, %81 in 1 : vector<32x119xbf16>, vector<32x9xbf16> -> vector<32x128xbf16>
    %c7_i32_17 = arith.constant 7 : i32
    %83 = vector.broadcast %c7_i32_17 : i32 to vector<1x128xi32>
    %84 = arith.cmpi slt, %7, %83 : vector<1x128xi32>
    %c7_i32_18 = arith.constant 7 : i32
    %85 = vector.broadcast %c7_i32_18 : i32 to vector<1x128xi32>
    %86 = arith.cmpi slt, %3, %85 : vector<1x128xi32>
    %87 = arith.andi %84, %86 : vector<1x128xi1>
    %cst_19 = arith.constant 0.000000e+00 : bf16
    %88 = vector.broadcast %cst_19 : bf16 to vector<32x128xbf16>
    %89 = vector.shape_cast %87 : vector<1x128xi1> to vector<1x128xi1>
    %90 = vector.broadcast %89 : vector<1x128xi1> to vector<32x128xi1>
    %91 = arith.select %90, %82, %88 : vector<32x128xi1>, vector<32x128xbf16>
    %92 = tpu.concatenate %19, %28, %40, %49, %0, %58, %70, %79, %91 in 0 : vector<32x128xbf16>, vector<32x128xbf16>, vector<32x128xbf16>, vector<32x128xbf16>, vector<32x128xbf16>, vector<32x128xbf16>, vector<32x128xbf16>, vector<32x128xbf16>, vector<32x128xbf16> -> vector<288x128xbf16>
    %c0_20 = arith.constant 0 : index
    %c0_21 = arith.constant 0 : index
    %93 = vector.load %arg2[%c0_20, %c0_21] : memref<64x288xbf16, #tpu.memory_space<vmem>>, vector<64x288xbf16>
    %cst_22 = arith.constant dense<0.000000e+00> : vector<64x128xf32>
    %94 = tpu.matmul %93, %92, %cst_22 {dimension_numbers = #tpu.dot_dimension_numbers<[1], [0], [0], [1], [0, 0, 1, 1], [], []>} : vector<64x288xbf16>, vector<288x128xbf16>, vector<64x128xf32> -> vector<64x128xf32>
    %c0_23 = arith.constant 0 : index
    %c0_24 = arith.constant 0 : index
    %95 = vector.load %arg3[%c0_23, %c0_24] : memref<64x1xf32, #tpu.memory_space<vmem>>, vector<64x1xf32>
    %96 = vector.broadcast %95 : vector<64x1xf32> to vector<64x128xf32>
    %97 = arith.addf %94, %96 : vector<64x128xf32>
    %cst_25 = arith.constant 0.000000e+00 : f32
    %98 = vector.broadcast %cst_25 : f32 to vector<64x128xf32>
    %99 = arith.maximumf %97, %98 : vector<64x128xf32>
    %100 = arith.truncf %99 : vector<64x128xf32> to vector<64x128xbf16>
    %c0_26 = arith.constant 0 : index
    %c0_27 = arith.constant 0 : index
    %101 = vector.load %arg4[%c0_26, %c0_27] : memref<64x128xbf16, #tpu.memory_space<vmem>>, vector<64x128xbf16>
    tpu.vector_store %arg4[%c0_26, %c0_27], %100 {strides = array<i32>} : memref<64x128xbf16, #tpu.memory_space<vmem>>, vector<64x128xbf16>,
    return
  }
  func.func @transform_0(%arg0: i32) -> (i32, i32) {
    %c0_i32 = arith.constant 0 : i32
    %c0_i32_0 = arith.constant 0 : i32
    return %c0_i32, %arg0 : i32, i32
  }
  func.func @transform_1(%arg0: i32) -> (i32, i32) {
    %c0_i32 = arith.constant 0 : i32
    %c0_i32_0 = arith.constant 0 : i32
    %c0_i32_1 = arith.constant 0 : i32
    return %c0_i32, %c0_i32_0 : i32, i32
  }
  func.func @transform_2(%arg0: i32) -> (i32, i32) {
    %c0_i32 = arith.constant 0 : i32
    %c0_i32_0 = arith.constant 0 : i32
    %c0_i32_1 = arith.constant 0 : i32
    return %c0_i32, %c0_i32_0 : i32, i32
  }
  func.func @transform_3(%arg0: i32) -> (i32, i32) {
    %c0_i32 = arith.constant 0 : i32
    %c0_i32_0 = arith.constant 0 : i32
    return %c0_i32, %arg0 : i32, i32
  }
}

module attributes {stable_mosaic.version = 11 : i64} {
  func.func @_deconv_kernel(%arg0: i32, %arg1: memref<16x512xbf16, #tpu.memory_space<vmem>>, %arg2: memref<8x144xbf16, #tpu.memory_space<vmem>>, %arg3: memref<8x1xf32, #tpu.memory_space<vmem>>, %arg4: memref<8x512xf32, #tpu.memory_space<vmem>>) attributes {dimension_semantics = [#tpu.dimension_semantics<parallel>], iteration_bounds = array<i64: 1>, scalar_prefetch = 0 : i64, scratch_operands = 0 : i64, tpu.core_type = #tpu.core_type<tc>, window_params = [{transform_indices = @transform_0, window_bounds = array<i64: 16, 512>}, {pipeline_mode = #tpu.pipeline_mode<synchronous>, transform_indices = @transform_1, window_bounds = array<i64: 8, 144>}, {pipeline_mode = #tpu.pipeline_mode<synchronous>, transform_indices = @transform_2, window_bounds = array<i64: 8, 1>}, {transform_indices = @transform_3, window_bounds = array<i64: 8, 512>}]} {
    %c0 = arith.constant 0 : index
    %c0_0 = arith.constant 0 : index
    %0 = vector.load %arg1[%c0, %c0_0] : memref<16x512xbf16, #tpu.memory_space<vmem>>, vector<16x512xbf16>
    %1 = tpu.iota {dimensions = array<i32: 1>} : vector<1x512xi32>
    %c15_i32 = arith.constant 15 : i32
    %2 = vector.broadcast %c15_i32 : i32 to vector<1x512xi32>
    %3 = arith.andi %1, %2 : vector<1x512xi32>
    %c4_i32 = arith.constant 4 : i32
    %4 = vector.broadcast %c4_i32 : i32 to vector<1x512xi32>
    %5 = arith.shrsi %1, %4 : vector<1x512xi32>
    %c15_i32_1 = arith.constant 15 : i32
    %6 = vector.broadcast %c15_i32_1 : i32 to vector<1x512xi32>
    %7 = arith.andi %5, %6 : vector<1x512xi32>
    %8 = vector.extract_strided_slice %0 {offsets = [0, 495], sizes = [16, 17], strides = [1, 1]} : vector<16x512xbf16> to vector<16x17xbf16>
    %9 = vector.extract_strided_slice %0 {offsets = [0, 0], sizes = [16, 495], strides = [1, 1]} : vector<16x512xbf16> to vector<16x495xbf16>
    %10 = tpu.concatenate %8, %9 in 1 : vector<16x17xbf16>, vector<16x495xbf16> -> vector<16x512xbf16>
    %c1_i32 = arith.constant 1 : i32
    %11 = vector.broadcast %c1_i32 : i32 to vector<1x512xi32>
    %12 = arith.cmpi sge, %7, %11 : vector<1x512xi32>
    %c1_i32_2 = arith.constant 1 : i32
    %13 = vector.broadcast %c1_i32_2 : i32 to vector<1x512xi32>
    %14 = arith.cmpi sge, %3, %13 : vector<1x512xi32>
    %15 = arith.andi %12, %14 : vector<1x512xi1>
    %cst = arith.constant 0.000000e+00 : bf16
    %16 = vector.broadcast %cst : bf16 to vector<16x512xbf16>
    %17 = vector.shape_cast %15 : vector<1x512xi1> to vector<1x512xi1>
    %18 = vector.broadcast %17 : vector<1x512xi1> to vector<16x512xi1>
    %19 = arith.select %18, %10, %16 : vector<16x512xi1>, vector<16x512xbf16>
    %20 = vector.extract_strided_slice %0 {offsets = [0, 496], sizes = [16, 16], strides = [1, 1]} : vector<16x512xbf16> to vector<16x16xbf16>
    %21 = vector.extract_strided_slice %0 {offsets = [0, 0], sizes = [16, 496], strides = [1, 1]} : vector<16x512xbf16> to vector<16x496xbf16>
    %22 = tpu.concatenate %20, %21 in 1 : vector<16x16xbf16>, vector<16x496xbf16> -> vector<16x512xbf16>
    %c1_i32_3 = arith.constant 1 : i32
    %23 = vector.broadcast %c1_i32_3 : i32 to vector<1x512xi32>
    %24 = arith.cmpi sge, %7, %23 : vector<1x512xi32>
    %cst_4 = arith.constant 0.000000e+00 : bf16
    %25 = vector.broadcast %cst_4 : bf16 to vector<16x512xbf16>
    %26 = vector.shape_cast %24 : vector<1x512xi1> to vector<1x512xi1>
    %27 = vector.broadcast %26 : vector<1x512xi1> to vector<16x512xi1>
    %28 = arith.select %27, %22, %25 : vector<16x512xi1>, vector<16x512xbf16>
    %29 = vector.extract_strided_slice %0 {offsets = [0, 497], sizes = [16, 15], strides = [1, 1]} : vector<16x512xbf16> to vector<16x15xbf16>
    %30 = vector.extract_strided_slice %0 {offsets = [0, 0], sizes = [16, 497], strides = [1, 1]} : vector<16x512xbf16> to vector<16x497xbf16>
    %31 = tpu.concatenate %29, %30 in 1 : vector<16x15xbf16>, vector<16x497xbf16> -> vector<16x512xbf16>
    %c1_i32_5 = arith.constant 1 : i32
    %32 = vector.broadcast %c1_i32_5 : i32 to vector<1x512xi32>
    %33 = arith.cmpi sge, %7, %32 : vector<1x512xi32>
    %c15_i32_6 = arith.constant 15 : i32
    %34 = vector.broadcast %c15_i32_6 : i32 to vector<1x512xi32>
    %35 = arith.cmpi slt, %3, %34 : vector<1x512xi32>
    %36 = arith.andi %33, %35 : vector<1x512xi1>
    %cst_7 = arith.constant 0.000000e+00 : bf16
    %37 = vector.broadcast %cst_7 : bf16 to vector<16x512xbf16>
    %38 = vector.shape_cast %36 : vector<1x512xi1> to vector<1x512xi1>
    %39 = vector.broadcast %38 : vector<1x512xi1> to vector<16x512xi1>
    %40 = arith.select %39, %31, %37 : vector<16x512xi1>, vector<16x512xbf16>
    %41 = vector.extract_strided_slice %0 {offsets = [0, 511], sizes = [16, 1], strides = [1, 1]} : vector<16x512xbf16> to vector<16x1xbf16>
    %42 = vector.extract_strided_slice %0 {offsets = [0, 0], sizes = [16, 511], strides = [1, 1]} : vector<16x512xbf16> to vector<16x511xbf16>
    %43 = tpu.concatenate %41, %42 in 1 : vector<16x1xbf16>, vector<16x511xbf16> -> vector<16x512xbf16>
    %c1_i32_8 = arith.constant 1 : i32
    %44 = vector.broadcast %c1_i32_8 : i32 to vector<1x512xi32>
    %45 = arith.cmpi sge, %3, %44 : vector<1x512xi32>
    %cst_9 = arith.constant 0.000000e+00 : bf16
    %46 = vector.broadcast %cst_9 : bf16 to vector<16x512xbf16>
    %47 = vector.shape_cast %45 : vector<1x512xi1> to vector<1x512xi1>
    %48 = vector.broadcast %47 : vector<1x512xi1> to vector<16x512xi1>
    %49 = arith.select %48, %43, %46 : vector<16x512xi1>, vector<16x512xbf16>
    %50 = vector.extract_strided_slice %0 {offsets = [0, 1], sizes = [16, 511], strides = [1, 1]} : vector<16x512xbf16> to vector<16x511xbf16>
    %51 = vector.extract_strided_slice %0 {offsets = [0, 0], sizes = [16, 1], strides = [1, 1]} : vector<16x512xbf16> to vector<16x1xbf16>
    %52 = tpu.concatenate %50, %51 in 1 : vector<16x511xbf16>, vector<16x1xbf16> -> vector<16x512xbf16>
    %c15_i32_10 = arith.constant 15 : i32
    %53 = vector.broadcast %c15_i32_10 : i32 to vector<1x512xi32>
    %54 = arith.cmpi slt, %3, %53 : vector<1x512xi32>
    %cst_11 = arith.constant 0.000000e+00 : bf16
    %55 = vector.broadcast %cst_11 : bf16 to vector<16x512xbf16>
    %56 = vector.shape_cast %54 : vector<1x512xi1> to vector<1x512xi1>
    %57 = vector.broadcast %56 : vector<1x512xi1> to vector<16x512xi1>
    %58 = arith.select %57, %52, %55 : vector<16x512xi1>, vector<16x512xbf16>
    %59 = vector.extract_strided_slice %0 {offsets = [0, 15], sizes = [16, 497], strides = [1, 1]} : vector<16x512xbf16> to vector<16x497xbf16>
    %60 = vector.extract_strided_slice %0 {offsets = [0, 0], sizes = [16, 15], strides = [1, 1]} : vector<16x512xbf16> to vector<16x15xbf16>
    %61 = tpu.concatenate %59, %60 in 1 : vector<16x497xbf16>, vector<16x15xbf16> -> vector<16x512xbf16>
    %c15_i32_12 = arith.constant 15 : i32
    %62 = vector.broadcast %c15_i32_12 : i32 to vector<1x512xi32>
    %63 = arith.cmpi slt, %7, %62 : vector<1x512xi32>
    %c1_i32_13 = arith.constant 1 : i32
    %64 = vector.broadcast %c1_i32_13 : i32 to vector<1x512xi32>
    %65 = arith.cmpi sge, %3, %64 : vector<1x512xi32>
    %66 = arith.andi %63, %65 : vector<1x512xi1>
    %cst_14 = arith.constant 0.000000e+00 : bf16
    %67 = vector.broadcast %cst_14 : bf16 to vector<16x512xbf16>
    %68 = vector.shape_cast %66 : vector<1x512xi1> to vector<1x512xi1>
    %69 = vector.broadcast %68 : vector<1x512xi1> to vector<16x512xi1>
    %70 = arith.select %69, %61, %67 : vector<16x512xi1>, vector<16x512xbf16>
    %71 = vector.extract_strided_slice %0 {offsets = [0, 16], sizes = [16, 496], strides = [1, 1]} : vector<16x512xbf16> to vector<16x496xbf16>
    %72 = vector.extract_strided_slice %0 {offsets = [0, 0], sizes = [16, 16], strides = [1, 1]} : vector<16x512xbf16> to vector<16x16xbf16>
    %73 = tpu.concatenate %71, %72 in 1 : vector<16x496xbf16>, vector<16x16xbf16> -> vector<16x512xbf16>
    %c15_i32_15 = arith.constant 15 : i32
    %74 = vector.broadcast %c15_i32_15 : i32 to vector<1x512xi32>
    %75 = arith.cmpi slt, %7, %74 : vector<1x512xi32>
    %cst_16 = arith.constant 0.000000e+00 : bf16
    %76 = vector.broadcast %cst_16 : bf16 to vector<16x512xbf16>
    %77 = vector.shape_cast %75 : vector<1x512xi1> to vector<1x512xi1>
    %78 = vector.broadcast %77 : vector<1x512xi1> to vector<16x512xi1>
    %79 = arith.select %78, %73, %76 : vector<16x512xi1>, vector<16x512xbf16>
    %80 = vector.extract_strided_slice %0 {offsets = [0, 17], sizes = [16, 495], strides = [1, 1]} : vector<16x512xbf16> to vector<16x495xbf16>
    %81 = vector.extract_strided_slice %0 {offsets = [0, 0], sizes = [16, 17], strides = [1, 1]} : vector<16x512xbf16> to vector<16x17xbf16>
    %82 = tpu.concatenate %80, %81 in 1 : vector<16x495xbf16>, vector<16x17xbf16> -> vector<16x512xbf16>
    %c15_i32_17 = arith.constant 15 : i32
    %83 = vector.broadcast %c15_i32_17 : i32 to vector<1x512xi32>
    %84 = arith.cmpi slt, %7, %83 : vector<1x512xi32>
    %c15_i32_18 = arith.constant 15 : i32
    %85 = vector.broadcast %c15_i32_18 : i32 to vector<1x512xi32>
    %86 = arith.cmpi slt, %3, %85 : vector<1x512xi32>
    %87 = arith.andi %84, %86 : vector<1x512xi1>
    %cst_19 = arith.constant 0.000000e+00 : bf16
    %88 = vector.broadcast %cst_19 : bf16 to vector<16x512xbf16>
    %89 = vector.shape_cast %87 : vector<1x512xi1> to vector<1x512xi1>
    %90 = vector.broadcast %89 : vector<1x512xi1> to vector<16x512xi1>
    %91 = arith.select %90, %82, %88 : vector<16x512xi1>, vector<16x512xbf16>
    %92 = tpu.concatenate %19, %28, %40, %49, %0, %58, %70, %79, %91 in 0 : vector<16x512xbf16>, vector<16x512xbf16>, vector<16x512xbf16>, vector<16x512xbf16>, vector<16x512xbf16>, vector<16x512xbf16>, vector<16x512xbf16>, vector<16x512xbf16>, vector<16x512xbf16> -> vector<144x512xbf16>
    %c0_20 = arith.constant 0 : index
    %c0_21 = arith.constant 0 : index
    %93 = vector.load %arg2[%c0_20, %c0_21] : memref<8x144xbf16, #tpu.memory_space<vmem>>, vector<8x144xbf16>
    %cst_22 = arith.constant dense<0.000000e+00> : vector<8x512xf32>
    %94 = tpu.matmul %93, %92, %cst_22 {dimension_numbers = #tpu.dot_dimension_numbers<[1], [0], [0], [1], [0, 0, 1, 1], [], []>} : vector<8x144xbf16>, vector<144x512xbf16>, vector<8x512xf32> -> vector<8x512xf32>
    %c0_23 = arith.constant 0 : index
    %c0_24 = arith.constant 0 : index
    %95 = vector.load %arg3[%c0_23, %c0_24] : memref<8x1xf32, #tpu.memory_space<vmem>>, vector<8x1xf32>
    %96 = vector.broadcast %95 : vector<8x1xf32> to vector<8x512xf32>
    %97 = arith.addf %94, %96 : vector<8x512xf32>
    %cst_25 = arith.constant 0.000000e+00 : f32
    %98 = vector.broadcast %cst_25 : f32 to vector<8x512xf32>
    %99 = arith.subf %98, %97 : vector<8x512xf32>
    %100 = math.exp %99 : vector<8x512xf32>
    %cst_26 = arith.constant 1.000000e+00 : f32
    %101 = vector.broadcast %cst_26 : f32 to vector<8x512xf32>
    %102 = arith.addf %101, %100 : vector<8x512xf32>
    %cst_27 = arith.constant 1.000000e+00 : f32
    %103 = vector.broadcast %cst_27 : f32 to vector<8x512xf32>
    %104 = arith.divf %103, %102 : vector<8x512xf32>
    %c0_28 = arith.constant 0 : index
    %c0_29 = arith.constant 0 : index
    %105 = vector.load %arg4[%c0_28, %c0_29] : memref<8x512xf32, #tpu.memory_space<vmem>>, vector<8x512xf32>
    tpu.vector_store %arg4[%c0_28, %c0_29], %104 {strides = array<i32>} : memref<8x512xf32, #tpu.memory_space<vmem>>, vector<8x512xf32>,
    return
  }
  func.func @transform_0(%arg0: i32) -> (i32, i32) {
    %c0_i32 = arith.constant 0 : i32
    %c0_i32_0 = arith.constant 0 : i32
    return %c0_i32, %arg0 : i32, i32
  }
  func.func @transform_1(%arg0: i32) -> (i32, i32) {
    %c0_i32 = arith.constant 0 : i32
    %c0_i32_0 = arith.constant 0 : i32
    %c0_i32_1 = arith.constant 0 : i32
    return %c0_i32, %c0_i32_0 : i32, i32
  }
  func.func @transform_2(%arg0: i32) -> (i32, i32) {
    %c0_i32 = arith.constant 0 : i32
    %c0_i32_0 = arith.constant 0 : i32
    %c0_i32_1 = arith.constant 0 : i32
    return %c0_i32, %c0_i32_0 : i32, i32
  }
  func.func @transform_3(%arg0: i32) -> (i32, i32) {
    %c0_i32 = arith.constant 0 : i32
    %c0_i32_0 = arith.constant 0 : i32
    return %c0_i32, %arg0 : i32, i32
  }
}

</mosaic_0001>

<bundles_post_ra>
// kernel: conv_vae_forward.8
= control target key start
LH: loop header
LB: loop body
LE: loop exit
PB: predicated region body
PF: predicated region fallthrough
CT: control target
= control target key end

     0   :  { %v311_v2 = vmov 0.0   ;;  %s312_s16 = smov 119   ;;  %s313_s17 = smov 120   ;;  %vm320_vm0 = vmmov 0   ;;  %v321_v7 = vmov 0   ;;  %v19_v10 = vlaneseq  ;;  %s451_s0 = inlined_call_operand.vmem [shape: bf16[32,128], index: 0, kind: input, shape index: {}]   ;;  %s452_s1 = inlined_call_operand.vmem [shape: bf16[16,128], index: 1, kind: input, shape index: {}]   ;;  %s453_s2 = inlined_call_operand.vmem [shape: f32[16,1], index: 2, kind: input, shape index: {}]   ;;  %s454_s3 = inlined_call_operand.vmem [shape: bf16[16,128], index: 3, kind: output, shape index: {}]  }
   0x1   :  { %v345_v0 = vld [vmem:[%s451_s0] ss:$0 sps:$4 sm:$0xff]   ;;  %v350_v1 = vld [vmem:[%s451_s0 + $0x4] sm:$0xf]  ;;  %273 = vmatprep.subr.bf16.mxu0 %v311_v2  ;;  %v360_v4 = vld [vmem:[%s451_s0 + $0xc] sm:$0xf]  ;;  %289 = vmatprep.mubr.msk.bf16.mxu0 %vm320_vm0, %v311_v2 }
   0x2   :  { %119 = vrot.lane.b32.xlu0 %v345_v0, %s312_s16  ;;  %106 = vrot.lane.b32.xlu1 %v345_v0, %s313_s17  ;;  %v252_v3 = vcombine.low %v350_v1, %v350_v1  ;;  %s314_s20 = smov 121   ;;  %v365_v5 = vld [vmem:[%s451_s0 + $0x8] ss:$0 sps:$4 sm:$0xff]   ;;  %v250_v6 = vcombine.low %v360_v4, %v360_v4  ;;  %s315_s23 = smov 127   ;;  %v175_v8 = vld [vmem:[%s453_s2] sm:$0xff]  ;;  %v20_v11 = vand.u32 127, %v19_v10 }
   0x3   :  { %s316_s24 = smov 1   ;;  %s317_s25 = smov 7   ;;  %304 = vset.pattern.permute.xlu0 %v321_v7  ;;  %305 = vset.pattern.permute.xlu1 %v321_v7  ;;  %v176_v9 = vld [vmem:[%s453_s2 + $0x8] sm:$0xff]  ;;  %vm140_vm8 = vcmask 1043456   ;;  %v310_v55 = vld [vmem:[%s452_s1] sm:$0xff]  }
   0x4   :  { %s318_s26 = smov 8   ;;  %s319_s0 = smov 9   ;;  %v22_v12 = vshra.s32 %v20_v11, 3  ;;  %v21_v13 = vand.u32 7, %v20_v11 }
   0x6   :  { %114 = vrot.lane.b32.xlu0 %v252_v3, %s313_s17  ;;  %96 = vrot.lane.b32.xlu1 %v252_v3, %s314_s20  ;;  %v23_v14 = vand.u32 7, %v22_v12  ;;  %vm380_vm1 = vcmp.lt.s32.totalorder %v21_v13, 7  ;;  %vm386_vm5 = vcmp.ge.s32.totalorder %v21_v13, 1 }
   0x7   :  { %vm84_vm10 = vmpackc.low %vm380_vm1, %vm380_vm1 }
   0x8   :  { %vm100_vm2 = vcmp.lt.s32.totalorder %v23_v14, 7  ;;  %vm73_vm11 = vmpackc.low %vm386_vm5, %vm386_vm5  ;;  %vm31_vm12 = vcmp.ge.s32.totalorder %v23_v14, 1 }
   0x9   :  { %vm123_vm3 = vmand %vm100_vm2, %vm380_vm1 }
   0xa   :  { %91 = vrot.lane.b32.xlu0 %v365_v5, %s315_s23  ;;  %86 = vrot.lane.b32.xlu1 %v250_v6, %s316_s24  ;;  %vm126_vm4 = vmpackc.low %vm123_vm3, %vm123_vm3 }
   0xb   :  { %vm112_vm6 = vmpackc.low %vm100_vm2, %vm100_vm2 }
   0xc   :  { %vm101_vm7 = vmand %vm100_vm2, %vm386_vm5 }
   0xd   :  { %vm104_vm9 = vmpackc.low %vm101_vm7, %vm101_vm7 }
   0xe   :  { %78 = vrot.lane.b32.xlu0 %v345_v0, %s315_s23  ;;  %67 = vrot.lane.b32.xlu1 %v252_v3, %s316_s24  ;;  %vm59_vm13 = vmand %vm31_vm12, %vm380_vm1 }
   0xf   :  { %vm62_vm14 = vmpackc.low %vm59_vm13, %vm59_vm13 }
  0x10   :  { %vm47_vm15 = vmpackc.low %vm31_vm12, %vm31_vm12 }
  0x11   :  { %vm33_vm0 = vmand %vm31_vm12, %vm386_vm5 }
  0x12   :  { %54 = vrot.lane.b32.xlu0 %v365_v5, %s317_s25  ;;  %49 = vrot.lane.b32.xlu1 %v250_v6, %s318_s26  ;;  %vm36_vm1 = vmpackc.low %vm33_vm0, %vm33_vm0 }
  0x16   :  { %41 = vrot.lane.b32.xlu0 %v365_v5, %s318_s26  ;;  %27 = vrot.lane.b32.xlu1 %v250_v6, %s319_s0 }
  0x1a   :  { %179 = vperm.xlu0 %304, %v175_v8   ;;  %184 = vperm.xlu1 %305, %v176_v9  }
  0x74   :  { %v120_v17 = vpop.permute.xlu0 %119  ;;  %v107_v18 = vpop.permute.xlu1 %106 }
  0x75   :  { %v127_v19 = vsel %vm126_vm4, %v120_v17, 0  ;;  %v113_v20 = vsel %vm112_vm6, %v107_v18, 0 }
  0x76   :  { %v139_v21 = vrot.slane %v127_v19, 4  ;;  %v137_v25 = vrot.slane %v113_v20, 4 }
  0x78   :  { %v115_v22 = vpop.permute.xlu0 %114  ;;  %v97_v23 = vpop.permute.xlu1 %96 }
  0x79   :  { %v118_v24 = vsel %vm112_vm6, %v115_v22, 0  ;;  %v105_v27 = vsel %vm104_vm9, %v97_v23, 0 }
  0x7a   :  { %v171_v26 = vsel %vm140_vm8, %v118_v24, %v139_v21  ;;  %v167_v31 = vsel %vm140_vm8, %v105_v27, %v137_v25 }
  0x7b   :  { %274 = vmatpush3.bf16.msra.mxu0 %v171_v26 }
  0x7c   :  { %275 = vmatprep.subr.bf16.mxu0 %v311_v2  ;;  %v92_v28 = vpop.permute.xlu0 %91  ;;  %v87_v32 = vpop.permute.xlu1 %86 }
  0x7d   :  { %v95_v29 = vsel %vm84_vm10, %v92_v28, 0  ;;  %v90_v35 = vsel %vm73_vm11, %v87_v32, 0 }
  0x7e   :  { %v135_v30 = vrot.slane %v95_v29, 4  ;;  %v159_v39 = vsel %vm140_vm8, %v90_v35, %v365_v5 }
  0x7f   :  { %276 = vmatpush3.bf16.msra.mxu0 %v167_v31 }
  0x80   :  { %277 = vmatprep.subr.bf16.mxu0 %v311_v2  ;;  %v163_v33 = vsel %vm140_vm8, %v360_v4, %v135_v30  ;;  %v79_v34 = vpop.permute.xlu0 %78  ;;  %v68_v37 = vpop.permute.xlu1 %67 }
  0x81   :  { %v85_v36 = vsel %vm84_vm10, %v79_v34, 0  ;;  %v74_v43 = vsel %vm73_vm11, %v68_v37, 0 }
  0x82   :  { %v133_v38 = vrot.slane %v85_v36, 4  ;;  %v151_v47 = vsel %vm140_vm8, %v74_v43, %v345_v0 }
  0x83   :  { %278 = vmatpush3.bf16.msra.mxu0 %v163_v33 }
  0x84   :  { %279 = vmatprep.subr.bf16.mxu0 %v311_v2  ;;  %v55_v40 = vpop.permute.xlu0 %54  ;;  %v155_v41 = vsel %vm140_vm8, %v350_v1, %v133_v38  ;;  %v50_v42 = vpop.permute.xlu1 %49 }
  0x85   :  { %v63_v44 = vsel %vm62_vm14, %v55_v40, 0  ;;  %v53_v48 = vsel %vm47_vm15, %v50_v42, 0 }
  0x86   :  { %v131_v46 = vrot.slane %v63_v44, 4 }
  0x87   :  { %280 = vmatpush3.bf16.msra.mxu0 %v159_v39 }
  0x88   :  { %281 = vmatprep.subr.bf16.mxu0 %v311_v2  ;;  %v42_v45 = vpop.permute.xlu0 %41  ;;  %v28_v50 = vpop.permute.xlu1 %27  ;;  %v147_v52 = vsel %vm140_vm8, %v53_v48, %v131_v46 }
  0x89   :  { %v48_v49 = vsel %vm47_vm15, %v42_v45, 0  ;;  %v37_v53 = vsel %vm36_vm1, %v28_v50, 0 }
  0x8a   :  { %v129_v51 = vrot.slane %v48_v49, 4 }
  0x8b   :  { %282 = vmatpush3.bf16.msra.mxu0 %v155_v41 }
  0x8c   :  { %283 = vmatprep.subr.bf16.mxu0 %v311_v2  ;;  %v143_v54 = vsel %vm140_vm8, %v37_v53, %v129_v51 }
  0x8f   :  { %284 = vmatpush3.bf16.msra.mxu0 %v151_v47 }
  0x90   :  { %285 = vmatprep.subr.bf16.mxu0 %v311_v2 }
  0x93   :  { %286 = vmatpush3.bf16.msra.mxu0 %v147_v52 }
  0x94   :  { %287 = vmatprep.subr.bf16.mxu0 %v311_v2 }
  0x95   :  { %v180_v57 = vpop.permute.xlu0 %179  ;;  %v185_v59 = vpop.permute.xlu1 %184 }
  0x97   :  { %288 = vmatpush3.bf16.msra.mxu0 %v143_v54 }
  0x9a   :  { %290 = vmatmul.mubr.bf16.vlgmr.msra.gmra.mxu0 %v310_v55 }
 0x15a   :  { %v227_v56 = vpop.f32.mrf.mxu0 }
 0x15b   :  { %v228_v60 = vadd.f32 %v227_v56, %v180_v57 }
 0x15c   :  { %v291_v58 = vpop.f32.mrf.mxu0 }
 0x15d   :  { %v234_v0 = vmax.f32 %v228_v60, 0.0 }
 0x15e   :  { %v230_v61 = vpop.f32.mrf.mxu0 }
 0x15f   :  { %v231_v62 = vadd.f32 %v230_v61, %v185_v59 }
 0x160   :  { %v292_v63 = vpop.f32.mrf.mxu0 }
 0x161   :  { %v235_v1 = vmax.f32 %v231_v62, 0.0 }
 0x163   :  { %v262_v3 = vpack.c.bf16 %v235_v1, %v234_v0 }
 0x165   :  { %263 = vst [vmem:[%s454_s3] sm:$0xff] %v262_v3  }

// kernel: conv_vae_forward.7
= control target key start
LH: loop header
LB: loop body
LE: loop exit
PB: predicated region body
PF: predicated region fallthrough
CT: control target
= control target key end

     0   :  { %v18_v0 = vlaneseq  ;;  %v1004_v2 = vmov 1983009808   ;;  %v1005_v4 = vmov 0   ;;  %s1007_s14 = smov 16   ;;  %s1008_s15 = smov 1   ;;  %s1961_s0 = inlined_call_operand.vmem [shape: bf16[4,512], index: 0, kind: input, shape index: {}]   ;;  %s1962_s2 = inlined_call_operand.vmem [shape: f32[8,1], index: 2, kind: input, shape index: {}]   ;;  %s1963_s1 = inlined_call_operand.vmem [shape: bf16[8,16], index: 1, kind: input, shape index: {}]   ;;  %s1964_s3 = inlined_call_operand.vmem [shape: bf16[8,512], index: 3, kind: output, shape index: {}]  }
   0x1   :  { %v17_v1 = vld [vmem:[%s1961_s0] sm:$0xff]  ;;  %v38_v3 = vunpack.c.l.s4 %v1004_v2  ;;  %910 = vmatprep.mubr.bf16.mxu0 %v1005_v4  ;;  %951 = vmatprep.mubr.bf16.mxu1 %v1005_v4  ;;  %s1006_s0 = smov 17   ;;  %s1009_s16 = smov 15  }
   0x2   :  { %v41_v5 = vshrl.u32 %v18_v0, 7  ;;  %v19_v6 = vand.u32 127, %v18_v0  ;;  %1002 = vset.pattern.permute.xlu0 %v1005_v4  ;;  %v36_v8 = vcombine.high %v17_v1, %v17_v1  ;;  %s1010_s17 = smov 127   ;;  %s1011_s18 = smov 113  }
   0x3   :  { %v39_v7 = vunpack.c.0.s8 %v38_v3  ;;  %s1012_s19 = smov 112   ;;  %s1013_s20 = smov 111  }
   0x4   :  { %v20_v9 = vadd.s32 128, %v19_v6  ;;  %v1040_v10 = vadd.s32 256, %v19_v6  ;;  %v1042_v12 = vadd.s32 384, %v19_v6  ;;  %v23_v13 = vand.u32 15, %v19_v6 }
   0x5   :  { %v42_v11 = vsub.s32 %v39_v7, %v41_v5  ;;  %v27_v14 = vshra.s32 %v19_v6, 4  ;;  %v1087_v31 = vsub.s32 0, %v41_v5  ;;  %v1107_v34 = vsub.s32 4, %v41_v5 }
   0x6   :  { %v24_v15 = vand.u32 15, %v20_v9  ;;  %v25_v16 = vand.u32 15, %v1040_v10  ;;  %v28_v17 = vshra.s32 %v20_v9, 4  ;;  %v29_v18 = vshra.s32 %v1040_v10, 4 }
   0x7   :  { %v1046_v19 = vrot.slane %v17_v1, %v42_v11  ;;  %v1048_v20 = vrot.slane %v36_v8, %v42_v11  ;;  %v26_v21 = vand.u32 15, %v1042_v12  ;;  %v30_v22 = vshra.s32 %v1042_v12, 4 }
   0x8   :  { %v1052_v23 = vand.u32 15, %v27_v14  ;;  %v1054_v24 = vand.u32 15, %v28_v17  ;;  %v1056_v25 = vand.u32 15, %v29_v18  ;;  %vm1058_vm0 = vcmp.ge.s32.totalorder %v23_v13, 1 }
   0x9   :  { %55 = vrot.lane.b32.xlu0 %v1046_v19, %s1006_s0  ;;  %59 = vrot.lane.b32.xlu1 %v1048_v20, %s1006_s0  ;;  %v1066_v27 = vcombine.high %v1048_v20, %v1048_v20  ;;  %v1068_v28 = vand.u32 15, %v30_v22  ;;  %vm1070_vm1 = vcmp.ge.s32.totalorder %v24_v15, 1  ;;  %vm1079_vm5 = vcmp.ge.s32.totalorder %v25_v16, 1 }
   0xa   :  { %vm73_vm2 = vcmp.ge.s32.totalorder %v1052_v23, 1  ;;  %vm74_vm3 = vcmp.ge.s32.totalorder %v1054_v24, 1  ;;  %vm75_vm4 = vcmp.ge.s32.totalorder %v1056_v25, 1  ;;  %vm237_vm6 = vmpackc.low %vm1070_vm1, %vm1058_vm0  ;;  %vm1092_vm8 = vcmp.ge.s32.totalorder %v26_v21, 1 }
   0xb   :  { %vm76_vm7 = vcmp.ge.s32.totalorder %v1068_v28, 1  ;;  %vm81_vm9 = vmand %vm73_vm2, %vm1058_vm0  ;;  %v1105_v33 = vsel %vm237_vm6, 65537, %v1005_v4  ;;  %v1113_v35 = vcombine.high %v1046_v19, %v1046_v19  ;;  %vm1150_vm6 = vcmp.lt.s32.totalorder %v23_v13, 15 }
   0xc   :  { %vm82_vm10 = vmand %vm74_vm3, %vm1070_vm1  ;;  %v244_v36 = vrot.slane %v1105_v33, %v1087_v31  ;;  %v248_v37 = vrot.slane %v1105_v33, %v1107_v34  ;;  %v550_v45 = vshll.u32 %v1046_v19, 16  ;;  %v569_v57 = vshrl.u32 %v1046_v19, 16 }
   0xd   :  { %115 = vrot.lane.b32.xlu1 %v1046_v19, %s1007_s14  ;;  %52 = vrot.lane.b32.xlu0 %v1066_v27, %s1006_s0  ;;  %vm83_vm11 = vmand %vm75_vm4, %vm1079_vm5 }
   0xe   :  { %vm84_vm12 = vmand %vm76_vm7, %vm1092_vm8  ;;  %v1532_v29 = vrot.slane %v569_v57, 5 }
   0xf   :  { %vm85_vm13 = vmpackc.low %vm82_vm10, %vm81_vm9  ;;  %vm1162_vm10 = vcmp.lt.s32.totalorder %v24_v15, 15 }
  0x10   :  { %vm86_vm14 = vmpackc.low %vm84_vm12, %vm83_vm11  ;;  %v1128_v38 = vsel %vm85_vm13, 65537, %v1005_v4 }
  0x11   :  { %57 = vrot.lane.b32.xlu1 %v1113_v35, %s1006_s0  ;;  %113 = vrot.lane.b32.xlu0 %v1066_v27, %s1007_s14  ;;  %v1133_v39 = vsel %vm86_vm14, 65537, %v1005_v4  ;;  %v92_v40 = vrot.slane %v1128_v38, %v1087_v31  ;;  %v96_v41 = vrot.slane %v1128_v38, %v1107_v34  ;;  %vm133_vm15 = vmpackc.low %vm74_vm3, %vm73_vm2 }
  0x12   :  { %v104_v42 = vrot.slane %v1133_v39, %v1107_v34  ;;  %v100_v43 = vrot.slane %v1133_v39, %v1087_v31  ;;  %v1148_v44 = vsel %vm133_vm15, 65537, %v1005_v4  ;;  %vm134_vm9 = vmpackc.low %vm76_vm7, %vm75_vm4 }
  0x13   :  { %v140_v46 = vrot.slane %v1148_v44, %v1087_v31  ;;  %v144_v47 = vrot.slane %v1148_v44, %v1107_v34  ;;  %v1167_v49 = vsel %vm134_vm9, 65537, %v1005_v4  ;;  %vm238_vm11 = vmpackc.low %vm1092_vm8, %vm1079_vm5 }
  0x14   :  { %v152_v50 = vrot.slane %v1167_v49, %v1107_v34  ;;  %v148_v51 = vrot.slane %v1167_v49, %v1087_v31  ;;  %vm185_vm12 = vmand %vm73_vm2, %vm1150_vm6  ;;  %v1184_v52 = vsel %vm238_vm11, 65537, %v1005_v4  ;;  %vm1203_vm2 = vcmp.lt.s32.totalorder %v25_v16, 15 }
  0x15   :  { %119 = vrot.lane.b32.xlu1 %v1048_v20, %s1007_s14  ;;  %117 = vrot.lane.b32.xlu0 %v1113_v35, %s1007_s14  ;;  %vm186_vm13 = vmand %vm74_vm3, %vm1162_vm10  ;;  %v256_v53 = vrot.slane %v1184_v52, %v1107_v34  ;;  %v252_v54 = vrot.slane %v1184_v52, %v1087_v31  ;;  %vm1209_vm3 = vcmp.lt.s32.totalorder %v26_v21, 15 }
  0x16   :  { %vm189_vm14 = vmpackc.low %vm186_vm13, %vm185_vm12  ;;  %vm333_vm12 = vcmp.lt.s32.totalorder %v1052_v23, 15  ;;  %vm334_vm13 = vcmp.lt.s32.totalorder %v1054_v24, 15 }
  0x17   :  { %v1195_v55 = vsel %vm189_vm14, 65537, %v1005_v4  ;;  %vm187_vm15 = vmand %vm75_vm4, %vm1203_vm2 }
  0x18   :  { %v196_v56 = vrot.slane %v1195_v55, %v1087_v31  ;;  %v200_v59 = vrot.slane %v1195_v55, %v1107_v34  ;;  %vm188_vm9 = vmand %vm76_vm7, %vm1209_vm3 }
  0x19   :  { %219 = vrot.lane.b32.xlu1 %v1046_v19, %s1008_s15  ;;  %217 = vrot.lane.b32.xlu0 %v1066_v27, %s1008_s15  ;;  %vm190_vm11 = vmpackc.low %vm188_vm9, %vm187_vm15  ;;  %vm335_vm15 = vcmp.lt.s32.totalorder %v1056_v25, 15 }
  0x1a   :  { %v1226_v60 = vsel %vm190_vm11, 65537, %v1005_v4  ;;  %vm285_vm4 = vmpackc.low %vm1162_vm10, %vm1150_vm6  ;;  %vm336_vm11 = vcmp.lt.s32.totalorder %v1068_v28, 15 }
  0x1b   :  { %v208_v61 = vrot.slane %v1226_v60, %v1107_v34  ;;  %v204_v62 = vrot.slane %v1226_v60, %v1087_v31  ;;  %v1237_v63 = vsel %vm285_vm4, 65537, %v1005_v4  ;;  %vm286_vm7 = vmpackc.low %vm1209_vm3, %vm1203_vm2 }
  0x1c   :  { %v292_v0 = vrot.slane %v1237_v63, %v1087_v31  ;;  %v1246_v1 = vsel %vm286_vm7, 65537, %v1005_v4  ;;  %v296_v3 = vrot.slane %v1237_v63, %v1107_v34  ;;  %vm337_vm14 = vmand %vm333_vm12, %vm1058_vm0 }
  0x1d   :  { %223 = vrot.lane.b32.xlu1 %v1048_v20, %s1008_s15  ;;  %221 = vrot.lane.b32.xlu0 %v1113_v35, %s1008_s15  ;;  %v304_v2 = vrot.slane %v1246_v1, %v1107_v34  ;;  %v300_v5 = vrot.slane %v1246_v1, %v1087_v31  ;;  %vm338_vm9 = vmand %vm334_vm13, %vm1070_vm1 }
  0x1e   :  { %vm341_vm4 = vmpackc.low %vm338_vm9, %vm337_vm14 }
  0x1f   :  { %v1271_v6 = vsel %vm341_vm4, 65537, %v1005_v4  ;;  %vm339_vm0 = vmand %vm335_vm15, %vm1079_vm5 }
  0x20   :  { %v348_v7 = vrot.slane %v1271_v6, %v1087_v31  ;;  %vm340_vm1 = vmand %vm336_vm11, %vm1092_vm8  ;;  %v352_v8 = vrot.slane %v1271_v6, %v1107_v34 }
  0x21   :  { %163 = vrot.lane.b32.xlu1 %v1046_v19, %s1009_s16  ;;  %161 = vrot.lane.b32.xlu0 %v1066_v27, %s1009_s16  ;;  %vm342_vm7 = vmpackc.low %vm340_vm1, %vm339_vm0  ;;  %vm694_vm0 = vsmask.f32 256  ;;  %vm1385_vm1 = vcmp.ne.s16.totalorder %v96_v41, 0 }
  0x22   :  { %v1288_v9 = vsel %vm342_vm7, 65537, %v1005_v4  ;;  %vm389_vm5 = vmpackc.low %vm334_vm13, %vm333_vm12  ;;  %vm1392_vm7 = vcmp.ne.s16.totalorder %v100_v43, 0 }
  0x23   :  { %v360_v10 = vrot.slane %v1288_v9, %v1107_v34  ;;  %v356_v11 = vrot.slane %v1288_v9, %v1087_v31  ;;  %v1299_v12 = vsel %vm389_vm5, 65537, %v1005_v4  ;;  %vm390_vm8 = vmpackc.low %vm336_vm11, %vm335_vm15  ;;  %vm1399_vm5 = vcmp.ne.s16.totalorder %v140_v46, 0 }
  0x24   :  { %v1310_v14 = vsel %vm390_vm8, 65537, %v1005_v4  ;;  %vm437_vm14 = vmand %vm333_vm12, %vm1150_vm6  ;;  %vm225_vm8 = vcmask 7168   ;;  %v1426_v46 = vrot.slane %v550_v45, 6 }
  0x25   :  { %167 = vrot.lane.b32.xlu1 %v1048_v20, %s1009_s16  ;;  %165 = vrot.lane.b32.xlu0 %v1113_v35, %s1009_s16  ;;  %vm438_vm9 = vmand %vm334_vm13, %vm1162_vm10  ;;  %vm1965_vm13 = vcmask 130048  }
  0x26   :  { %vm441_vm4 = vmpackc.low %vm438_vm9, %vm437_vm14  ;;  %vm1406_vm14 = vcmp.ne.s16.totalorder %v152_v50, 0  ;;  %vm1413_vm9 = vcmp.ne.s16.totalorder %v144_v47, 0 }
  0x27   :  { %v1329_v18 = vsel %vm441_vm4, 65537, %v1005_v4  ;;  %vm439_vm6 = vmand %vm335_vm15, %vm1203_vm2  ;;  %vm61_vm2 = vcmask 138240   ;;  %vm693_vm15 = vcmask 1040384   ;;  %vm1420_vm4 = vcmp.ne.s16.totalorder %v148_v51, 0 }
  0x28   :  { %vm440_vm10 = vmand %vm336_vm11, %vm1209_vm3  ;;  %vm1366_vm3 = vcmp.ne.s16.totalorder %v92_v40, 0  ;;  %vm1375_vm11 = vcmp.ne.s16.totalorder %v104_v42, 0 }
  0x29   :  { %267 = vrot.lane.b32.xlu1 %v1113_v35, %s1010_s17  ;;  %265 = vrot.lane.b32.xlu0 %v1046_v19, %s1010_s17  ;;  %vm442_vm12 = vmpackc.low %vm440_vm10, %vm439_vm6  ;;  %vm1440_vm6 = vcmp.ne.s16.totalorder %v244_v36, 0  ;;  %v578_v36 = vshrl.u32 %v1066_v27, 16 }
  0x2a   :  { %v1344_v22 = vsel %vm442_vm12, 65537, %v1005_v4  ;;  %v869_v4 = vld [vmem:[%s1962_s2] sm:$0xff]  ;;  %vm1453_vm10 = vmand %vm693_vm15, %vm694_vm0  ;;  %vm1467_vm12 = vcmp.ne.s16.totalorder %v256_v53, 0  ;;  %vm1492_vm0 = vcmp.ne.s16.totalorder %v196_v56, 0 }
  0x2d   :  { %271 = vrot.lane.b32.xlu1 %v1066_v27, %s1010_s17  ;;  %269 = vrot.lane.b32.xlu0 %v1048_v20, %s1010_s17 }
  0x31   :  { %315 = vrot.lane.b32.xlu1 %v1113_v35, %s1011_s18  ;;  %313 = vrot.lane.b32.xlu0 %v1046_v19, %s1011_s18 }
  0x35   :  { %319 = vrot.lane.b32.xlu1 %v1066_v27, %s1011_s18  ;;  %317 = vrot.lane.b32.xlu0 %v1048_v20, %s1011_s18 }
  0x39   :  { %371 = vrot.lane.b32.xlu1 %v1113_v35, %s1012_s19  ;;  %369 = vrot.lane.b32.xlu0 %v1046_v19, %s1012_s19 }
  0x3d   :  { %375 = vrot.lane.b32.xlu1 %v1066_v27, %s1012_s19  ;;  %373 = vrot.lane.b32.xlu0 %v1048_v20, %s1012_s19 }
  0x41   :  { %419 = vrot.lane.b32.xlu1 %v1113_v35, %s1013_s20  ;;  %417 = vrot.lane.b32.xlu0 %v1046_v19, %s1013_s20 }
  0x45   :  { %423 = vrot.lane.b32.xlu1 %v1066_v27, %s1013_s20  ;;  %421 = vrot.lane.b32.xlu0 %v1048_v20, %s1013_s20 }
  0x49   :  { %872 = vperm.xlu0 %1002, %v869_v4  }
  0x7b   :  { %v56_v26 = vpop.permute.xlu0 %55  ;;  %v60_v28 = vpop.permute.xlu1 %59 }
  0x7f   :  { %v116_v30 = vpop.permute.xlu1 %115  ;;  %v53_v32 = vpop.permute.xlu0 %52 }
  0x80   :  { %v71_v48 = vsel %vm61_vm2, %v53_v32, %v56_v26  ;;  %v64_v40 = vsel %vm61_vm2, %v60_v28, %v53_v32 }
  0x81   :  { %v109_v58 = vsel %vm1366_vm3, %v71_v48, 0  ;;  %v112_v50 = vsel %vm1375_vm11, %v64_v40, 0  ;;  %v554_v40 = vshll.u32 %v1113_v35, 16  ;;  %vm1481_vm3 = vcmp.ne.s16.totalorder %v252_v54, 0 }
  0x82   :  { %v470_v48 = vshrl.u32 %v109_v58, 16  ;;  %v558_v58 = vshll.u32 %v1048_v20, 16  ;;  %v482_v4 = vshrl.u32 %v112_v50, 16  ;;  %vm169_vm11 = vcmask 121856  }
  0x83   :  { %v58_v38 = vpop.permute.xlu1 %57  ;;  %v114_v41 = vpop.permute.xlu0 %113 }
  0x84   :  { %v62_v44 = vsel %vm61_vm2, %v56_v26, %v58_v38  ;;  %v63_v47 = vsel %vm61_vm2, %v58_v38, %v60_v28  ;;  %v131_v51 = vsel %vm1965_vm13, %v114_v41, %v116_v30  ;;  %v562_v28 = vshll.u32 %v1066_v27, 16 }
  0x85   :  { %v110_v25 = vsel %vm1385_vm1, %v62_v44, 0  ;;  %v111_v49 = vsel %vm1392_vm7, %v63_v47, 0  ;;  %v157_v26 = vsel %vm1399_vm5, %v131_v51, 0  ;;  %v472_v24 = vrot.slane %v470_v48, 1 }
  0x86   :  { %v474_v42 = vshrl.u32 %v110_v25, 16  ;;  %v490_v38 = vshll.u32 %v157_v26, 16  ;;  %v478_v21 = vshrl.u32 %v111_v49, 16  ;;  %vm1474_vm2 = vcmp.ne.s16.totalorder %v248_v37, 0 }
  0x87   :  { %v120_v44 = vpop.permute.xlu1 %119  ;;  %v118_v47 = vpop.permute.xlu0 %117  ;;  %vm717_vm1 = vcmask 1041408   ;;  %vm718_vm7 = vsmask.f32 1280  ;;  %vm741_vm5 = vcmask 1042432   ;;  %v1593_v49 = vrot.slane %v550_v45, 5 }
  0x88   :  { %v124_v51 = vsel %vm1965_vm13, %v120_v44, %v114_v41  ;;  %v122_v17 = vsel %vm1965_vm13, %v116_v30, %v118_v47  ;;  %v492_v16 = vrot.slane %v490_v38, 1  ;;  %v123_v50 = vsel %vm1965_vm13, %v118_v47, %v120_v44 }
  0x89   :  { %v160_v25 = vsel %vm1406_vm14, %v124_v51, 0  ;;  %v158_v48 = vsel %vm1413_vm9, %v122_v17, 0  ;;  %v509_v17 = vshrl.u32 %v157_v26, 16  ;;  %v159_v32 = vsel %vm1420_vm4, %v123_v50, 0 }
  0x8a   :  { %v502_v53 = vshll.u32 %v160_v25, 16  ;;  %v494_v39 = vshll.u32 %v158_v48, 16  ;;  %v484_v38 = vrot.slane %v482_v4, 1  ;;  %v476_v33 = vrot.slane %v474_v42, 1 }
  0x8b   :  { %v696_v37 = vsel %vm1453_vm10, %v472_v24, %v492_v16  ;;  %v498_v44 = vshll.u32 %v159_v32, 16  ;;  %v220_v47 = vpop.permute.xlu1 %219  ;;  %v218_v51 = vpop.permute.xlu0 %217  ;;  %v480_v54 = vrot.slane %v478_v21, 1  ;;  %v515_v42 = vshrl.u32 %v160_v25, 16 }
  0x8c   :  { %v1497_v43 = vsel %vm693_vm15, %v696_v37, %v509_v17  ;;  %v504_v26 = vrot.slane %v502_v53, 1  ;;  %v496_v4 = vrot.slane %v494_v39, 1  ;;  %v511_v24 = vshrl.u32 %v158_v48, 16 }
  0x8d   :  { %v500_v16 = vrot.slane %v498_v44, 1  ;;  %v235_v50 = vsel %vm225_vm8, %v218_v51, %v220_v47  ;;  %vm742_vm14 = vsmask.f32 2304  ;;  %v513_v15 = vshrl.u32 %v159_v32, 16 }
  0x8e   :  { %v699_v56 = vsel %vm1453_vm10, %v484_v38, %v504_v26  ;;  %v697_v13 = vsel %vm1453_vm10, %v476_v33, %v496_v4  ;;  %vm1507_vm9 = vcmp.ne.s16.totalorder %v200_v59, 0  ;;  %v572_v25 = vshrl.u32 %v1113_v35, 16 }
  0x8f   :  { %v1513_v48 = vsel %vm693_vm15, %v699_v56, %v515_v42  ;;  %v698_v17 = vsel %vm1453_vm10, %v480_v54, %v500_v16  ;;  %v1518_v53 = vsel %vm693_vm15, %v697_v13, %v511_v24  ;;  %v224_v32 = vpop.permute.xlu1 %223  ;;  %v222_v39 = vpop.permute.xlu0 %221  ;;  %v575_v38 = vshrl.u32 %v1048_v20, 16 }
  0x90   :  { %v1522_v55 = vsel %vm693_vm15, %v698_v17, %v513_v15  ;;  %v261_v59 = vsel %vm1440_vm6, %v235_v50, 0  ;;  %v1528_v33 = vrot.slane %v562_v28, 6  ;;  %v228_v13 = vsel %vm225_vm8, %v224_v32, %v218_v51 }
  0x91   :  { %v226_v37 = vsel %vm225_vm8, %v220_v47, %v222_v39  ;;  %v227_v44 = vsel %vm225_vm8, %v222_v39, %v224_v32  ;;  %v1539_v15 = vrot.slane %v554_v40, 6  ;;  %vm1544_vm15 = vcmp.ne.s16.totalorder %v208_v61, 0 }
  0x92   :  { %vm1551_vm4 = vcmp.ne.s16.totalorder %v204_v62, 0  ;;  %v1557_v47 = vrot.slane %v558_v58, 6  ;;  %vm273_vm8 = vcmask 1039360   ;;  %v1561_v54 = vrot.slane %v578_v36, 5 }
  0x93   :  { %v1563_v61 = vshrl.u32 %v261_v59, 16  ;;  %v164_v26 = vpop.permute.xlu1 %163  ;;  %v162_v4 = vpop.permute.xlu0 %161  ;;  %vm1568_vm6 = vcmp.ne.s16.totalorder %v292_v0, 0  ;;  %v1572_v62 = vrot.slane %v572_v25, 5  ;;  %v1576_v42 = vrot.slane %v575_v38, 5 }
  0x94   :  { %v264_v16 = vsel %vm1467_vm12, %v228_v13, 0  ;;  %v262_v24 = vsel %vm1474_vm2, %v226_v37, 0  ;;  %v263_v50 = vsel %vm1481_vm3, %v227_v44, 0  ;;  %v179_v0 = vsel %vm169_vm11, %v162_v4, %v164_v26  ;;  %vm1601_vm12 = vmand %vm717_vm1, %vm718_vm7 }
  0x95   :  { %v1587_v56 = vrot.slane %v554_v40, 5  ;;  %v1589_v17 = vrot.slane %v572_v25, 4  ;;  %v1597_v30 = vrot.slane %v569_v57, 4  ;;  %v213_v35 = vsel %vm1492_vm0, %v179_v0, 0  ;;  %vm1649_vm7 = vmand %vm741_vm5, %vm742_vm14 }
  0x96   :  { %vm1610_vm2 = vcmp.ne.s16.totalorder %v304_v2, 0  ;;  %vm1617_vm3 = vcmp.ne.s16.totalorder %v296_v3, 0  ;;  %v1623_v45 = vrot.slane %v562_v28, 5  ;;  %v1627_v57 = vrot.slane %v578_v36, 4 }
  0x97   :  { %v1631_v2 = vrot.slane %v558_v58, 5  ;;  %v1633_v52 = vshrl.u32 %v264_v16, 16  ;;  %v1635_v25 = vshrl.u32 %v262_v24, 16  ;;  %v1637_v63 = vshrl.u32 %v263_v50, 16  ;;  %v168_v32 = vpop.permute.xlu1 %167  ;;  %v166_v39 = vpop.permute.xlu0 %165 }
  0x98   :  { %v518_v3 = vshll.u32 %v213_v35, 16  ;;  %vm1642_vm0 = vcmp.ne.s16.totalorder %v300_v5, 0  ;;  %v536_v28 = vrot.slane %v1563_v61, 6  ;;  %v172_v36 = vsel %vm169_vm11, %v168_v32, %v162_v4 }
  0x99   :  { %v170_v59 = vsel %vm169_vm11, %v164_v26, %v166_v39  ;;  %v171_v13 = vsel %vm169_vm11, %v166_v39, %v168_v32  ;;  %vm1966_vm10 = vcmask 1044480   ;;  %vm790_vm13 = vsmask.f32 4352 }
  0x9a   :  { %v720_v1 = vsel %vm1601_vm12, %v1497_v43, %v518_v3  ;;  %v216_v5 = vsel %vm1544_vm15, %v172_v36, 0  ;;  %v214_v37 = vsel %vm1507_vm9, %v170_v59, 0  ;;  %v215_v44 = vsel %vm1551_vm4, %v171_v13, 0 }
  0x9b   :  { %v727_v4 = vsel %vm717_vm1, %v720_v1, %v536_v28  ;;  %v527_v26 = vshll.u32 %v216_v5, 16  ;;  %v521_v16 = vshll.u32 %v214_v37, 16  ;;  %v524_v24 = vshll.u32 %v215_v44, 16  ;;  %v268_v23 = vpop.permute.xlu1 %267  ;;  %v266_v35 = vpop.permute.xlu0 %265 }
  0x9c   :  { %v548_v50 = vrot.slane %v1633_v52, 6  ;;  %v540_v0 = vrot.slane %v1635_v25, 6  ;;  %v544_v43 = vrot.slane %v1637_v63, 6  ;;  %v744_v21 = vsel %vm1649_vm7, %v727_v4, %v1426_v46 }
  0x9d   :  { %vm1675_vm14 = vcmp.ne.s16.totalorder %v348_v7, 0  ;;  %v723_v3 = vsel %vm1601_vm12, %v1513_v48, %v527_v26  ;;  %v721_v32 = vsel %vm1601_vm12, %v1518_v53, %v521_v16  ;;  %v722_v46 = vsel %vm1601_vm12, %v1522_v55, %v524_v24 }
  0x9e   :  { %v751_v39 = vsel %vm741_vm5, %v744_v21, %v1532_v29  ;;  %v739_v7 = vsel %vm717_vm1, %v723_v3, %v548_v50  ;;  %v731_v28 = vsel %vm717_vm1, %v721_v32, %v540_v0  ;;  %v735_v36 = vsel %vm717_vm1, %v722_v46, %v544_v43 }
  0x9f   :  { %v274_v59 = vsel %vm273_vm8, %v266_v35, %v268_v23  ;;  %v747_v48 = vsel %vm1649_vm7, %v739_v7, %v1528_v33  ;;  %v745_v53 = vsel %vm1649_vm7, %v731_v28, %v1539_v15  ;;  %v746_v55 = vsel %vm1649_vm7, %v735_v36, %v1557_v47  ;;  %v270_v58 = vpop.permute.xlu0 %269 }
  0xa0   :  { %v309_v29 = vsel %vm1568_vm6, %v274_v59, 0  ;;  %vm1708_vm1 = vcmp.ne.s16.totalorder %v360_v10, 0  ;;  %vm1715_vm9 = vcmp.ne.s16.totalorder %v352_v8, 0  ;;  %vm1722_vm15 = vcmp.ne.s16.totalorder %v356_v11, 0  ;;  %v272_v10 = vpop.permute.xlu1 %271 }
  0xa1   :  { %v1726_v47 = vshll.u32 %v309_v29, 16  ;;  %v763_v60 = vsel %vm741_vm5, %v747_v48, %v1561_v54  ;;  %v755_v6 = vsel %vm741_vm5, %v745_v53, %v1572_v62  ;;  %v759_v8 = vsel %vm741_vm5, %v746_v55, %v1576_v42 }
  0xa2   :  { %vm813_vm4 = vcmask 1045504   ;;  %vm814_vm6 = vsmask.f32 5376  ;;  %vm2037_vm12 = vsmask.f32 3328  ;;  %vm2038_vm7 = vcmask 1043456  }
  0xa3   :  { %vm1736_vm11 = vmand %vm2038_vm7, %vm2037_vm12  ;;  %v283_v11 = vsel %vm273_vm8, %v272_v10, %v266_v35  ;;  %v275_v13 = vsel %vm273_vm8, %v268_v23, %v270_v58  ;;  %v276_v54 = vsel %vm273_vm8, %v270_v58, %v272_v10  ;;  %v1745_v62 = vrot.slane %v575_v38, 4  ;;  %v314_v27 = vpop.permute.xlu0 %313 }
  0xa4   :  { %v601_v42 = vrot.slane %v1563_v61, 5  ;;  %v584_v1 = vrot.slane %v1726_v47, 5  ;;  %v312_v5 = vsel %vm1610_vm2, %v283_v11, 0  ;;  %v310_v37 = vsel %vm1617_vm3, %v275_v13, 0  ;;  %v316_v24 = vpop.permute.xlu1 %315  ;;  %vm1773_vm2 = vmand %vm1966_vm10, %vm790_vm13 }
  0xa5   :  { %v604_v44 = vrot.slane %v1633_v52, 5  ;;  %v1754_v4 = vshll.u32 %v312_v5, 16  ;;  %v311_v20 = vsel %vm1642_vm0, %v276_v54, 0  ;;  %v586_v38 = vshll.u32 %v310_v37, 16  ;;  %vm2046_vm3 = vmmov %vm2038_vm7 }
  0xa6   :  { %v2041_v61 = vrot.slane %v1299_v12, %v1087_v31  ;;  %v602_v40 = vrot.slane %v1635_v25, 5  ;;  %v603_v19 = vrot.slane %v1637_v63, 5  ;;  %v768_v52 = vsel %vm1736_vm11, %v751_v39, %v584_v1 }
  0xa7   :  { %v1769_v16 = vshll.u32 %v311_v20, 16  ;;  %v617_v0 = vrot.slane %v1726_v47, 4  ;;  %v775_v43 = vsel %vm2046_vm3, %v768_v52, %v601_v42  ;;  %v596_v25 = vrot.slane %v1754_v4, 5  ;;  %v318_v10 = vpop.permute.xlu0 %317 }
  0xa8   :  { %vm1761_vm8 = vcmp.ne.s16.totalorder %v2041_v61, 0  ;;  %v588_v63 = vrot.slane %v586_v38, 5  ;;  %v620_v21 = vrot.slane %v1754_v4, 4  ;;  %v618_v35 = vrot.slane %v586_v38, 4  ;;  %v320_v47 = vpop.permute.xlu1 %319 }
  0xa9   :  { %v592_v23 = vrot.slane %v1769_v16, 5  ;;  %vm2047_vm0 = vcmask 924672   ;;  %v771_v32 = vsel %vm1736_vm11, %v763_v60, %v596_v25  ;;  %v2048_v7 = vrot.slane %v1310_v14, %v1107_v34 }
  0xaa   :  { %v322_v3 = vsel %vm2047_vm0, %v314_v27, %v316_v24  ;;  %v769_v46 = vsel %vm1736_vm11, %v755_v6, %v588_v63  ;;  %v2051_v36 = vrot.slane %v1299_v12, %v1107_v34  ;;  %v792_v48 = vsel %vm1773_vm2, %v775_v43, %v1593_v49  ;;  %vm2054_vm0 = vmmov %vm2038_vm7 }
  0xab   :  { %v365_v39 = vsel %vm1675_vm14, %v322_v3, 0  ;;  %vm1792_vm13 = vcmp.ne.s16.totalorder %v2048_v7, 0  ;;  %v787_v51 = vsel %vm2054_vm0, %v771_v32, %v604_v44  ;;  %v770_v53 = vsel %vm1736_vm11, %v759_v8, %v592_v23  ;;  %vm2055_vm14 = vmmov %vm2054_vm0  ;;  %v370_v44 = vpop.permute.xlu0 %369 }
  0xac   :  { %vm1799_vm3 = vcmp.ne.s16.totalorder %v2051_v36, 0  ;;  %v779_v55 = vsel %vm2055_vm14, %v769_v46, %v602_v40  ;;  %v626_v29 = vshrl.u32 %v365_v39, 16  ;;  %v2056_v12 = vrot.slane %v1310_v14, %v1087_v31  ;;  %vm2059_vm7 = vmmov %vm2054_vm0  ;;  %v372_v15 = vpop.permute.xlu1 %371 }
  0xad   :  { %v783_v6 = vsel %vm2059_vm7, %v770_v53, %v603_v19  ;;  %vm2060_vm5 = vcmask 924672   ;;  %vm425_vm11 = vcmask 908288   ;;  %v2063_v5 = vrot.slane %v1329_v18, %v1087_v31 }
  0xae   :  { %vm1813_vm12 = vcmp.ne.s16.totalorder %v2056_v12, 0  ;;  %v331_v49 = vsel %vm2060_vm5, %v320_v47, %v314_v27  ;;  %vm2061_vm0 = vmmov %vm2060_vm5  ;;  %v628_v9 = vrot.slane %v626_v29, 2  ;;  %v793_v41 = vsel %vm1773_vm2, %v779_v55, %v1587_v56 }
  0xaf   :  { %v323_v58 = vsel %vm2061_vm0, %v316_v24, %v318_v10  ;;  %vm2062_vm10 = vmmov %vm2061_vm0  ;;  %v368_v11 = vsel %vm1708_vm1, %v331_v49, 0  ;;  %vm1832_vm5 = vcmp.ne.s16.totalorder %v2063_v5, 0  ;;  %vm2068_vm1 = vcmask 1044480   ;;  %v374_v23 = vpop.permute.xlu0 %373 }
  0xb0   :  { %v324_v8 = vsel %vm2062_vm10, %v318_v10, %v320_v47  ;;  %v366_v13 = vsel %vm1715_vm9, %v323_v58, 0  ;;  %v638_v54 = vshrl.u32 %v368_v11, 16  ;;  %vm1841_vm10 = vmand %vm813_vm4, %vm814_vm6  ;;  %v803_v4 = vsel %vm2068_vm1, %v793_v41, %v1589_v17  ;;  %v376_v63 = vpop.permute.xlu1 %375 }
  0xb1   :  { %v367_v14 = vsel %vm1722_vm15, %v324_v8, 0  ;;  %v630_v42 = vshrl.u32 %v366_v13, 16  ;;  %v795_v20 = vsel %vm1773_vm2, %v787_v51, %v1623_v45  ;;  %vm2069_vm9 = vmmov %vm2068_vm1  ;;  %v794_v56 = vsel %vm1773_vm2, %v783_v6, %v1631_v2 }
  0xb2   :  { %v1827_v1 = vshrl.u32 %v367_v14, 16  ;;  %v799_v38 = vsel %vm2069_vm9, %v792_v48, %v1597_v30  ;;  %v619_v61 = vrot.slane %v1769_v16, 4  ;;  %v640_v40 = vrot.slane %v638_v54, 2  ;;  %vm2071_vm14 = vmmov %vm2068_vm1 }
  0xb3   :  { %v632_v19 = vrot.slane %v630_v42, 2  ;;  %vm2070_vm15 = vcmask 916480   ;;  %v817_v45 = vsel %vm1841_vm10, %v803_v4, %v618_v35  ;;  %v811_v30 = vsel %vm2071_vm14, %v795_v20, %v1627_v57  ;;  %vm2078_vm0 = vmmov %vm2068_vm1  ;;  %v418_v28 = vpop.permute.xlu0 %417 }
  0xb4   :  { %v378_v52 = vsel %vm2070_vm15, %v370_v44, %v372_v15  ;;  %v816_v2 = vsel %vm1841_vm10, %v799_v38, %v617_v0  ;;  %v2072_v27 = vrot.slane %v1344_v22, %v1107_v34  ;;  %v2075_v26 = vrot.slane %v1329_v18, %v1107_v34  ;;  %vm2079_vm1 = vmmov %vm2070_vm15  ;;  %v420_v6 = vpop.permute.xlu1 %419 }
  0xb5   :  { %v413_v17 = vsel %vm1761_vm8, %v378_v52, 0  ;;  %v827_v57 = vsel %vm813_vm4, %v817_v45, %v632_v19  ;;  %v819_v0 = vsel %vm1841_vm10, %v811_v30, %v620_v21  ;;  %v636_v25 = vrot.slane %v1827_v1, 2  ;;  %vm2080_vm9 = vmmov %vm2079_vm1 }
  0xb6   :  { %v642_v24 = vshll.u32 %v413_v17, 16  ;;  %v661_v16 = vshrl.u32 %v413_v17, 16  ;;  %vm1868_vm2 = vcmp.ne.s16.totalorder %v2072_v27, 0  ;;  %vm1875_vm8 = vcmp.ne.s16.totalorder %v2075_v26, 0  ;;  %vm2085_vm7 = vmmov %vm2079_vm1 }
  0xb7   :  { %v835_v35 = vsel %vm813_vm4, %v819_v0, %v640_v40  ;;  %v823_v3 = vsel %vm813_vm4, %v816_v2, %v628_v9  ;;  %v807_v34 = vsel %vm2078_vm0, %v794_v56, %v1745_v62  ;;  %v387_v46 = vsel %vm2079_vm1, %v376_v63, %v370_v44  ;;  %v422_v37 = vpop.permute.xlu0 %421 }
  0xb8   :  { %v644_v18 = vrot.slane %v642_v24, 2  ;;  %v663_v32 = vrot.slane %v661_v16, 1  ;;  %v379_v39 = vsel %vm2080_vm9, %v372_v15, %v374_v23  ;;  %vm2081_vm15 = vsmask.f32 6400  ;;  %v424_v15 = vpop.permute.xlu1 %423 }
  0xb9   :  { %vm2082_vm14 = vcmask 1046528   ;;  %v416_v7 = vsel %vm1792_vm13, %v387_v46, 0  ;;  %v380_v36 = vsel %vm2085_vm7, %v374_v23, %v376_v63  ;;  %v414_v62 = vsel %vm1799_vm3, %v379_v39, 0 }
  0xba   :  { %vm1891_vm6 = vmand %vm2082_vm14, %vm2081_vm15  ;;  %v818_v48 = vsel %vm1841_vm10, %v807_v34, %v619_v61  ;;  %v654_v51 = vshll.u32 %v416_v7, 16  ;;  %v670_v53 = vshrl.u32 %v416_v7, 16  ;;  %v415_v55 = vsel %vm1813_vm12, %v380_v36, 0 }
  0xbb   :  { %v646_v29 = vshll.u32 %v414_v62, 16  ;;  %v650_v47 = vshll.u32 %v415_v55, 16  ;;  %v664_v10 = vshrl.u32 %v414_v62, 16  ;;  %v667_v12 = vshrl.u32 %v415_v55, 16  ;;  %vm2089_vm13 = vmmov %vm2082_vm14 }
  0xbc   :  { %v840_v49 = vsel %vm1891_vm6, %v823_v3, %v644_v18  ;;  %v656_v58 = vrot.slane %v654_v51, 2  ;;  %v672_v59 = vrot.slane %v670_v53, 1  ;;  %v426_v9 = vsel %vm425_vm11, %v418_v28, %v420_v6  ;;  %vm2090_vm3 = vmmov %vm2089_vm13 }
  0xbd   :  { %v648_v8 = vrot.slane %v646_v29, 2  ;;  %v652_v11 = vrot.slane %v650_v47, 2  ;;  %v666_v13 = vrot.slane %v664_v10, 1  ;;  %v465_v60 = vsel %vm1832_vm5, %v426_v9, 0  ;;  %vm2095_vm0 = vmmov %vm2090_vm3 }
  0xbe   :  { %v2086_v14 = vrot.slane %v1344_v22, %v1087_v31  ;;  %v674_v42 = vshll.u32 %v465_v60, 16  ;;  %v843_v5 = vsel %vm1891_vm6, %v835_v35, %v656_v58  ;;  %v847_v41 = vsel %vm2089_vm13, %v840_v49, %v663_v32 }
  0xbf   :  { %v841_v1 = vsel %vm1891_vm6, %v827_v57, %v648_v8  ;;  %v669_v33 = vrot.slane %v667_v12, 1  ;;  %vm2091_vm5 = vsmask.f32 7424  ;;  %vm2092_vm10 = vcmask 1047552  }
  0xc0   :  { %vm1912_vm12 = vcmp.ne.s16.totalorder %v2086_v14, 0  ;;  %v851_v44 = vsel %vm2090_vm3, %v841_v1, %v666_v13  ;;  %vm1924_vm7 = vmand %vm2092_vm10, %vm2091_vm5  ;;  %v859_v22 = vsel %vm2095_vm0, %v843_v5, %v672_v59  ;;  %v831_v4 = vsel %vm813_vm4, %v818_v48, %v636_v25  ;;  %v868_v25 = vld [vmem:[%s1963_s1] sm:$0xf] }
  0xc1   :  { %v676_v20 = vrot.slane %v674_v42, 1  ;;  %v435_v38 = vsel %vm425_vm11, %v424_v15, %v418_v28  ;;  %v427_v56 = vsel %vm425_vm11, %v420_v6, %v422_v37  ;;  %v428_v61 = vsel %vm425_vm11, %v422_v37, %v424_v15  ;;  %vm2096_vm4 = vmmov %vm2095_vm0 }
  0xc2   :  { %v468_v40 = vsel %vm1868_vm2, %v435_v38, 0  ;;  %v466_v19 = vsel %vm1875_vm8, %v427_v56, 0  ;;  %v467_v52 = vsel %vm1912_vm12, %v428_v61, 0  ;;  %v842_v17 = vsel %vm1891_vm6, %v831_v4, %v652_v11 }
  0xc3   :  { %v686_v45 = vshll.u32 %v468_v40, 16  ;;  %v678_v30 = vshll.u32 %v466_v19, 16  ;;  %v682_v2 = vshll.u32 %v467_v52, 16  ;;  %v864_v24 = vsel %vm1924_vm7, %v847_v41, %v676_v20 }
  0xc4   :  { %v855_v16 = vsel %vm2096_vm4, %v842_v17, %v669_v33  ;;  %vm2097_vm11 = vcmask 130048   ;;  %v873_v63 = vpop.permute.xlu0 %872 }
  0xc5   :  { %v688_v27 = vrot.slane %v686_v45, 1  ;;  %v680_v50 = vrot.slane %v678_v30, 1  ;;  %v684_v26 = vrot.slane %v682_v2, 1  ;;  %vm2098_vm6 = vmmov %vm2097_vm11 }
  0xc7   :  { %v865_v43 = vsel %vm1924_vm7, %v851_v44, %v680_v50  ;;  %v867_v57 = vsel %vm1924_vm7, %v859_v22, %v688_v27  ;;  %v866_v0 = vsel %vm1924_vm7, %v855_v16, %v684_v26 }
  0xc8   :  { %892 = vmatprep.subr.bf16.mxu0 %v865_v43  ;;  %933 = vmatprep.subr.bf16.mxu1 %v867_v57 }
  0xc9   :  { %893 = vmatpush1.bf16.msra.mxu0 %v864_v24  ;;  %934 = vmatpush1.bf16.msra.mxu1 %v866_v0 }
  0xcc   :  { %986 = vmatmul.mubr.msk.bf16.vlgmr.msra.gmra.mxu0 %vm2097_vm11, %v868_v25  ;;  %987 = vmatmul.mubr.msk.bf16.vlgmr.msra.gmra.mxu1 %vm2098_vm6, %v868_v25 }
 0x18c   :  { %v912_v23 = vpop.f32.mrf.mxu0  ;;  %v953_v35 = vpop.f32.mrf.mxu1 }
 0x18d   :  { %v913_v3 = vadd.f32 %v912_v23, %v873_v63  ;;  %v954_v34 = vadd.f32 %v953_v35, %v873_v63 }
 0x18e   :  { %v914_v18 = vpop.f32.mrf.mxu0  ;;  %v955_v32 = vpop.f32.mrf.mxu1 }
 0x18f   :  { %v915_v46 = vadd.f32 %v914_v18, %v873_v63  ;;  %v956_v39 = vadd.f32 %v955_v32, %v873_v63  ;;  %v960_v36 = vmax.f32 %v913_v3, 0.0  ;;  %v962_v62 = vmax.f32 %v954_v34, 0.0 }
 0x190   :  { %v916_v21 = vpop.f32.mrf.mxu0  ;;  %v957_v7 = vpop.f32.mrf.mxu1 }
 0x191   :  { %v961_v48 = vmax.f32 %v915_v46, 0.0  ;;  %v963_v51 = vmax.f32 %v956_v39, 0.0 }
 0x192   :  { %v917_v53 = vpop.f32.mrf.mxu0  ;;  %v958_v55 = vpop.f32.mrf.mxu1 }
 0x193   :  { %v990_v29 = vpack.c.bf16 %v961_v48, %v960_v36  ;;  %v991_v47 = vpack.c.bf16 %v963_v51, %v962_v62 }
 0x195   :  { %980 = vst [vmem:[%s1964_s3] sm:$0xff] %v990_v29  ;;  %981 = vst [vmem:[%s1964_s3 + $0x8] sm:$0xff] %v991_v47 }

// kernel: conv_vae_forward.9
= control target key start
LH: loop header
LB: loop body
LE: loop exit
PB: predicated region body
PF: predicated region fallthrough
CT: control target
= control target key end

     0   :  { %v477_v1 = vmov 0   ;;  %s478_s14 = smov 123   ;;  %s479_s15 = smov 127   ;;  %v25_v11 = vlaneseq  ;;  %vm230_vm6 = vcmask 220160   ;;  %vm144_vm7 = vcmask 252928   ;;  %s735_s0 = inlined_call_operand.vmem [shape: bf16[64,32], index: 0, kind: input, shape index: {}]   ;;  %s736_s1 = inlined_call_operand.vmem [shape: bf16[32,256], index: 1, kind: input, shape index: {}]   ;;  %s737_s2 = inlined_call_operand.vmem [shape: f32[32,1], index: 2, kind: input, shape index: {}]   ;;  %s738_s3 = inlined_call_operand.vmem [shape: bf16[32,32], index: 3, kind: output, shape index: {}]  }
   0x1   :  { %v517_v0 = vld [vmem:[%s735_s0] sm:$0xff]   ;;  %466 = vset.pattern.permute.xlu1 %v477_v1  ;;  %465 = vset.pattern.permute.xlu0 %v477_v1  ;;  %s480_s16 = smov 27   ;;  %s481_s17 = smov 31   ;;  %v528_v2 = vld [vmem:[%s735_s0 + $0x8] sm:$0xff]   ;;  %v543_v3 = vld [vmem:[%s735_s0 + $0x10] sm:$0xff]   ;;  %vm202_vm11 = vcmask 228352  }
   0x2   :  { %226 = vrot.lane.b32.xlu1 %v517_v0, %s478_s14  ;;  %140 = vrot.lane.b32.xlu0 %v517_v0, %s479_s15  ;;  %s482_s20 = smov 28   ;;  %s483_s21 = smov 124   ;;  %v552_v4 = vld [vmem:[%s735_s0 + $0x18] sm:$0xff]   ;;  %v473_v5 = vld [vmem:[%s736_s1 + $0x4] ss:$8 sps:$4 sm:$0xff]   ;;  %v26_v12 = vand.u32 127, %v25_v11 }
   0x3   :  { %s484_s22 = smov 1   ;;  %s485_s23 = smov 97   ;;  %v476_v6 = vld [vmem:[%s736_s1 + $0x14] ss:$8 sps:$4 sm:$0xff]   ;;  %330 = vmatprep.mubr.bf16.mxu0 %v473_v5  ;;  %v255_v7 = vld [vmem:[%s737_s2 + $0x8] sm:$0xff]  ;;  %v254_v8 = vld [vmem:[%s737_s2] sm:$0xff] }
   0x4   :  { %s486_s24 = smov 29   ;;  %s487_s25 = smov 125   ;;  %338 = vmatprep.mubr.bf16.mxu1 %v476_v6  ;;  %v256_v9 = vld [vmem:[%s737_s2 + $0x10] sm:$0xff]  ;;  %v257_v10 = vld [vmem:[%s737_s2 + $0x18] sm:$0xff]  ;;  %v28_v13 = vshra.s32 %v26_v12, 2  ;;  %v27_v14 = vand.u32 3, %v26_v12 }
   0x5   :  { %s488_s28 = smov 3   ;;  %s489_s29 = smov 99   ;;  %v52_v17 = vshrl.u32 %v25_v11, 7 }
   0x6   :  { %228 = vrot.lane.b32.xlu1 %v517_v0, %s480_s16  ;;  %142 = vrot.lane.b32.xlu0 %v517_v0, %s481_s17  ;;  %s490_s5 = smov 4   ;;  %s491_s6 = smov 100   ;;  %v582_v15 = vand.u32 3, %v28_v13  ;;  %vm584_vm0 = vcmp.lt.s32.totalorder %v27_v14, 3  ;;  %vm612_vm10 = vcmp.ge.s32.totalorder %v27_v14, 1 }
   0x7   :  { %s492_s0 = smov 5   ;;  %s493_s11 = smov 101   ;;  %vm151_vm3 = vmpackc.low %vm584_vm0, %vm584_vm0  ;;  %v596_v18 = vsub.s32 0, %v52_v17 }
   0x8   :  { %vm186_vm1 = vcmp.lt.s32.totalorder %v582_v15, 3  ;;  %v152_v20 = vsel %vm151_vm3, 65537, %v477_v1  ;;  %vm127_vm14 = vmpackc.low %vm612_vm10, %vm612_vm10  ;;  %vm120_vm3 = vcmask 7168  }
   0x9   :  { %vm235_vm2 = vmand %vm186_vm1, %vm584_vm0  ;;  %v156_v22 = vrot.slane %v152_v20, %v596_v18  ;;  %v128_v42 = vsel %vm127_vm14, 65537, %v477_v1 }
   0xa   :  { %219 = vrot.lane.b32.xlu1 %v528_v2, %s482_s20  ;;  %217 = vrot.lane.b32.xlu0 %v528_v2, %s483_s21  ;;  %vm238_vm4 = vmpackc.low %vm235_vm2, %vm235_vm2  ;;  %v132_v46 = vrot.slane %v128_v42, %v596_v18 }
   0xb   :  { %v239_v19 = vsel %vm238_vm4, 65537, %v477_v1  ;;  %vm209_vm5 = vmpackc.low %vm186_vm1, %vm186_vm1  ;;  %vm606_vm9 = vcmp.ne.s16.totalorder %v156_v22, 0  ;;  %v474_v22 = vld [vmem:[%s736_s1 + $0x10] ss:$8 sps:$4 sm:$0xff]  }
   0xc   :  { %v243_v21 = vrot.slane %v239_v19, %v596_v18  ;;  %v210_v25 = vsel %vm209_vm5, 65537, %v477_v1  ;;  %vm622_vm12 = vmand %vm186_vm1, %vm612_vm10  ;;  %vm44_vm1 = vcmp.ge.s32.totalorder %v582_v15, 1  ;;  %vm181_vm5 = vcmask 236544  }
   0xd   :  { %v214_v27 = vrot.slane %v210_v25, %v596_v18  ;;  %vm190_vm15 = vmpackc.low %vm622_vm12, %vm622_vm12 }
   0xe   :  { %200 = vrot.lane.b32.xlu1 %v517_v0, %s482_s20  ;;  %198 = vrot.lane.b32.xlu0 %v517_v0, %s483_s21  ;;  %vm244_vm8 = vcmp.ne.s16.totalorder %v243_v21, 0  ;;  %v191_v41 = vsel %vm190_vm15, 65537, %v477_v1  ;;  %vm655_vm2 = vmand %vm44_vm1, %vm584_vm0 }
   0xf   :  { %vm626_vm13 = vcmp.ne.s16.totalorder %v214_v27, 0  ;;  %v195_v45 = vrot.slane %v191_v41, %v596_v18  ;;  %vm103_vm4 = vmpackc.low %vm655_vm2, %vm655_vm2 }
  0x10   :  { %v104_v53 = vsel %vm103_vm4, 65537, %v477_v1  ;;  %vm689_vm14 = vmand %vm44_vm1, %vm612_vm10 }
  0x11   :  { %vm196_vm0 = vcmp.ne.s16.totalorder %v195_v45, 0  ;;  %v108_v56 = vrot.slane %v104_v53, %v596_v18 }
  0x12   :  { %118 = vrot.lane.b32.xlu1 %v528_v2, %s484_s22  ;;  %116 = vrot.lane.b32.xlu0 %v528_v2, %s485_s23 }
  0x13   :  { %vm109_vm12 = vcmp.ne.s16.totalorder %v108_v56, 0 }
  0x16   :  { %179 = vrot.lane.b32.xlu1 %v528_v2, %s486_s24  ;;  %177 = vrot.lane.b32.xlu0 %v528_v2, %s487_s25 }
  0x1a   :  { %92 = vrot.lane.b32.xlu1 %v543_v3, %s488_s28  ;;  %90 = vrot.lane.b32.xlu0 %v543_v3, %s489_s29 }
  0x1e   :  { %170 = vrot.lane.b32.xlu1 %v543_v3, %s481_s17  ;;  %168 = vrot.lane.b32.xlu0 %v543_v3, %s479_s15 }
  0x22   :  { %83 = vrot.lane.b32.xlu1 %v552_v4, %s490_s5  ;;  %81 = vrot.lane.b32.xlu0 %v552_v4, %s491_s6 }
  0x26   :  { %64 = vrot.lane.b32.xlu1 %v543_v3, %s490_s5  ;;  %62 = vrot.lane.b32.xlu0 %v543_v3, %s491_s6 }
  0x2a   :  { %37 = vrot.lane.b32.xlu1 %v552_v4, %s492_s0  ;;  %35 = vrot.lane.b32.xlu0 %v552_v4, %s493_s11 }
  0x2e   :  { %161 = vrot.lane.b32.xlu1 %v552_v4, %s484_s22  ;;  %159 = vrot.lane.b32.xlu0 %v552_v4, %s485_s23 }
  0x32   :  { %265 = vperm.xlu1 %466, %v255_v7   ;;  %260 = vperm.xlu0 %465, %v254_v8  }
  0x36   :  { %270 = vperm.xlu1 %466, %v256_v9   ;;  %275 = vperm.xlu0 %465, %v257_v10  }
  0x74   :  { %v227_v23 = vpop.permute.xlu1 %226  ;;  %v141_v24 = vpop.permute.xlu0 %140 }
  0x78   :  { %v229_v28 = vpop.permute.xlu1 %228  ;;  %v143_v29 = vpop.permute.xlu0 %142 }
  0x79   :  { %v233_v30 = vsel %vm230_vm6, %v227_v23, %v229_v28  ;;  %v147_v31 = vsel %vm144_vm7, %v141_v24, %v143_v29  ;;  %vm667_vm6 = vcmp.ne.s16.totalorder %v132_v46, 0 }
  0x7a   :  { %436 = vmatprep.subr.msk.bf16.mxu0 %vm244_vm8, %v233_v30  ;;  %437 = vmatprep.subr.msk.bf16.mxu1 %vm244_vm8, %v233_v30  ;;  %v158_v33 = vsel %vm606_vm9, %v147_v31, 0  ;;  %vm73_vm8 = vmpackc.low %vm44_vm1, %vm44_vm1  ;;  %vm367_vm1 = vcmask 257024  }
  0x7b   :  { %393 = vmatpush3.bf16.msra.mxu0 %v158_v33  ;;  %428 = vmatpush3.bf16.msra.mxu1 %v158_v33  ;;  %v74_v59 = vsel %vm73_vm8, 65537, %v477_v1 }
  0x7c   :  { %v220_v36 = vpop.permute.xlu1 %219  ;;  %v218_v37 = vpop.permute.xlu0 %217  ;;  %v78_v61 = vrot.slane %v74_v59, %v596_v18 }
  0x7d   :  { %v223_v38 = vsel %vm202_vm11, %v218_v37, %v220_v36 }
  0x7e   :  { %438 = vmatprep.subr.msk.bf16.mxu0 %vm626_vm13, %v223_v38  ;;  %439 = vmatprep.subr.msk.bf16.mxu1 %vm626_vm13, %v223_v38  ;;  %vm693_vm15 = vcmp.ne.s16.totalorder %v78_v61, 0 }
  0x7f   :  { %395 = vmatpush3.bf16.msra.mxu0 %v528_v2  ;;  %429 = vmatpush3.bf16.msra.mxu1 %v528_v2 }
  0x80   :  { %v201_v39 = vpop.permute.xlu1 %200  ;;  %v199_v40 = vpop.permute.xlu0 %198 }
  0x81   :  { %v205_v43 = vsel %vm202_vm11, %v199_v40, %v201_v39  ;;  %vm94_vm11 = vcmask 23552  }
  0x82   :  { %440 = vmatprep.subr.msk.bf16.mxu0 %vm626_vm13, %v205_v43  ;;  %441 = vmatprep.subr.msk.bf16.mxu1 %vm626_vm13, %v205_v43  ;;  %vm66_vm13 = vcmask 31744  }
  0x83   :  { %397 = vmatpush3.bf16.msra.mxu0 %v517_v0  ;;  %430 = vmatpush3.bf16.msra.mxu1 %v517_v0 }
  0x84   :  { %v119_v47 = vpop.permute.xlu1 %118  ;;  %v117_v48 = vpop.permute.xlu0 %116 }
  0x85   :  { %v123_v49 = vsel %vm120_vm3, %v117_v48, %v119_v47 }
  0x86   :  { %v134_v55 = vsel %vm667_vm6, %v123_v49, 0 }
  0x88   :  { %v180_v51 = vpop.permute.xlu1 %179  ;;  %v178_v52 = vpop.permute.xlu0 %177 }
  0x89   :  { %v184_v54 = vsel %vm181_vm5, %v178_v52, %v180_v51 }
  0x8a   :  { %442 = vmatprep.subr.msk.bf16.mxu0 %vm196_vm0, %v184_v54  ;;  %443 = vmatprep.subr.msk.bf16.mxu1 %vm196_vm0, %v184_v54 }
  0x8b   :  { %399 = vmatpush3.bf16.msra.mxu0 %v134_v55  ;;  %431 = vmatpush3.bf16.msra.mxu1 %v134_v55 }
  0x8c   :  { %v93_v57 = vpop.permute.xlu1 %92  ;;  %v91_v58 = vpop.permute.xlu0 %90 }
  0x8d   :  { %v97_v60 = vsel %vm94_vm11, %v91_v58, %v93_v57 }
  0x8e   :  { %v110_v2 = vsel %vm109_vm12, %v97_v60, 0 }
  0x90   :  { %v171_v62 = vpop.permute.xlu1 %170  ;;  %v169_v63 = vpop.permute.xlu0 %168 }
  0x91   :  { %v174_v0 = vsel %vm144_vm7, %v169_v63, %v171_v62  ;;  %vm49_vm7 = vmpackc.low %vm689_vm14, %vm689_vm14 }
  0x92   :  { %444 = vmatprep.subr.msk.bf16.mxu0 %vm606_vm9, %v174_v0  ;;  %445 = vmatprep.subr.msk.bf16.mxu1 %vm606_vm9, %v174_v0  ;;  %v50_v13 = vsel %vm49_vm7, 65537, %v477_v1  ;;  %vm39_vm9 = vcmask 39936  }
  0x93   :  { %401 = vmatpush3.bf16.msra.mxu0 %v110_v2  ;;  %432 = vmatpush3.bf16.msra.mxu1 %v110_v2  ;;  %v54_v15 = vrot.slane %v50_v13, %v596_v18  ;;  %v471_v18 = vld [vmem:[%s736_s1] ss:$8 sps:$4 sm:$0xff]  }
  0x94   :  { %v84_v7 = vpop.permute.xlu1 %83  ;;  %v82_v8 = vpop.permute.xlu0 %81  ;;  %402 = vmatprep.subr.bf16.mxu0 %v552_v4  ;;  %425 = vmatprep.subr.bf16.mxu1 %v552_v4 }
  0x95   :  { %v87_v9 = vsel %vm66_vm13, %v82_v8, %v84_v7  ;;  %vm55_vm10 = vcmp.ne.s16.totalorder %v54_v15, 0 }
  0x96   :  { %v89_v10 = vsel %vm693_vm15, %v87_v9, 0 }
  0x97   :  { %403 = vmatpush3.bf16.msra.mxu0 %v89_v10  ;;  %433 = vmatpush3.bf16.msra.mxu1 %v89_v10 }
  0x98   :  { %v65_v11 = vpop.permute.xlu1 %64  ;;  %v63_v12 = vpop.permute.xlu0 %62  ;;  %404 = vmatprep.subr.bf16.mxu0 %v543_v3  ;;  %426 = vmatprep.subr.bf16.mxu1 %v543_v3 }
  0x99   :  { %v69_v4 = vsel %vm66_vm13, %v63_v12, %v65_v11 }
  0x9a   :  { %v80_v14 = vsel %vm693_vm15, %v69_v4, 0 }
  0x9b   :  { %405 = vmatpush3.bf16.msra.mxu0 %v80_v14  ;;  %434 = vmatpush3.bf16.msra.mxu1 %v80_v14 }
  0x9c   :  { %v38_v16 = vpop.permute.xlu1 %37  ;;  %v36_v17 = vpop.permute.xlu0 %35 }
  0x9d   :  { %v42_v19 = vsel %vm39_vm9, %v36_v17, %v38_v16 }
  0x9e   :  { %v56_v1 = vsel %vm55_vm10, %v42_v19, 0 }
  0xa0   :  { %v162_v20 = vpop.permute.xlu1 %161  ;;  %v160_v21 = vpop.permute.xlu0 %159 }
  0xa1   :  { %v165_v3 = vsel %vm120_vm3, %v160_v21, %v162_v20 }
  0xa2   :  { %446 = vmatprep.subr.msk.bf16.mxu0 %vm667_vm6, %v165_v3  ;;  %447 = vmatprep.subr.msk.bf16.mxu1 %vm667_vm6, %v165_v3 }
  0xa3   :  { %407 = vmatpush3.bf16.msra.mxu0 %v56_v1  ;;  %435 = vmatpush3.bf16.msra.mxu1 %v56_v1 }
  0xa6   :  { %331 = vmatmul.mubr.bf16.vlgmr.msra.gmra.mxu0 %v471_v18  ;;  %339 = vmatmul.mubr.bf16.vlgmr.msra.gmra.mxu1 %v474_v22 }
  0xad   :  { %v266_v23 = vpop.permute.xlu1 %265  ;;  %v261_v26 = vpop.permute.xlu0 %260 }
  0xb1   :  { %v271_v27 = vpop.permute.xlu1 %270  ;;  %v276_v42 = vpop.permute.xlu0 %275 }
 0x166   :  { %v408_v24 = vpop.f32.mrf.mxu0  ;;  %v414_v25 = vpop.f32.mrf.mxu1 }
 0x168   :  { %v409_v28 = vpop.f32.mrf.mxu0  ;;  %v415_v29 = vpop.f32.mrf.mxu1 }
 0x169   :  { %v410_v30 = vadd.f32 %v409_v28, %v408_v24  ;;  %v416_v31 = vadd.f32 %v415_v29, %v414_v25 }
 0x16a   :  { %v411_v32 = vpop.f32.mrf.mxu0  ;;  %v417_v33 = vpop.f32.mrf.mxu1 }
 0x16b   :  { %v333_v34 = vadd.f32 %v410_v30, %v261_v26  ;;  %v341_v35 = vadd.f32 %v416_v31, %v271_v27 }
 0x16c   :  { %v412_v36 = vpop.f32.mrf.mxu0  ;;  %v418_v37 = vpop.f32.mrf.mxu1 }
 0x16d   :  { %v347_v38 = vmax.f32 %v333_v34, 0.0  ;;  %v349_v39 = vmax.f32 %v341_v35, 0.0  ;;  %v413_v40 = vadd.f32 %v412_v36, %v411_v32  ;;  %v419_v41 = vadd.f32 %v418_v37, %v417_v33 }
 0x16f   :  { %v388_v43 = vpack.c.bf16 %v347_v38, %v347_v38  ;;  %v390_v44 = vpack.c.bf16 %v349_v39, %v349_v39  ;;  %v336_v45 = vadd.f32 %v413_v40, %v266_v23  ;;  %v344_v46 = vadd.f32 %v419_v41, %v276_v42 }
 0x171   :  { %368 = vst.msk [vmem:[%s738_s3] sm:$0xf] %vm367_vm1, %v388_v43  ;;  %370 = vst.msk [vmem:[%s738_s3 + $0x8] sm:$0xf] %vm367_vm1, %v390_v44  ;;  %v348_v47 = vmax.f32 %v336_v45, 0.0  ;;  %v350_v48 = vmax.f32 %v344_v46, 0.0 }
 0x173   :  { %v389_v49 = vpack.c.bf16 %v348_v47, %v348_v47  ;;  %v391_v50 = vpack.c.bf16 %v350_v48, %v350_v48 }
 0x175   :  { %369 = vst.msk [vmem:[%s738_s3 + $0x4] sm:$0xf] %vm367_vm1, %v389_v49  ;;  %371 = vst.msk [vmem:[%s738_s3 + $0xc] sm:$0xf] %vm367_vm1, %v391_v50 }

// kernel: conv_vae_forward.10
= control target key start
LH: loop header
LB: loop body
LE: loop exit
PB: predicated region body
PF: predicated region fallthrough
CT: control target
= control target key end

     0   :  { %s2079_s0 = inlined_call_operand.vmem [shape: bf16[2,512], index: 0, kind: input, shape index: {}]   ;;  %s2080_s1 = inlined_call_operand.vmem [shape: f32[2,16], index: 1, kind: input, shape index: {}]   ;;  %s2081_s2 = inlined_call_operand.vmem [shape: bf16[512,64], index: 2, kind: input, shape index: {}]   ;;  %s2082_s3 = inlined_call_operand.vmem [shape: f32[1,64], index: 3, kind: input, shape index: {}]   ;;  %s2083_s4 = inlined_call_operand.vmem [shape: bf16[64,128], index: 4, kind: input, shape index: {}]   ;;  %s2084_s5 = inlined_call_operand.vmem [shape: f32[1,128], index: 5, kind: input, shape index: {}]   ;;  %s2085_s6 = inlined_call_operand.vmem [shape: bf16[128,16], index: 6, kind: input, shape index: {}]   ;;  %s2086_s7 = inlined_call_operand.vmem [shape: f32[1,16], index: 7, kind: input, shape index: {}]   ;;  %s2087_s8 = inlined_call_operand.vmem [shape: bf16[128,16], index: 8, kind: input, shape index: {}]   ;;  %s2088_s9 = inlined_call_operand.vmem [shape: f32[1,16], index: 9, kind: input, shape index: {}]   ;;  %s2089_s10 = inlined_call_operand.vmem [shape: bf16[16,64], index: 10, kind: input, shape index: {}]   ;;  %s2090_s11 = inlined_call_operand.vmem [shape: f32[1,64], index: 11, kind: input, shape index: {}]   ;;  %s2091_s12 = inlined_call_operand.vmem [shape: bf16[64,1024], index: 12, kind: input, shape index: {}]   ;;  %s2092_s13 = inlined_call_operand.vmem [shape: f32[1,1024], index: 13, kind: input, shape index: {}]   ;;  %s2093_s14 = inlined_call_operand.hbm [shape: f32[2,16], index: 14, kind: output, shape index: {0}]   ;;  %s2094_s15 = inlined_call_operand.hbm [shape: f32[2,16], index: 15, kind: output, shape index: {1}]   ;;  %s2095_s16 = inlined_call_operand.vmem [shape: bf16[2,1024], index: 16, kind: output, shape index: {2}]  }
   0x1   :  { %2096 = sst [smem:[#allocation8_spill]] %s2079_s0 }
   0x2   :  { %22 = vsyncpa [#allocation3], 0  ;;  %v1546_v0 = vld [vmem:[%s2081_s2 + $0x78] sm:$0xff]   ;;  %v1550_v4 = vld [vmem:[%s2081_s2 + $0x70] sm:$0xff]   ;;  %v137_v30 = vlaneseq  ;;  %s2097_s27 = sld [smem:[#allocation8_spill]]  ;;  %v1646_v37 = vmov 0.0  }
   0x3   :  { %v1547_v1 = vld [vmem:[%s2081_s2 + $0xf8] sm:$0xff]   ;;  %1413 = vmatprep.subr.bf16.mxu0 %v1546_v0  ;;  %v1551_v5 = vld [vmem:[%s2081_s2 + $0xf0] sm:$0xff]   ;;  %v1554_v8 = vld [vmem:[%s2081_s2 + $0x68] sm:$0xff]   ;;  %v1645_v34 = vmov 1966171168  }
   0x4   :  { %v1548_v2 = vld [vmem:[%s2081_s2 + $0x38] sm:$0xff]   ;;  %1435 = vmatprep.subr.bf16.mxu1 %v1547_v1  ;;  %v1552_v6 = vld [vmem:[%s2081_s2 + $0x30] sm:$0xff]   ;;  %v1555_v9 = vld [vmem:[%s2081_s2 + $0xe8] sm:$0xff]   ;;  %v135_v35 = vunpack.c.l.s4 %v1645_v34  ;;  %v1835_v36 = vshrl.u32 %v137_v30, 7 }
   0x5   :  { %v1549_v3 = vld [vmem:[%s2081_s2 + $0xb8] sm:$0xff]   ;;  %1414 = vmatpush3.bf16.msra.mxu0 %v1548_v2  ;;  %v1553_v7 = vld [vmem:[%s2081_s2 + $0xb0] sm:$0xff]   ;;  %v1556_v10 = vld [vmem:[%s2081_s2 + $0x28] sm:$0xff]  }
   0x6   :  { %1436 = vmatpush3.bf16.msra.mxu1 %v1549_v3  ;;  %1415 = vmatprep.subr.bf16.mxu0 %v1550_v4  ;;  %v1557_v11 = vld [vmem:[%s2081_s2 + $0xa8] sm:$0xff]   ;;  %v1558_v12 = vld [vmem:[%s2081_s2 + $0x60] sm:$0xff]   ;;  %v1562_v16 = vld [vmem:[%s2081_s2 + $0x58] sm:$0xff]   ;;  %v136_v39 = vunpack.c.0.s8 %v135_v35 }
   0x7   :  { %1437 = vmatprep.subr.bf16.mxu1 %v1551_v5  ;;  %v1559_v13 = vld [vmem:[%s2081_s2 + $0xe0] sm:$0xff]   ;;  %v1563_v17 = vld [vmem:[%s2081_s2 + $0xd8] sm:$0xff]   ;;  %v1566_v20 = vld [vmem:[%s2081_s2 + $0x50] sm:$0xff]  }
   0x8   :  { %v1560_v14 = vld [vmem:[%s2081_s2 + $0x20] sm:$0xff]   ;;  %v1564_v18 = vld [vmem:[%s2081_s2 + $0x18] sm:$0xff]   ;;  %v1567_v21 = vld [vmem:[%s2081_s2 + $0xd0] sm:$0xff]   ;;  %v1840_v40 = vsub.s32 %v136_v39, %v1835_v36 }
   0x9   :  { %1416 = vmatpush3.bf16.msra.mxu0 %v1552_v6  ;;  %v1561_v15 = vld [vmem:[%s2081_s2 + $0xa0] sm:$0xff]   ;;  %v1565_v19 = vld [vmem:[%s2081_s2 + $0x98] sm:$0xff]   ;;  %v1568_v22 = vld [vmem:[%s2081_s2 + $0x10] sm:$0xff]  }
   0xa   :  { %1438 = vmatpush3.bf16.msra.mxu1 %v1553_v7  ;;  %1417 = vmatprep.subr.bf16.mxu0 %v1554_v8  ;;  %v1569_v23 = vld [vmem:[%s2081_s2 + $0x90] sm:$0xff]   ;;  %v1570_v24 = vld [vmem:[%s2081_s2 + $0x48] sm:$0xff]   ;;  %v1574_v28 = vld [vmem:[%s2081_s2 + $0x40] sm:$0xff]  }
   0xb   :  { %1439 = vmatprep.subr.bf16.mxu1 %v1555_v9  ;;  %v1571_v25 = vld [vmem:[%s2081_s2 + $0xc8] sm:$0xff]   ;;  %v1575_v29 = vld [vmem:[%s2081_s2 + $0xc0] sm:$0xff]   ;;  %v1578_v41 = vld [vmem:[%s2083_s4 + $0x18] sm:$0xff]  }
   0xc   :  { %v1572_v26 = vld [vmem:[%s2081_s2 + $0x8] sm:$0xff]   ;;  %v1576_v31 = vld [vmem:[%s2081_s2] sm:$0xff]  }
   0xd   :  { %1418 = vmatpush3.bf16.msra.mxu0 %v1556_v10  ;;  %v1573_v27 = vld [vmem:[%s2081_s2 + $0x88] sm:$0xff]   ;;  %v1577_v32 = vld [vmem:[%s2081_s2 + $0x80] sm:$0xff]  }
   0xe   :  { %1440 = vmatpush3.bf16.msra.mxu1 %v1557_v11  ;;  %1419 = vmatprep.subr.bf16.mxu0 %v1558_v12  ;;  %v1313_v33 = vld.sshfl [vmem:[%s2097_s27] sm:$0x33 pattern:$0x75316420] }
   0xf   :  { %1441 = vmatprep.subr.bf16.mxu1 %v1559_v13  ;;  %v133_v38 = vcombine.high %v1313_v33, %v1313_v33  ;;  %v140_v43 = vrot.slane %v1313_v33, %v1840_v40 }
  0x11   :  { %1420 = vmatpush3.bf16.msra.mxu0 %v1560_v14  ;;  %v147_v42 = vrot.slane %v133_v38, %v1840_v40  ;;  %v148_v45 = vcombine.high %v140_v43, %v140_v43 }
  0x12   :  { %1442 = vmatpush3.bf16.msra.mxu1 %v1561_v15  ;;  %1421 = vmatprep.subr.bf16.mxu0 %v1562_v16 }
  0x13   :  { %1443 = vmatprep.subr.bf16.mxu1 %v1563_v17  ;;  %378 = vmatprep.mubr.bf16.mxu0 %v147_v42  ;;  %v149_v44 = vcombine.high %v147_v42, %v147_v42 }
  0x15   :  { %1422 = vmatpush3.bf16.msra.mxu0 %v1564_v18  ;;  %418 = vmatprep.mubr.bf16.mxu1 %v149_v44 }
  0x16   :  { %1444 = vmatpush3.bf16.msra.mxu1 %v1565_v19  ;;  %1423 = vmatprep.subr.bf16.mxu0 %v1566_v20 }
  0x17   :  { %1445 = vmatprep.subr.bf16.mxu1 %v1567_v21 }
  0x19   :  { %1424 = vmatpush3.bf16.msra.mxu0 %v1568_v22 }
  0x1a   :  { %1446 = vmatpush3.bf16.msra.mxu1 %v1569_v23  ;;  %1425 = vmatprep.subr.bf16.mxu0 %v1570_v24 }
  0x1b   :  { %1447 = vmatprep.subr.bf16.mxu1 %v1571_v25 }
  0x1d   :  { %1426 = vmatpush3.bf16.msra.mxu0 %v1572_v26 }
  0x1e   :  { %1448 = vmatpush3.bf16.msra.mxu1 %v1573_v27  ;;  %1427 = vmatprep.subr.bf16.mxu0 %v1574_v28 }
  0x1f   :  { %1449 = vmatprep.subr.bf16.mxu1 %v1575_v29 }
  0x21   :  { %1428 = vmatpush3.bf16.msra.mxu0 %v1576_v31 }
  0x22   :  { %1450 = vmatpush3.bf16.msra.mxu1 %v1577_v32  ;;  %1482 = vmatprep.subr.bf16.mxu0 %v1646_v37 }
  0x23   :  { %1494 = vmatprep.subr.bf16.mxu1 %v1646_v37 }
  0x24   :  { %379 = vmatmul.mubr.bf16.vlgmr.msra.gmra.mxu0 %v140_v43 }
  0x25   :  { %1483 = vmatpush3.bf16.msra.mxu0 %v1578_v41  ;;  %419 = vmatmul.mubr.bf16.vlgmr.msra.gmra.mxu1 %v148_v45 }
  0x26   :  { %1484 = vmatprep.subr.bf16.mxu0 %v1646_v37 }
  0x27   :  { %23 = vsyncpa [#allocation5], 0  ;;  %v1579_v46 = vld [vmem:[%s2083_s4 + $0x10] sm:$0xff]   ;;  %v1580_v47 = vld [vmem:[%s2083_s4 + $0x8] sm:$0xff]   ;;  %vm1647_vm0 = vmmov 0   ;;  %vm467_vm1 = vcmask 523264  }
  0x28   :  { %v1581_v48 = vld [vmem:[%s2083_s4] sm:$0xff]   ;;  %1490 = vmatprep.mubr.msk.bf16.mxu0 %vm1647_vm0, %v1646_v37  ;;  %v1582_v49 = vld [vmem:[%s2085_s6 + $0x38] sm:$0xff]   ;;  %1510 = vmatprep.mubr.msk.bf16.mxu1 %vm1647_vm0, %v1646_v37  ;;  %v1584_v50 = vld [vmem:[%s2085_s6 + $0x30] sm:$0xff]   ;;  %vm1202_vm2 = vcmask 123904   ;;  %vm756_vm3 = vcmask 130048  }
  0x29   :  { %1485 = vmatpush3.bf16.msra.mxu0 %v1579_v46  ;;  %1495 = vmatpush3.bf16.msra.mxu1 %v1582_v49  ;;  %v1586_v51 = vld [vmem:[%s2085_s6 + $0x28] sm:$0xff]   ;;  %v1588_v52 = vld [vmem:[%s2085_s6 + $0x20] sm:$0xff]   ;;  %v1590_v53 = vld [vmem:[%s2085_s6 + $0x18] sm:$0xff]  }
  0x2a   :  { %1486 = vmatprep.subr.bf16.mxu0 %v1646_v37  ;;  %1496 = vmatprep.subr.bf16.mxu1 %v1646_v37  ;;  %v1592_v54 = vld [vmem:[%s2085_s6 + $0x10] sm:$0xff]   ;;  %v1594_v55 = vld [vmem:[%s2085_s6 + $0x8] sm:$0xff]   ;;  %v1312_v58 = vld [vmem:[%s2082_s3] ss:$0 sm:$0xff] }
  0x2b   :  { %v1583_v6 = vld [vmem:[%s2087_s8 + $0x38] sm:$0xff]   ;;  %v1585_v8 = vld [vmem:[%s2087_s8 + $0x30] sm:$0xff]   ;;  %v1587_v9 = vld [vmem:[%s2087_s8 + $0x28] sm:$0xff]  }
  0x2c   :  { %v1589_v10 = vld [vmem:[%s2087_s8 + $0x20] sm:$0xff]   ;;  %v1591_v11 = vld [vmem:[%s2087_s8 + $0x18] sm:$0xff]   ;;  %v1593_v12 = vld [vmem:[%s2087_s8 + $0x10] sm:$0xff]  }
  0x2d   :  { %1487 = vmatpush3.bf16.msra.mxu0 %v1580_v47  ;;  %1497 = vmatpush3.bf16.msra.mxu1 %v1584_v50  ;;  %v1595_v13 = vld [vmem:[%s2087_s8 + $0x8] sm:$0xff]   ;;  %v1596_v14 = vld [vmem:[%s2085_s6] sm:$0xff]  }
  0x2e   :  { %1488 = vmatprep.subr.bf16.mxu0 %v1646_v37  ;;  %1498 = vmatprep.subr.bf16.mxu1 %v1646_v37  ;;  %v1597_v15 = vld [vmem:[%s2087_s8] sm:$0xff]   ;;  %v826_v26 = vld [vmem:[%s2091_s12 + $0xc8] sm:$0xff] }
  0x2f   :  { %v1346_v16 = vld [vmem:[%s2084_s5] ss:$0 sm:$0xff]  ;;  %v830_v29 = vld [vmem:[%s2091_s12 + $0xe8] sm:$0xff] }
  0x30   :  { %v1598_v23 = vld [vmem:[%s2089_s10] sm:$0xff]   ;;  %v1399_v30 = vcombine.low %v826_v26, %v830_v29  ;;  %v1400_v31 = vcombine.high %v826_v26, %v830_v29  ;;  %v818_v32 = vld [vmem:[%s2091_s12 + $0x88] sm:$0xff]  ;;  %v820_v26 = vld [vmem:[%s2091_s12 + $0x98] sm:$0xff] }
  0x31   :  { %1489 = vmatpush3.bf16.msra.mxu0 %v1581_v48  ;;  %1499 = vmatpush3.bf16.msra.mxu1 %v1586_v51  ;;  %v825_v24 = vld [vmem:[%s2091_s12 + $0xc0] sm:$0xff]  ;;  %v822_v33 = vld [vmem:[%s2091_s12 + $0xa8] sm:$0xff] }
  0x32   :  { %1514 = vmatprep.subr.bf16.mxu0 %v1646_v37  ;;  %1500 = vmatprep.subr.bf16.mxu1 %v1646_v37  ;;  %v829_v25 = vld [vmem:[%s2091_s12 + $0xe0] sm:$0xff]  ;;  %v1392_v34 = vcombine.high %v818_v32, %v822_v33  ;;  %v1391_v35 = vcombine.low %v818_v32, %v822_v33  ;;  %v814_v38 = vld [vmem:[%s2091_s12 + $0x68] sm:$0xff]  ;;  %v811_v33 = vld [vmem:[%s2091_s12 + $0x50] sm:$0xff] }
  0x33   :  { %v1397_v27 = vcombine.low %v825_v24, %v829_v25  ;;  %v1398_v28 = vcombine.high %v825_v24, %v829_v25  ;;  %v1352_v42 = vld [vmem:[%s2086_s7] ss:$0 sm:$0xff]  ;;  %v823_v25 = vld [vmem:[%s2091_s12 + $0xb0] sm:$0xff] }
  0x34   :  { %v1361_v43 = vld [vmem:[%s2088_s9] ss:$0 sm:$0xff]  ;;  %s1650_s9 = smov [#allocation4]  }
  0x35   :  { %1501 = vmatpush3.bf16.msra.mxu1 %v1588_v52  ;;  %s1296_s8 = sshll.u32 %s1650_s9, 4  ;;  %s1297_s8 = int_to_ptr.vmem [resolvable:$true] %s1296_s8 }
  0x36   :  { %1502 = vmatprep.subr.bf16.mxu1 %v1646_v37 }
  0x39   :  { %1503 = vmatpush3.bf16.msra.mxu1 %v1590_v53 }
  0x3a   :  { %1504 = vmatprep.subr.bf16.mxu1 %v1646_v37 }
  0x3d   :  { %1505 = vmatpush3.bf16.msra.mxu1 %v1592_v54 }
  0x3e   :  { %1506 = vmatprep.subr.bf16.mxu1 %v1646_v37 }
  0x41   :  { %1507 = vmatpush3.bf16.msra.mxu1 %v1594_v55 }
  0x42   :  { %1508 = vmatprep.subr.bf16.mxu1 %v1646_v37 }
  0x45   :  { %1509 = vmatpush3.bf16.msra.mxu1 %v1596_v14  ;;  %v831_v14 = vld [vmem:[%s2091_s12 + $0xf0] sm:$0xff] }
  0x46   :  { %1534 = vmatprep.subr.bf16.mxu1 %v1646_v37 }
  0xe4   :  { %v1429_v56 = vpop.f32.mrf.mxu0 }
  0xe5   :  { %v1451_v57 = vpop.f32.mrf.mxu1 }
  0xe6   :  { %v1430_v59 = vpop.f32.mrf.mxu0 }
  0xe7   :  { %v1431_v60 = vadd.f32 %v1430_v59, %v1429_v56  ;;  %v1452_v61 = vpop.f32.mrf.mxu1  ;;  %v734_v56 = vld [vmem:[%s2080_s1] sm:$0x3] }
  0xe8   :  { %v1432_v62 = vpop.f32.mrf.mxu0  ;;  %v1453_v0 = vadd.f32 %v1452_v61, %v1451_v57  ;;  %v817_v59 = vld [vmem:[%s2091_s12 + $0x80] sm:$0xff] }
  0xe9   :  { %v381_v63 = vadd.f32 %v1431_v60, %v1312_v58  ;;  %v1454_v1 = vpop.f32.mrf.mxu1  ;;  %v821_v60 = vld [vmem:[%s2091_s12 + $0xa0] sm:$0xff] }
  0xea   :  { %v1433_v2 = vpop.f32.mrf.mxu0  ;;  %v813_v1 = vld [vmem:[%s2091_s12 + $0x60] sm:$0xff] }
  0xeb   :  { %v421_v3 = vadd.f32 %v1453_v0, %v381_v63  ;;  %v1455_v4 = vpop.f32.mrf.mxu1  ;;  %v1390_v63 = vcombine.high %v817_v59, %v821_v60  ;;  %v809_v0 = vld [vmem:[%s2091_s12 + $0x40] sm:$0xff]  ;;  %v1389_v2 = vcombine.low %v817_v59, %v821_v60 }
  0xec   :  { %v1381_v4 = vcombine.low %v809_v0, %v813_v1 }
  0xed   :  { %v426_v5 = vmax.f32 %v421_v3, 0.0  ;;  %v1382_v3 = vcombine.high %v809_v0, %v813_v1 }
  0xef   :  { %v427_v7 = vpack.c.bf16 %v426_v5, %v426_v5  ;;  %v801_v5 = vld [vmem:[%s2091_s12] sm:$0xff] }
  0xf1   :  { %1491 = vmatmul.mubr.msk.bf16.vlgmr.msra.gmra.mxu0 %vm467_vm1, %v427_v7  ;;  %v802_v7 = vld [vmem:[%s2091_s12 + $0x8] sm:$0xff] }
  0xf2   :  { %1515 = vmatpush3.bf16.msra.mxu0 %v1583_v6  ;;  %1530 = vmatprep.mubr.msk.bf16.mxu0 %vm1647_vm0, %v1646_v37  ;;  %v805_v6 = vld [vmem:[%s2091_s12 + $0x20] sm:$0xff] }
  0xf3   :  { %1516 = vmatprep.subr.bf16.mxu0 %v1646_v37 }
  0xf6   :  { %1517 = vmatpush3.bf16.msra.mxu0 %v1585_v8  ;;  %v1374_v8 = vcombine.high %v801_v5, %v805_v6 }
  0xf7   :  { %1518 = vmatprep.subr.bf16.mxu0 %v1646_v37 }
  0xfa   :  { %1519 = vmatpush3.bf16.msra.mxu0 %v1587_v9  ;;  %v806_v9 = vld [vmem:[%s2091_s12 + $0x28] sm:$0xff] }
  0xfb   :  { %1520 = vmatprep.subr.bf16.mxu0 %v1646_v37 }
  0xfe   :  { %1521 = vmatpush3.bf16.msra.mxu0 %v1589_v10  ;;  %v1373_v10 = vcombine.low %v801_v5, %v805_v6 }
  0xff   :  { %1522 = vmatprep.subr.bf16.mxu0 %v1646_v37 }
 0x102   :  { %1523 = vmatpush3.bf16.msra.mxu0 %v1591_v11  ;;  %v1375_v11 = vcombine.low %v802_v7, %v806_v9 }
 0x103   :  { %1524 = vmatprep.subr.bf16.mxu0 %v1646_v37 }
 0x106   :  { %1525 = vmatpush3.bf16.msra.mxu0 %v1593_v12  ;;  %v1376_v12 = vcombine.high %v802_v7, %v806_v9 }
 0x107   :  { %1526 = vmatprep.subr.bf16.mxu0 %v1646_v37 }
 0x10a   :  { %1527 = vmatpush3.bf16.msra.mxu0 %v1595_v13  ;;  %v827_v13 = vld [vmem:[%s2091_s12 + $0xd0] sm:$0xff] }
 0x10b   :  { %1528 = vmatprep.subr.bf16.mxu0 %v1646_v37 }
 0x10e   :  { %1529 = vmatpush3.bf16.msra.mxu0 %v1597_v15  ;;  %v828_v15 = vld [vmem:[%s2091_s12 + $0xd8] sm:$0xff] }
 0x10f   :  { %1087 = vmatprep.subr.bf16.mxu0 %v1400_v31 }
 0x1b1   :  { %v505_v17 = vpop.f32.mrf.mxu0 }
 0x1b2   :  { %v506_v18 = vadd.f32 %v1346_v16, %v505_v17  ;;  %v1401_v16 = vcombine.low %v827_v13, %v831_v14  ;;  %v1402_v17 = vcombine.high %v827_v13, %v831_v14 }
 0x1b3   :  { %v1492_v19 = vpop.f32.mrf.mxu0 }
 0x1b4   :  { %v511_v20 = vpack.c.bf16 %v506_v18, %v506_v18  ;;  %v832_v18 = vld [vmem:[%s2091_s12 + $0xf8] sm:$0xff]  ;;  %v1648_v19 = vmov 0  }
 0x1b5   :  { %v508_v21 = vpop.f32.mrf.mxu0 }
 0x1b6   :  { %1511 = vmatmul.mubr.bf16.vlgmr.msra.gmra.mxu1 %v511_v20  ;;  %1531 = vmatmul.mubr.bf16.vlgmr.msra.gmra.mxu0 %v511_v20  ;;  %v1403_v20 = vcombine.low %v828_v15, %v832_v18  ;;  %v1404_v21 = vcombine.high %v828_v15, %v832_v18 }
 0x1b7   :  { %v1493_v22 = vpop.f32.mrf.mxu0  ;;  %1536 = vmatprep.mubr.msk.bf16.mxu1 %vm1647_vm0, %v1646_v37  ;;  %1535 = vmatpush3.bf16.msra.mxu1 %v1598_v23  ;;  %v810_v37 = vld [vmem:[%s2091_s12 + $0x48] sm:$0xff]  ;;  %v819_v23 = vld [vmem:[%s2091_s12 + $0x90] sm:$0xff] }
 0x1b8   :  { %1046 = vmatprep.subr.bf16.mxu1 %v1398_v28  ;;  %1088 = vmatpush1.bf16.msra.mxu0 %v1399_v30  ;;  %v1384_v39 = vcombine.high %v810_v37, %v814_v38  ;;  %v1383_v41 = vcombine.low %v810_v37, %v814_v38  ;;  %v1370_v22 = vld [vmem:[%s2090_s11] ss:$0 sm:$0xff]  ;;  %v1394_v31 = vcombine.high %v819_v23, %v823_v25  ;;  %v812_v37 = vld [vmem:[%s2091_s12 + $0x58] sm:$0xff] }
 0x1b9   :  { %1089 = vmatprep.subr.bf16.mxu0 %v1392_v34  ;;  %1111 = vmatprep.mubr.bf16.mxu0 %v1648_v19  ;;  %v816_v38 = vld [vmem:[%s2091_s12 + $0x78] sm:$0xff] }
 0x1bc   :  { %1090 = vmatpush1.bf16.msra.mxu0 %v1391_v35  ;;  %v815_v35 = vld [vmem:[%s2091_s12 + $0x70] sm:$0xff] }
 0x1bd   :  { %1091 = vmatprep.subr.bf16.mxu0 %v1384_v39 }
 0x1c0   :  { %1092 = vmatpush1.bf16.msra.mxu0 %v1383_v41  ;;  %v1393_v41 = vcombine.low %v819_v23, %v823_v25 }
 0x1c1   :  { %1093 = vmatprep.subr.bf16.mxu0 %v1376_v12 }
 0x1c4   :  { %1094 = vmatpush1.bf16.msra.mxu0 %v1375_v11 }
 0x1c5   :  { %1169 = vmatprep.subr.bf16.mxu0 %v1404_v21 }
 0x276   :  { %v617_v44 = vpop.f32.mrf.mxu1  ;;  %v728_v45 = vpop.f32.mrf.mxu0 }
 0x277   :  { %v618_v46 = vadd.f32 %v1352_v42, %v617_v44  ;;  %v729_v47 = vadd.f32 %v1361_v43, %v728_v45  ;;  %v1386_v43 = vcombine.high %v811_v33, %v815_v35  ;;  %v1388_v44 = vcombine.high %v812_v37, %v816_v38  ;;  %v803_v45 = vld [vmem:[%s2091_s12 + $0x10] sm:$0xff] }
 0x278   :  { %v1512_v48 = vpop.f32.mrf.mxu1  ;;  %v1532_v49 = vpop.f32.mrf.mxu0 }
 0x279   :  { %v735_v50 = vmul.f32 0.5, %v729_v47  ;;  %1203 = vst.msk [vmem:[#allocation2] sm:$0x3] %vm1202_vm2, %v618_v46  ;;  %1204 = vst.msk [vmem:[#allocation4] sm:$0x3] %vm1202_vm2, %v729_v47  ;;  %v804_v47 = vld [vmem:[%s2091_s12 + $0x18] sm:$0xff]  ;;  %v1385_v49 = vcombine.low %v811_v33, %v815_v35 }
 0x27a   :  { %v620_v51 = vpop.f32.mrf.mxu1  ;;  %v731_v52 = vpop.f32.mrf.mxu0  ;;  %v808_v48 = vld [vmem:[%s2091_s12 + $0x38] sm:$0xff] }
 0x27b   :  { %v736_v53 = vmul.f32 1.442695, %v735_v50  ;;  %v1387_v50 = vcombine.low %v812_v37, %v816_v38  ;;  %v1380_v52 = vcombine.high %v804_v47, %v808_v48 }
 0x27c   :  { %v1513_v54 = vpop.f32.mrf.mxu1  ;;  %v1533_v55 = vpop.f32.mrf.mxu0 }
 0x27d   :  { %1599 = vpow2.f32 %v736_v53  ;;  %v1379_v54 = vcombine.low %v804_v47, %v808_v48 }
 0x28a   :  { %v1600_v57 = vpop.eup %1599 }
 0x28b   :  { %v738_v58 = vmul.f32 %v1600_v57, %v734_v56 }
 0x28d   :  { %v739_v61 = vadd.f32 %v738_v58, %v618_v46  ;;  %v807_v46 = vld [vmem:[%s2091_s12 + $0x30] sm:$0xff] }
 0x28e   :  { %v1378_v51 = vcombine.high %v803_v45, %v807_v46  ;;  %v1377_v53 = vcombine.low %v803_v45, %v807_v46 }
 0x28f   :  { %v740_v62 = vpack.c.bf16 %v739_v61, %v739_v61 }
 0x291   :  { %1537 = vmatmul.mubr.msk.bf16.vlgmr.msra.gmra.mxu1 %vm756_vm3, %v740_v62 }
 0x292   :  { %1047 = vmatpush1.bf16.msra.mxu1 %v1397_v27  ;;  %1070 = vmatprep.mubr.bf16.mxu1 %v1648_v19  ;;  %v824_v27 = vld [vmem:[%s2091_s12 + $0xb8] sm:$0xff]  ;;  %s1649_s12 = smov [#allocation2]  }
 0x293   :  { %1048 = vmatprep.subr.bf16.mxu1 %v1390_v63  ;;  %v1396_v32 = vcombine.high %v820_v26, %v824_v27  ;;  %v1395_v42 = vcombine.low %v820_v26, %v824_v27  ;;  %s1286_s6 = sshll.u32 %s1649_s12, 4  ;;  %s1287_s6 = int_to_ptr.vmem [resolvable:$true] %s1286_s6 }
 0x294   :  { %s1601_s3 = scalar_lea.vmem %s1287_s6, 32  ;;  %p1606_p1 = scmp.lt.s32.totalorder %s1287_s6, %s1287_s6 }
 0x295   :  { %p1602_p0 = scmp.ne.s32.totalorder %s1287_s6, %s1601_s3  ;;  %p1607_p2 = scmp.lt.s32.totalorder %s1601_s3, %s1601_s3 }
 0x296   :  { %1049 = vmatpush1.bf16.msra.mxu1 %v1389_v2 }
 0x297   :  { %1050 = vmatprep.subr.bf16.mxu1 %v1382_v3  ;;  %p1608_p3 = por %p1607_p2, %p1606_p1 }
 0x299   :  { %p1609_p4 = pnand %p1608_p3, %p1602_p0 }
 0x29a   :  { %1051 = vmatpush1.bf16.msra.mxu1 %v1381_v4 }
 0x29b   :  { %1052 = vmatprep.subr.bf16.mxu1 %v1374_v8 }
 0x29e   :  { %1053 = vmatpush1.bf16.msra.mxu1 %v1373_v10 }
 0x29f   :  { %1128 = vmatprep.subr.bf16.mxu1 %v1402_v17 }
 0x351   :  { %v794_v24 = vpop.f32.mrf.mxu1 }
 0x352   :  { %v795_v28 = vadd.f32 %v1370_v22, %v794_v24 }
 0x353   :  { %v1538_v29 = vpop.f32.mrf.mxu1 }
 0x354   :  { %v800_v30 = vpack.c.bf16 %v795_v28, %v795_v28 }
 0x355   :  { %v797_v34 = vpop.f32.mrf.mxu1 }
 0x356   :  { %1405 = vmatmul.mubr.msk.bf16.vlgmr.msra.gmra.mxu1 %vm467_vm1, %v800_v30  ;;  %1406 = vmatmul.mubr.msk.bf16.vlgmr.msra.gmra.mxu0 %vm467_vm1, %v800_v30 }
 0x357   :  { %1129 = vmatpush1.bf16.msra.mxu1 %v1401_v16  ;;  %1170 = vmatpush1.bf16.msra.mxu0 %v1403_v20  ;;  %v1539_v39 = vpop.f32.mrf.mxu1 }
 0x358   :  { %1130 = vmatprep.subr.bf16.mxu1 %v1394_v31  ;;  %1171 = vmatprep.subr.bf16.mxu0 %v1396_v32 }
 0x359   :  { %1152 = vmatprep.mubr.bf16.mxu1 %v1648_v19  ;;  %1193 = vmatprep.mubr.bf16.mxu0 %v1648_v19 }
 0x35b   :  { %1131 = vmatpush1.bf16.msra.mxu1 %v1393_v41  ;;  %1172 = vmatpush1.bf16.msra.mxu0 %v1395_v42 }
 0x35c   :  { %1132 = vmatprep.subr.bf16.mxu1 %v1386_v43  ;;  %1173 = vmatprep.subr.bf16.mxu0 %v1388_v44 }
 0x35f   :  { %1133 = vmatpush1.bf16.msra.mxu1 %v1385_v49  ;;  %1174 = vmatpush1.bf16.msra.mxu0 %v1387_v50 }
 0x360   :  { %1134 = vmatprep.subr.bf16.mxu1 %v1378_v51  ;;  %1175 = vmatprep.subr.bf16.mxu0 %v1380_v52 }
 0x363   :  { %1135 = vmatpush1.bf16.msra.mxu1 %v1377_v53  ;;  %1176 = vmatpush1.bf16.msra.mxu0 %v1379_v54 }
 0x366   :  { %1407 = vmatmul.mubr.msk.bf16.vlgmr.msra.gmra.mxu1 %vm467_vm1, %v800_v30  ;;  %1408 = vmatmul.mubr.msk.bf16.vlgmr.msra.gmra.mxu0 %vm467_vm1, %v800_v30 }
 0x367   :  { %1612 = shalt.err (!%p1609_p4)
}
 0x368   :  { %1289 = dma.vmem_to_hbm [thread:$0]  %s1287_s6, 32, %s2093_s14, [#allocation3]  }
 0x369   :  { %s1621_s22 = scalar_lea.vmem %s1297_s8, 32  ;;  %p1626_p6 = scmp.lt.s32.totalorder %s1297_s8, %s1297_s8 }
 0x36a   :  { %p1622_p5 = scmp.ne.s32.totalorder %s1297_s8, %s1621_s22  ;;  %p1627_p7 = scmp.lt.s32.totalorder %s1621_s22, %s1621_s22 }
 0x36c   :  { %p1628_p8 = por %p1627_p7, %p1626_p6 }
 0x36e   :  { %p1629_p9 = pnand %p1628_p8, %p1622_p5 }
 0x370   :  { %1632 = shalt.err (!%p1629_p9)
}
 0x371   :  { %1299 = dma.vmem_to_hbm [thread:$0]  %s1297_s8, 32, %s2094_s15, [#allocation5]   ;;  %v841_v57 = vsub.s32 1, %v1835_v36  ;;  %v849_v58 = vsub.s32 3, %v1835_v36  ;;  %v837_v59 = vsub.s32 0, %v1835_v36  ;;  %v845_v60 = vsub.s32 2, %v1835_v36 }
 0x372   :  { %v833_v63 = vld [vmem:[%s2092_s13] sm:$0xff]  ;;  %v853_v10 = vsub.s32 4, %v1835_v36  ;;  %v861_v11 = vsub.s32 6, %v1835_v36  ;;  %v857_v14 = vsub.s32 5, %v1835_v36  ;;  %v865_v15 = vsub.s32 7, %v1835_v36 }
 0x373   :  { %v842_v0 = vrot.slane %v833_v63, %v841_v57  ;;  %v850_v1 = vrot.slane %v833_v63, %v849_v58  ;;  %v838_v4 = vrot.slane %v833_v63, %v837_v59  ;;  %v846_v5 = vrot.slane %v833_v63, %v845_v60 }
 0x374   :  { %v854_v18 = vrot.slane %v833_v63, %v853_v10  ;;  %v862_v19 = vrot.slane %v833_v63, %v861_v11  ;;  %v858_v22 = vrot.slane %v833_v63, %v857_v14  ;;  %v866_v23 = vrot.slane %v833_v63, %v865_v15 }
 0x416   :  { %v1072_v55 = vpop.f32.mrf.mxu1  ;;  %v1113_v56 = vpop.f32.mrf.mxu0 }
 0x417   :  { %v1073_v12 = vadd.f32 %v1072_v55, %v838_v4  ;;  %v1114_v13 = vadd.f32 %v1113_v56, %v846_v5 }
 0x418   :  { %v1074_v61 = vpop.f32.mrf.mxu1  ;;  %v1115_v62 = vpop.f32.mrf.mxu0 }
 0x419   :  { %v1075_v8 = vadd.f32 %v1074_v61, %v842_v0  ;;  %v1116_v9 = vadd.f32 %v1115_v62, %v850_v1  ;;  %v1205_v20 = vmax.f32 %v1073_v12, 0.0  ;;  %v1207_v21 = vmax.f32 %v1114_v13, 0.0 }
 0x41a   :  { %v1076_v2 = vpop.f32.mrf.mxu1  ;;  %v1117_v3 = vpop.f32.mrf.mxu0 }
 0x41b   :  { %v1206_v16 = vmax.f32 %v1075_v8, 0.0  ;;  %v1208_v17 = vmax.f32 %v1116_v9, 0.0 }
 0x41c   :  { %v1077_v6 = vpop.f32.mrf.mxu1  ;;  %v1118_v7 = vpop.f32.mrf.mxu0 }
 0x41d   :  { %v1409_v24 = vpack.c.bf16 %v1206_v16, %v1205_v20  ;;  %v1410_v25 = vpack.c.bf16 %v1208_v17, %v1207_v21 }
 0x41f   :  { %v1239_v36 = vrot.slane %v1409_v24, %v1840_v40  ;;  %v1246_v34 = vrot.slane %v1410_v25, %v1840_v40 }
 0x421   :  { %v1261_v47 = vcombine.low %v1239_v36, %v1246_v34 }
 0x423   :  { %v1269_v51 = vrot.slane %v1261_v47, %v1840_v40 }
 0x426   :  { %v1154_v26 = vpop.f32.mrf.mxu1  ;;  %v1195_v27 = vpop.f32.mrf.mxu0 }
 0x427   :  { %v1155_v28 = vadd.f32 %v1154_v26, %v854_v18  ;;  %v1196_v29 = vadd.f32 %v1195_v27, %v862_v19 }
 0x428   :  { %v1156_v30 = vpop.f32.mrf.mxu1  ;;  %v1197_v31 = vpop.f32.mrf.mxu0 }
 0x429   :  { %v1157_v32 = vadd.f32 %v1156_v30, %v858_v22  ;;  %v1198_v33 = vadd.f32 %v1197_v31, %v866_v23  ;;  %v1209_v38 = vmax.f32 %v1155_v28, 0.0  ;;  %v1211_v39 = vmax.f32 %v1196_v29, 0.0 }
 0x42a   :  { %v1158_v35 = vpop.f32.mrf.mxu1  ;;  %v1199_v37 = vpop.f32.mrf.mxu0 }
 0x42b   :  { %v1210_v41 = vmax.f32 %v1157_v32, 0.0  ;;  %v1212_v42 = vmax.f32 %v1198_v33, 0.0 }
 0x42c   :  { %v1159_v43 = vpop.f32.mrf.mxu1  ;;  %v1200_v44 = vpop.f32.mrf.mxu0 }
 0x42d   :  { %v1411_v45 = vpack.c.bf16 %v1210_v41, %v1209_v38  ;;  %v1412_v46 = vpack.c.bf16 %v1212_v42, %v1211_v39 }
 0x42f   :  { %v1253_v48 = vrot.slane %v1411_v45, %v1840_v40  ;;  %v1260_v49 = vrot.slane %v1412_v46, %v1840_v40 }
 0x431   :  { %v1262_v50 = vcombine.low %v1253_v48, %v1260_v49 }
 0x433   :  { %v1276_v52 = vrot.slane %v1262_v50, %v1840_v40 }
 0x435   :  { %v1277_v53 = vcombine.low %v1269_v51, %v1276_v52 }
 0x437   :  { %1279 = vst [vmem:[%s2095_s16] sm:$0xff] %v1277_v53 }
 0x438   :  { %1641 = dma.done.wait [#allocation3], 32  }
 0x439   :  { %1642 = vsyncadd [#allocation3], 4294967264 }
 0x43a   :  { %1643 = dma.done.wait [#allocation5], 32  }
 0x43b   :  { %1644 = vsyncadd [#allocation5], 4294967264 }
 0x43c   :  { %1310 = vsyncpa [#allocation3], 1 }
 0x43d   :  { %1311 = vsyncpa [#allocation5], 1 }

// kernel: conv_vae_forward.11
= control target key start
LH: loop header
LB: loop body
LE: loop exit
PB: predicated region body
PF: predicated region fallthrough
CT: control target
= control target key end

     0   :  { %v25_v0 = vlaneseq  ;;  %v1550_v2 = vmov 0   ;;  %s1551_s14 = smov 97   ;;  %s1552_s15 = smov 100   ;;  %s2270_s0 = inlined_call_operand.vmem [shape: bf16[64,32], index: 0, kind: input, shape index: {}]   ;;  %s2271_s1 = inlined_call_operand.vmem [shape: bf16[128,576], index: 1, kind: input, shape index: {}]   ;;  %s2272_s2 = inlined_call_operand.vmem [shape: f32[128,1], index: 2, kind: input, shape index: {}]   ;;  %s2273_s3 = inlined_call_operand.vmem [shape: bf16[128,32], index: 3, kind: output, shape index: {}]  }
   0x1   :  { %v1590_v1 = vld [vmem:[%s2270_s0 + $0x18] sm:$0xff]   ;;  %1488 = vset.pattern.permute.xlu0 %v1550_v2  ;;  %1489 = vset.pattern.permute.xlu1 %v1550_v2  ;;  %s1553_s16 = smov 1   ;;  %s1554_s17 = smov 4   ;;  %v1626_v10 = vld [vmem:[%s2270_s0 + $0x10] sm:$0xff]   ;;  %v1652_v13 = vld [vmem:[%s2270_s0 + $0x8] sm:$0xff]  }
   0x2   :  { %199 = vrot.lane.b32.xlu1 %v1590_v1, %s1551_s14  ;;  %105 = vrot.lane.b32.xlu0 %v1590_v1, %s1552_s15  ;;  %v26_v3 = vand.u32 127, %v25_v0  ;;  %v91_v6 = vshrl.u32 %v25_v0, 7  ;;  %s1555_s18 = smov 31   ;;  %s1556_s19 = smov 127   ;;  %v1673_v14 = vld [vmem:[%s2270_s0] sm:$0xff]   ;;  %v481_v30 = vld [vmem:[%s2272_s2 + $0x18] sm:$0xff] }
   0x3   :  { %s1557_s20 = smov 28   ;;  %s1558_s21 = smov 124   ;;  %v1496_v22 = vld [vmem:[%s2271_s1 + $0x4] ss:$20 sps:$4 sm:$0xff]   ;;  %v1499_v23 = vld [vmem:[%s2271_s1 + $0xc] ss:$20 sps:$4 sm:$0xff]  }
   0x4   :  { %v28_v4 = vshra.s32 %v26_v3, 2  ;;  %v27_v5 = vand.u32 3, %v26_v3  ;;  %v1617_v9 = vsub.s32 0, %v91_v6  ;;  %s1559_s0 = smov 5   ;;  %s1560_s28 = smov 101   ;;  %831 = vmatprep.mubr.bf16.mxu0 %v1496_v22  ;;  %928 = vmatprep.mubr.bf16.mxu1 %v1499_v23 }
   0x5   :  { %s1561_s29 = smov 3   ;;  %s1562_s30 = smov 99  }
   0x6   :  { %207 = vrot.lane.b32.xlu1 %v1590_v1, %s1553_s16  ;;  %113 = vrot.lane.b32.xlu0 %v1590_v1, %s1554_s17  ;;  %v1602_v7 = vand.u32 3, %v28_v4  ;;  %vm1609_vm1 = vcmp.lt.s32.totalorder %v27_v5, 3  ;;  %vm1675_vm4 = vcmp.ge.s32.totalorder %v27_v5, 1  ;;  %s1563_s4 = smov 29   ;;  %s1564_s5 = smov 125  }
   0x7   :  { %vm228_vm12 = vmpackc.low %vm1675_vm4, %vm1675_vm4  ;;  %s1565_s10 = smov 27   ;;  %s1566_s11 = smov 123  }
   0x8   :  { %vm318_vm0 = vcmp.lt.s32.totalorder %v1602_v7, 3  ;;  %vm83_vm5 = vcmp.ge.s32.totalorder %v1602_v7, 1  ;;  %v229_v24 = vsel %vm228_vm12, 65537, %v1550_v2  ;;  %vm274_vm14 = vmpackc.low %vm1609_vm1, %vm1609_vm1  ;;  %vm301_vm12 = vcmask 236544  }
   0x9   :  { %vm412_vm2 = vmand %vm318_vm0, %vm1609_vm1  ;;  %v233_v26 = vrot.slane %v229_v24, %v1617_v9  ;;  %v275_v35 = vsel %vm274_vm14, 65537, %v1550_v2  ;;  %vm395_vm14 = vcmask 220160  }
   0xa   :  { %253 = vrot.lane.b32.xlu1 %v1590_v1, %s1555_s18  ;;  %245 = vrot.lane.b32.xlu0 %v1590_v1, %s1556_s19  ;;  %vm415_vm3 = vmpackc.low %vm412_vm2, %vm412_vm2  ;;  %vm209_vm2 = vcmask 7168   ;;  %v279_v40 = vrot.slane %v275_v35, %v1617_v9 }
   0xb   :  { %v1629_v11 = vsel %vm415_vm3, 65537, %v1550_v2  ;;  %vm85_vm6 = vmand %vm83_vm5, %vm1675_vm4  ;;  %vm115_vm3 = vcmask 31744  }
   0xc   :  { %v420_v12 = vrot.slane %v1629_v11, %v1617_v9  ;;  %vm88_vm7 = vmpackc.low %vm85_vm6, %vm85_vm6  ;;  %v1502_v11 = vld [vmem:[%s2271_s1 + $0x28] ss:$20 sps:$4 sm:$0xff]  }
   0xd   :  { %v1689_v16 = vsel %vm88_vm7, 65537, %v1550_v2  ;;  %vm179_vm8 = vmand %vm83_vm5, %vm1609_vm1  ;;  %vm349_vm1 = vcmask 228352   ;;  %vm1806_vm7 = vcmp.ne.s16.totalorder %v279_v40, 0 }
   0xe   :  { %347 = vrot.lane.b32.xlu1 %v1590_v1, %s1557_s20  ;;  %339 = vrot.lane.b32.xlu0 %v1590_v1, %s1558_s21  ;;  %v93_v17 = vrot.slane %v1689_v16, %v1617_v9  ;;  %vm182_vm9 = vmpackc.low %vm179_vm8, %vm179_vm8  ;;  %vm66_vm8 = vcmask 39936  }
   0xf   :  { %v1702_v18 = vsel %vm182_vm9, 65537, %v1550_v2  ;;  %vm319_vm10 = vmand %vm318_vm0, %vm1675_vm4  ;;  %vm1777_vm4 = vcmp.ne.s16.totalorder %v233_v26, 0  ;;  %vm161_vm9 = vcmask 23552  }
  0x10   :  { %v187_v19 = vrot.slane %v1702_v18, %v1617_v9  ;;  %vm322_vm11 = vmpackc.low %vm319_vm10, %vm319_vm10 }
  0x11   :  { %v1715_v20 = vsel %vm322_vm11, 65537, %v1550_v2  ;;  %vm134_vm13 = vmpackc.low %vm83_vm5, %vm83_vm5  ;;  %vm1885_vm11 = vcmp.ne.s16.totalorder %v93_v17, 0 }
  0x12   :  { %111 = vrot.lane.b32.xlu1 %v1626_v10, %s1554_s17  ;;  %103 = vrot.lane.b32.xlu0 %v1626_v10, %s1552_s15  ;;  %v327_v21 = vrot.slane %v1715_v20, %v1617_v9  ;;  %v135_v25 = vsel %vm134_vm13, 65537, %v1550_v2  ;;  %vm368_vm15 = vmpackc.low %vm318_vm0, %vm318_vm0  ;;  %vm255_vm0 = vcmask 252928   ;;  %vm1878_vm10 = vcmp.ne.s16.totalorder %v187_v19, 0  ;;  %v487_v19 = vld [vmem:[%s2272_s2 + $0x48] sm:$0xff] }
  0x13   :  { %v139_v27 = vrot.slane %v135_v25, %v1617_v9  ;;  %v369_v34 = vsel %vm368_vm15, 65537, %v1550_v2  ;;  %vm1973_vm15 = vcmp.ne.s16.totalorder %v420_v12, 0  ;;  %v1506_v12 = vld [vmem:[%s2271_s1 + $0x54] ss:$20 sps:$4 sm:$0xff]  }
  0x14   :  { %v373_v39 = vrot.slane %v369_v34, %v1617_v9  ;;  %vm1903_vm13 = vcmp.ne.s16.totalorder %v327_v21, 0 }
  0x15   :  { %vm1781_vm5 = vcmp.ne.s16.totalorder %v139_v27, 0 }
  0x16   :  { %205 = vrot.lane.b32.xlu1 %v1626_v10, %s1553_s16  ;;  %197 = vrot.lane.b32.xlu0 %v1626_v10, %s1551_s14  ;;  %vm1801_vm6 = vcmp.ne.s16.totalorder %v373_v39, 0  ;;  %v479_v39 = vld [vmem:[%s2272_s2 + $0x8] sm:$0xff] }
  0x1a   :  { %251 = vrot.lane.b32.xlu1 %v1626_v10, %s1555_s18  ;;  %243 = vrot.lane.b32.xlu0 %v1626_v10, %s1556_s19 }
  0x1e   :  { %345 = vrot.lane.b32.xlu1 %v1626_v10, %s1557_s20  ;;  %337 = vrot.lane.b32.xlu0 %v1626_v10, %s1558_s21 }
  0x22   :  { %109 = vrot.lane.b32.xlu1 %v1652_v13, %s1554_s17  ;;  %101 = vrot.lane.b32.xlu0 %v1652_v13, %s1552_s15 }
  0x26   :  { %203 = vrot.lane.b32.xlu1 %v1652_v13, %s1553_s16  ;;  %195 = vrot.lane.b32.xlu0 %v1652_v13, %s1551_s14 }
  0x2a   :  { %249 = vrot.lane.b32.xlu1 %v1652_v13, %s1555_s18  ;;  %241 = vrot.lane.b32.xlu0 %v1652_v13, %s1556_s19 }
  0x2e   :  { %343 = vrot.lane.b32.xlu1 %v1652_v13, %s1557_s20  ;;  %335 = vrot.lane.b32.xlu0 %v1652_v13, %s1558_s21 }
  0x32   :  { %107 = vrot.lane.b32.xlu1 %v1673_v14, %s1554_s17  ;;  %99 = vrot.lane.b32.xlu0 %v1673_v14, %s1552_s15 }
  0x36   :  { %201 = vrot.lane.b32.xlu1 %v1673_v14, %s1553_s16  ;;  %193 = vrot.lane.b32.xlu0 %v1673_v14, %s1551_s14 }
  0x3a   :  { %247 = vrot.lane.b32.xlu1 %v1673_v14, %s1555_s18  ;;  %239 = vrot.lane.b32.xlu0 %v1673_v14, %s1556_s19 }
  0x3e   :  { %341 = vrot.lane.b32.xlu1 %v1673_v14, %s1557_s20  ;;  %333 = vrot.lane.b32.xlu0 %v1673_v14, %s1558_s21 }
  0x42   :  { %64 = vrot.lane.b32.xlu1 %v1590_v1, %s1559_s0  ;;  %56 = vrot.lane.b32.xlu0 %v1590_v1, %s1560_s28 }
  0x46   :  { %159 = vrot.lane.b32.xlu1 %v1590_v1, %s1561_s29  ;;  %151 = vrot.lane.b32.xlu0 %v1590_v1, %s1562_s30 }
  0x4a   :  { %299 = vrot.lane.b32.xlu1 %v1590_v1, %s1563_s4  ;;  %291 = vrot.lane.b32.xlu0 %v1590_v1, %s1564_s5 }
  0x4e   :  { %62 = vrot.lane.b32.xlu1 %v1626_v10, %s1559_s0  ;;  %54 = vrot.lane.b32.xlu0 %v1626_v10, %s1560_s28 }
  0x52   :  { %157 = vrot.lane.b32.xlu1 %v1626_v10, %s1561_s29  ;;  %149 = vrot.lane.b32.xlu0 %v1626_v10, %s1562_s30 }
  0x56   :  { %297 = vrot.lane.b32.xlu1 %v1626_v10, %s1563_s4  ;;  %289 = vrot.lane.b32.xlu0 %v1626_v10, %s1564_s5 }
  0x5a   :  { %60 = vrot.lane.b32.xlu1 %v1652_v13, %s1559_s0  ;;  %52 = vrot.lane.b32.xlu0 %v1652_v13, %s1560_s28 }
  0x5e   :  { %155 = vrot.lane.b32.xlu1 %v1652_v13, %s1561_s29  ;;  %147 = vrot.lane.b32.xlu0 %v1652_v13, %s1562_s30 }
  0x62   :  { %295 = vrot.lane.b32.xlu1 %v1652_v13, %s1563_s4  ;;  %287 = vrot.lane.b32.xlu0 %v1652_v13, %s1564_s5 }
  0x66   :  { %58 = vrot.lane.b32.xlu1 %v1673_v14, %s1559_s0  ;;  %50 = vrot.lane.b32.xlu0 %v1673_v14, %s1560_s28 }
  0x6a   :  { %153 = vrot.lane.b32.xlu1 %v1673_v14, %s1561_s29  ;;  %145 = vrot.lane.b32.xlu0 %v1673_v14, %s1562_s30 }
  0x6e   :  { %293 = vrot.lane.b32.xlu1 %v1673_v14, %s1563_s4  ;;  %285 = vrot.lane.b32.xlu0 %v1673_v14, %s1564_s5 }
  0x72   :  { %393 = vrot.lane.b32.xlu1 %v1590_v1, %s1565_s10  ;;  %385 = vrot.lane.b32.xlu0 %v1590_v1, %s1566_s11 }
  0x74   :  { %v200_v28 = vpop.permute.xlu1 %199  ;;  %v106_v29 = vpop.permute.xlu0 %105 }
  0x76   :  { %391 = vrot.lane.b32.xlu1 %v1626_v10, %s1565_s10  ;;  %383 = vrot.lane.b32.xlu0 %v1626_v10, %s1566_s11 }
  0x78   :  { %v208_v32 = vpop.permute.xlu1 %207  ;;  %v114_v33 = vpop.permute.xlu0 %113 }
  0x79   :  { %v224_v36 = vsel %vm209_vm2, %v200_v28, %v208_v32  ;;  %v130_v37 = vsel %vm115_vm3, %v106_v29, %v114_v33 }
  0x7a   :  { %1447 = vmatprep.subr.msk.bf16.mxu0 %vm1777_vm4, %v224_v36  ;;  %v144_v38 = vsel %vm1781_vm5, %v130_v37, 0  ;;  %389 = vrot.lane.b32.xlu1 %v1652_v13, %s1565_s10  ;;  %v478_v36 = vld [vmem:[%s2272_s2] sm:$0xff] }
  0x7b   :  { %1276 = vmatpush3.bf16.msra.mxu0 %v144_v38  ;;  %381 = vrot.lane.b32.xlu0 %v1652_v13, %s1566_s11 }
  0x7c   :  { %v254_v41 = vpop.permute.xlu1 %253  ;;  %v246_v42 = vpop.permute.xlu0 %245 }
  0x7d   :  { %v270_v44 = vsel %vm255_vm0, %v246_v42, %v254_v41  ;;  %v480_v42 = vld [vmem:[%s2272_s2 + $0x10] sm:$0xff] }
  0x7e   :  { %387 = vrot.lane.b32.xlu1 %v1673_v14, %s1565_s10  ;;  %v284_v49 = vsel %vm1806_vm7, %v270_v44, 0 }
  0x7f   :  { %379 = vrot.lane.b32.xlu0 %v1673_v14, %s1566_s11 }
  0x80   :  { %v348_v46 = vpop.permute.xlu1 %347  ;;  %v340_v47 = vpop.permute.xlu0 %339 }
  0x81   :  { %v364_v48 = vsel %vm349_vm1, %v340_v47, %v348_v46  ;;  %v483_v46 = vld [vmem:[%s2272_s2 + $0x28] sm:$0xff] }
  0x82   :  { %1455 = vmatprep.subr.msk.bf16.mxu1 %vm1801_vm6, %v364_v48  ;;  %501 = vperm.xlu1 %1489, %v479_v39  }
  0x83   :  { %1340 = vmatpush3.bf16.msra.mxu1 %v284_v49  ;;  %496 = vperm.xlu0 %1488, %v478_v36  }
  0x84   :  { %v112_v50 = vpop.permute.xlu1 %111  ;;  %v104_v51 = vpop.permute.xlu0 %103 }
  0x85   :  { %v126_v52 = vsel %vm115_vm3, %v104_v51, %v112_v50  ;;  %v482_v50 = vld [vmem:[%s2272_s2 + $0x20] sm:$0xff]  ;;  %v485_v51 = vld [vmem:[%s2272_s2 + $0x38] sm:$0xff] }
  0x86   :  { %v143_v56 = vsel %vm1781_vm5, %v126_v52, 0  ;;  %506 = vperm.xlu1 %1489, %v480_v42   ;;  %v1497_v42 = vld [vmem:[%s2271_s1 + $0x8] ss:$20 sps:$4 sm:$0xff]  }
  0x87   :  { %511 = vperm.xlu0 %1488, %v481_v30   ;;  %v1494_v30 = vld [vmem:[%s2271_s1] ss:$20 sps:$4 sm:$0xff]   ;;  %v1509_v52 = vld [vmem:[%s2271_s1 + $0x5c] ss:$20 sps:$4 sm:$0xff]  }
  0x88   :  { %v206_v53 = vpop.permute.xlu1 %205  ;;  %v198_v54 = vpop.permute.xlu0 %197 }
  0x89   :  { %v220_v55 = vsel %vm209_vm2, %v198_v54, %v206_v53 }
  0x8a   :  { %1448 = vmatprep.subr.msk.bf16.mxu0 %vm1777_vm4, %v220_v55  ;;  %516 = vperm.xlu1 %1489, %v482_v50   ;;  %v484_v55 = vld [vmem:[%s2272_s2 + $0x30] sm:$0xff] }
  0x8b   :  { %1278 = vmatpush3.bf16.msra.mxu0 %v143_v56  ;;  %521 = vperm.xlu0 %1488, %v483_v46  }
  0x8c   :  { %v252_v57 = vpop.permute.xlu1 %251  ;;  %v244_v58 = vpop.permute.xlu0 %243 }
  0x8d   :  { %v266_v59 = vsel %vm255_vm0, %v244_v58, %v252_v57  ;;  %v486_v58 = vld [vmem:[%s2272_s2 + $0x40] sm:$0xff] }
  0x8e   :  { %v283_v63 = vsel %vm1806_vm7, %v266_v59, 0  ;;  %526 = vperm.xlu1 %1489, %v484_v55   ;;  %v1508_v55 = vld [vmem:[%s2271_s1 + $0x50] ss:$20 sps:$4 sm:$0xff]  }
  0x8f   :  { %531 = vperm.xlu0 %1488, %v485_v51  }
  0x90   :  { %v346_v60 = vpop.permute.xlu1 %345  ;;  %v338_v61 = vpop.permute.xlu0 %337 }
  0x91   :  { %v360_v62 = vsel %vm349_vm1, %v338_v61, %v346_v60  ;;  %v489_v60 = vld [vmem:[%s2272_s2 + $0x58] sm:$0xff]  ;;  %v488_v61 = vld [vmem:[%s2272_s2 + $0x50] sm:$0xff] }
  0x92   :  { %1456 = vmatprep.subr.msk.bf16.mxu1 %vm1801_vm6, %v360_v62  ;;  %536 = vperm.xlu1 %1489, %v486_v58   ;;  %v491_v62 = vld [vmem:[%s2272_s2 + $0x68] sm:$0xff] }
  0x93   :  { %1342 = vmatpush3.bf16.msra.mxu1 %v283_v63  ;;  %541 = vperm.xlu0 %1488, %v487_v19   ;;  %v1512_v19 = vld [vmem:[%s2271_s1 + $0x7c] ss:$20 sps:$4 sm:$0xff]  }
  0x94   :  { %v110_v0 = vpop.permute.xlu1 %109  ;;  %v102_v2 = vpop.permute.xlu0 %101 }
  0x95   :  { %v122_v3 = vsel %vm115_vm3, %v102_v2, %v110_v0 }
  0x96   :  { %v142_v7 = vsel %vm1781_vm5, %v122_v3, 0  ;;  %546 = vperm.xlu1 %1489, %v488_v61   ;;  %v1517_v61 = vld [vmem:[%s2271_s1 + $0x80] ss:$20 sps:$4 sm:$0xff]  }
  0x97   :  { %551 = vperm.xlu0 %1488, %v489_v60  }
  0x98   :  { %v204_v4 = vpop.permute.xlu1 %203  ;;  %v196_v5 = vpop.permute.xlu0 %195 }
  0x99   :  { %v216_v6 = vsel %vm209_vm2, %v196_v5, %v204_v4  ;;  %v493_v4 = vld [vmem:[%s2272_s2 + $0x78] sm:$0xff] }
  0x9a   :  { %1449 = vmatprep.subr.msk.bf16.mxu0 %vm1777_vm4, %v216_v6 }
  0x9b   :  { %1280 = vmatpush3.bf16.msra.mxu0 %v142_v7  ;;  %561 = vperm.xlu0 %1488, %v491_v62   ;;  %v1521_v62 = vld [vmem:[%s2271_s1 + $0xac] ss:$20 sps:$4 sm:$0xff]  }
  0x9c   :  { %v250_v8 = vpop.permute.xlu1 %249  ;;  %v242_v15 = vpop.permute.xlu0 %241 }
  0x9d   :  { %v262_v22 = vsel %vm255_vm0, %v242_v15, %v250_v8  ;;  %v492_v8 = vld [vmem:[%s2272_s2 + $0x70] sm:$0xff] }
  0x9e   :  { %v282_v26 = vsel %vm1806_vm7, %v262_v22, 0 }
  0x9f   :  { %571 = vperm.xlu0 %1488, %v493_v4   ;;  %v1530_v4 = vld [vmem:[%s2271_s1 + $0xf4] ss:$20 sps:$4 sm:$0xff]  }
  0xa0   :  { %v344_v23 = vpop.permute.xlu1 %343  ;;  %v336_v24 = vpop.permute.xlu0 %335 }
  0xa1   :  { %v356_v25 = vsel %vm349_vm1, %v336_v24, %v344_v23 }
  0xa2   :  { %1457 = vmatprep.subr.msk.bf16.mxu1 %vm1801_vm6, %v356_v25 }
  0xa3   :  { %1344 = vmatpush3.bf16.msra.mxu1 %v282_v26 }
  0xa4   :  { %v108_v27 = vpop.permute.xlu1 %107  ;;  %v100_v28 = vpop.permute.xlu0 %99 }
  0xa5   :  { %v118_v29 = vsel %vm115_vm3, %v100_v28, %v108_v27  ;;  %vm1170_vm3 = vcmask 257024  }
  0xa6   :  { %v141_v35 = vsel %vm1781_vm5, %v118_v29, 0 }
  0xa8   :  { %v202_v32 = vpop.permute.xlu1 %201  ;;  %v194_v33 = vpop.permute.xlu0 %193 }
  0xa9   :  { %v212_v34 = vsel %vm209_vm2, %v194_v33, %v202_v32  ;;  %vm774_vm2 = vcmask 523264  }
  0xaa   :  { %1450 = vmatprep.subr.msk.bf16.mxu0 %vm1777_vm4, %v212_v34 }
  0xab   :  { %1282 = vmatpush3.bf16.msra.mxu0 %v141_v35 }
  0xac   :  { %v248_v37 = vpop.permute.xlu1 %247  ;;  %v240_v38 = vpop.permute.xlu0 %239 }
  0xad   :  { %v258_v40 = vsel %vm255_vm0, %v240_v38, %v248_v37 }
  0xae   :  { %v281_v47 = vsel %vm1806_vm7, %v258_v40, 0 }
  0xb0   :  { %v342_v31 = vpop.permute.xlu1 %341  ;;  %v334_v41 = vpop.permute.xlu0 %333 }
  0xb1   :  { %v352_v44 = vsel %vm349_vm1, %v334_v41, %v342_v31 }
  0xb2   :  { %1458 = vmatprep.subr.msk.bf16.mxu1 %vm1801_vm6, %v352_v44 }
  0xb3   :  { %1346 = vmatpush3.bf16.msra.mxu1 %v281_v47 }
  0xb4   :  { %v65_v48 = vpop.permute.xlu1 %64  ;;  %v57_v49 = vpop.permute.xlu0 %56 }
  0xb5   :  { %v81_v43 = vsel %vm66_vm8, %v57_v49, %v65_v48  ;;  %v1503_v48 = vld [vmem:[%s2271_s1 + $0x34] ss:$20 sps:$4 sm:$0xff]  }
  0xb6   :  { %v98_v16 = vsel %vm1885_vm11, %v81_v43, 0  ;;  %v1505_v43 = vld [vmem:[%s2271_s1 + $0x30] ss:$20 sps:$4 sm:$0xff]  }
  0xb8   :  { %v160_v53 = vpop.permute.xlu1 %159  ;;  %v152_v54 = vpop.permute.xlu0 %151 }
  0xb9   :  { %v176_v18 = vsel %vm161_vm9, %v152_v54, %v160_v53 }
  0xba   :  { %1451 = vmatprep.subr.msk.bf16.mxu0 %vm1878_vm10, %v176_v18 }
  0xbb   :  { %1284 = vmatpush3.bf16.msra.mxu0 %v98_v16 }
  0xbc   :  { %v300_v56 = vpop.permute.xlu1 %299  ;;  %v292_v57 = vpop.permute.xlu0 %291 }
  0xbd   :  { %v316_v59 = vsel %vm301_vm12, %v292_v57, %v300_v56  ;;  %v1511_v57 = vld [vmem:[%s2271_s1 + $0x58] ss:$20 sps:$4 sm:$0xff]  }
  0xbe   :  { %1459 = vmatprep.subr.msk.bf16.mxu1 %vm1903_vm13, %v316_v59  ;;  %v1515_v59 = vld [vmem:[%s2271_s1 + $0x84] ss:$20 sps:$4 sm:$0xff]  }
  0xbf   :  { %1348 = vmatpush3.bf16.msra.mxu1 %v1590_v1  ;;  %v490_v1 = vld [vmem:[%s2272_s2 + $0x60] sm:$0xff] }
  0xc0   :  { %v63_v20 = vpop.permute.xlu1 %62  ;;  %v55_v21 = vpop.permute.xlu0 %54  ;;  %556 = vperm.xlu1 %1489, %v490_v1   ;;  %v1527_v1 = vld [vmem:[%s2271_s1 + $0xd4] ss:$20 sps:$4 sm:$0xff]  }
  0xc1   :  { %v77_v63 = vsel %vm66_vm8, %v55_v21, %v63_v20  ;;  %v1514_v20 = vld [vmem:[%s2271_s1 + $0x78] ss:$20 sps:$4 sm:$0xff]  }
  0xc2   :  { %v97_v5 = vsel %vm1885_vm11, %v77_v63, 0  ;;  %v1518_v21 = vld [vmem:[%s2271_s1 + $0xa4] ss:$20 sps:$4 sm:$0xff]   ;;  %v1520_v63 = vld [vmem:[%s2271_s1 + $0xa0] ss:$20 sps:$4 sm:$0xff]  }
  0xc4   :  { %v158_v0 = vpop.permute.xlu1 %157  ;;  %v150_v2 = vpop.permute.xlu0 %149  ;;  %566 = vperm.xlu1 %1489, %v492_v8   ;;  %v1536_v8 = vld [vmem:[%s2271_s1 + $0x11c] ss:$20 sps:$4 sm:$0xff]  }
  0xc5   :  { %v172_v3 = vsel %vm161_vm9, %v150_v2, %v158_v0  ;;  %v1524_v0 = vld [vmem:[%s2271_s1 + $0xcc] ss:$20 sps:$4 sm:$0xff]   ;;  %v1523_v2 = vld [vmem:[%s2271_s1 + $0xa8] ss:$20 sps:$4 sm:$0xff]  }
  0xc6   :  { %1452 = vmatprep.subr.msk.bf16.mxu0 %vm1878_vm10, %v172_v3  ;;  %v1526_v3 = vld [vmem:[%s2271_s1 + $0xc8] ss:$20 sps:$4 sm:$0xff]  }
  0xc7   :  { %1286 = vmatpush3.bf16.msra.mxu0 %v97_v5  ;;  %v1529_v5 = vld [vmem:[%s2271_s1 + $0xd0] ss:$20 sps:$4 sm:$0xff]  }
  0xc8   :  { %v298_v6 = vpop.permute.xlu1 %297  ;;  %v290_v7 = vpop.permute.xlu0 %289 }
  0xc9   :  { %v312_v15 = vsel %vm301_vm12, %v290_v7, %v298_v6  ;;  %v1533_v6 = vld [vmem:[%s2271_s1 + $0xfc] ss:$20 sps:$4 sm:$0xff]  }
  0xca   :  { %1460 = vmatprep.subr.msk.bf16.mxu1 %vm1903_vm13, %v312_v15  ;;  %v1532_v7 = vld [vmem:[%s2271_s1 + $0xf0] ss:$20 sps:$4 sm:$0xff]   ;;  %v1535_v15 = vld [vmem:[%s2271_s1 + $0xf8] ss:$20 sps:$4 sm:$0xff]  }
  0xcb   :  { %1350 = vmatpush3.bf16.msra.mxu1 %v1626_v10 }
  0xcc   :  { %v61_v22 = vpop.permute.xlu1 %60  ;;  %v53_v23 = vpop.permute.xlu0 %52 }
  0xcd   :  { %v73_v24 = vsel %vm66_vm8, %v53_v23, %v61_v22  ;;  %v1539_v22 = vld [vmem:[%s2271_s1 + $0x124] ss:$20 sps:$4 sm:$0xff]  }
  0xce   :  { %v96_v28 = vsel %vm1885_vm11, %v73_v24, 0  ;;  %v1538_v23 = vld [vmem:[%s2271_s1 + $0x118] ss:$20 sps:$4 sm:$0xff]   ;;  %v1542_v24 = vld [vmem:[%s2271_s1 + $0x10] ss:$20 sps:$4 sm:$0xff]  }
  0xd0   :  { %v156_v25 = vpop.permute.xlu1 %155  ;;  %v148_v26 = vpop.permute.xlu0 %147 }
  0xd1   :  { %v168_v27 = vsel %vm161_vm9, %v148_v26, %v156_v25  ;;  %v1541_v25 = vld [vmem:[%s2271_s1 + $0x120] ss:$20 sps:$4 sm:$0xff]   ;;  %v1544_v26 = vld [vmem:[%s2271_s1 + $0xb0] ss:$20 sps:$4 sm:$0xff]  }
  0xd2   :  { %1453 = vmatprep.subr.msk.bf16.mxu0 %vm1878_vm10, %v168_v27  ;;  %v1543_v27 = vld [vmem:[%s2271_s1 + $0x38] ss:$20 sps:$4 sm:$0xff]  }
  0xd3   :  { %1288 = vmatpush3.bf16.msra.mxu0 %v96_v28  ;;  %v1546_v28 = vld [vmem:[%s2271_s1 + $0x60] ss:$20 sps:$4 sm:$0xff]  }
  0xd4   :  { %v296_v29 = vpop.permute.xlu1 %295  ;;  %v288_v32 = vpop.permute.xlu0 %287 }
  0xd5   :  { %v308_v10 = vsel %vm301_vm12, %v288_v32, %v296_v29  ;;  %v1545_v29 = vld [vmem:[%s2271_s1 + $0xd8] ss:$20 sps:$4 sm:$0xff]   ;;  %v1548_v32 = vld [vmem:[%s2271_s1 + $0x100] ss:$20 sps:$4 sm:$0xff]  }
  0xd6   :  { %1461 = vmatprep.subr.msk.bf16.mxu1 %vm1903_vm13, %v308_v10  ;;  %v1547_v10 = vld [vmem:[%s2271_s1 + $0x88] ss:$20 sps:$4 sm:$0xff]  }
  0xd7   :  { %1352 = vmatpush3.bf16.msra.mxu1 %v1652_v13  ;;  %v1500_v13 = vld [vmem:[%s2271_s1 + $0x2c] ss:$20 sps:$4 sm:$0xff]  }
  0xd8   :  { %v59_v33 = vpop.permute.xlu1 %58  ;;  %v51_v34 = vpop.permute.xlu0 %50 }
  0xd9   :  { %v69_v35 = vsel %vm66_vm8, %v51_v34, %v59_v33  ;;  %v1549_v33 = vld [vmem:[%s2271_s1 + $0x128] ss:$20 sps:$4 sm:$0xff]  }
  0xda   :  { %v95_v39 = vsel %vm1885_vm11, %v69_v35, 0 }
  0xdc   :  { %v154_v36 = vpop.permute.xlu1 %153  ;;  %v146_v37 = vpop.permute.xlu0 %145 }
  0xdd   :  { %v164_v38 = vsel %vm161_vm9, %v146_v37, %v154_v36 }
  0xde   :  { %1454 = vmatprep.subr.msk.bf16.mxu0 %vm1878_vm10, %v164_v38 }
  0xdf   :  { %1290 = vmatpush3.bf16.msra.mxu0 %v95_v39 }
  0xe0   :  { %v294_v40 = vpop.permute.xlu1 %293  ;;  %v286_v31 = vpop.permute.xlu0 %285 }
  0xe1   :  { %v304_v41 = vsel %vm301_vm12, %v286_v31, %v294_v40 }
  0xe2   :  { %832 = vmatmul.mubr.bf16.vlgmr.msra.gmra.mxu0 %v1494_v30  ;;  %1462 = vmatprep.subr.msk.bf16.mxu1 %vm1903_vm13, %v304_v41 }
  0xe3   :  { %1354 = vmatpush3.bf16.msra.mxu1 %v1673_v14  ;;  %839 = vmatprep.mubr.bf16.mxu0 %v1500_v13 }
  0xe4   :  { %v394_v46 = vpop.permute.xlu1 %393  ;;  %v386_v47 = vpop.permute.xlu0 %385 }
  0xe5   :  { %v410_v49 = vsel %vm395_vm14, %v386_v47, %v394_v46 }
  0xe6   :  { %929 = vmatmul.mubr.bf16.vlgmr.msra.gmra.mxu1 %v1497_v42  ;;  %1463 = vmatprep.subr.msk.bf16.mxu0 %vm1973_vm15, %v410_v49  ;;  %v425_v9 = vsel %vm1973_vm15, %v410_v49, 0 }
  0xe7   :  { %1464 = vmatprep.subr.msk.bf16.mxu1 %vm1973_vm15, %v410_v49  ;;  %1416 = vmatpush3.bf16.msra.mxu0 %v425_v9 }
  0xe8   :  { %1443 = vmatpush3.bf16.msra.mxu1 %v425_v9  ;;  %936 = vmatprep.mubr.bf16.mxu1 %v1503_v48  ;;  %v392_v14 = vpop.permute.xlu1 %391  ;;  %v384_v50 = vpop.permute.xlu0 %383 }
  0xe9   :  { %v406_v51 = vsel %vm395_vm14, %v384_v50, %v392_v14 }
  0xea   :  { %840 = vmatmul.mubr.bf16.gmra.mxu0 %v1502_v11  ;;  %1465 = vmatprep.subr.msk.bf16.mxu0 %vm1973_vm15, %v406_v51  ;;  %v424_v45 = vsel %vm1973_vm15, %v406_v51, 0 }
  0xeb   :  { %847 = vmatprep.mubr.bf16.mxu0 %v1506_v12  ;;  %1466 = vmatprep.subr.msk.bf16.mxu1 %vm1973_vm15, %v406_v51 }
  0xec   :  { %1418 = vmatpush3.bf16.msra.mxu0 %v424_v45  ;;  %1444 = vmatpush3.bf16.msra.mxu1 %v424_v45  ;;  %v390_v53 = vpop.permute.xlu1 %389 }
  0xed   :  { %v382_v54 = vpop.permute.xlu0 %381 }
  0xee   :  { %937 = vmatmul.mubr.bf16.gmra.mxu1 %v1505_v43  ;;  %v402_v18 = vsel %vm395_vm14, %v382_v54, %v390_v53 }
  0xef   :  { %944 = vmatprep.mubr.bf16.mxu1 %v1509_v52  ;;  %1467 = vmatprep.subr.msk.bf16.mxu0 %vm1973_vm15, %v402_v18  ;;  %v423_v16 = vsel %vm1973_vm15, %v402_v18, 0 }
  0xf0   :  { %1468 = vmatprep.subr.msk.bf16.mxu1 %vm1973_vm15, %v402_v18  ;;  %1420 = vmatpush3.bf16.msra.mxu0 %v423_v16  ;;  %v388_v17 = vpop.permute.xlu1 %387 }
  0xf1   :  { %1445 = vmatpush3.bf16.msra.mxu1 %v423_v16  ;;  %v380_v56 = vpop.permute.xlu0 %379 }
  0xf2   :  { %848 = vmatmul.mubr.bf16.gmra.mxu0 %v1508_v55  ;;  %v398_v58 = vsel %vm395_vm14, %v380_v56, %v388_v17 }
  0xf3   :  { %855 = vmatprep.mubr.bf16.mxu0 %v1512_v19  ;;  %1469 = vmatprep.subr.msk.bf16.mxu0 %vm1973_vm15, %v398_v58  ;;  %v422_v60 = vsel %vm1973_vm15, %v398_v58, 0 }
  0xf4   :  { %1470 = vmatprep.subr.msk.bf16.mxu1 %vm1973_vm15, %v398_v58  ;;  %1422 = vmatpush3.bf16.msra.mxu0 %v422_v60 }
  0xf5   :  { %1446 = vmatpush3.bf16.msra.mxu1 %v422_v60 }
  0xf6   :  { %945 = vmatmul.mubr.bf16.gmra.mxu1 %v1511_v57 }
  0xf7   :  { %952 = vmatprep.mubr.bf16.mxu1 %v1515_v59 }
  0xfa   :  { %856 = vmatmul.mubr.bf16.gmra.mxu0 %v1514_v20 }
  0xfb   :  { %863 = vmatprep.mubr.bf16.mxu0 %v1518_v21 }
  0xfd   :  { %v502_v20 = vpop.permute.xlu1 %501 }
  0xfe   :  { %953 = vmatmul.mubr.bf16.gmra.mxu1 %v1517_v61 }
  0xff   :  { %960 = vmatprep.mubr.bf16.mxu1 %v1521_v62  ;;  %v497_v62 = vpop.permute.xlu0 %496 }
 0x102   :  { %864 = vmatmul.mubr.bf16.gmra.mxu0 %v1520_v63 }
 0x103   :  { %871 = vmatprep.mubr.bf16.mxu0 %v1524_v0 }
 0x106   :  { %961 = vmatmul.mubr.bf16.gmra.mxu1 %v1523_v2  ;;  %v507_v2 = vpop.permute.xlu1 %506 }
 0x107   :  { %968 = vmatprep.mubr.bf16.mxu1 %v1527_v1 }
 0x10a   :  { %872 = vmatmul.mubr.bf16.gmra.mxu0 %v1526_v3 }
 0x10b   :  { %879 = vmatprep.mubr.bf16.mxu0 %v1530_v4  ;;  %v512_v4 = vpop.permute.xlu0 %511 }
 0x10e   :  { %969 = vmatmul.mubr.bf16.gmra.mxu1 %v1529_v5 }
 0x10f   :  { %976 = vmatprep.mubr.bf16.mxu1 %v1533_v6 }
 0x112   :  { %880 = vmatmul.mubr.bf16.gmra.mxu0 %v1532_v7  ;;  %v517_v7 = vpop.permute.xlu1 %516 }
 0x113   :  { %887 = vmatprep.mubr.bf16.mxu0 %v1536_v8 }
 0x116   :  { %977 = vmatmul.mubr.bf16.gmra.mxu1 %v1535_v15 }
 0x117   :  { %984 = vmatprep.mubr.bf16.mxu1 %v1539_v22  ;;  %v522_v22 = vpop.permute.xlu0 %521 }
 0x11a   :  { %888 = vmatmul.mubr.bf16.gmra.mxu0 %v1538_v23 }
 0x11b   :  { %1423 = vmatprep.mubr.msk.bf16.mxu0 %vm774_vm2, %v1542_v24 }
 0x11e   :  { %985 = vmatmul.mubr.bf16.gmra.mxu1 %v1541_v25 }
 0x11f   :  { %1431 = vmatprep.mubr.msk.bf16.mxu1 %vm774_vm2, %v1544_v26  ;;  %v527_v26 = vpop.permute.xlu1 %526 }
 0x122   :  { %1424 = vmatmul.mubr.msk.bf16.vlgmr.msra.gmra.mxu0 %vm774_vm2, %v1543_v27 }
 0x123   :  { %1427 = vmatprep.mubr.msk.bf16.mxu0 %vm774_vm2, %v1546_v28 }
 0x126   :  { %1432 = vmatmul.mubr.msk.bf16.vlgmr.msra.gmra.mxu1 %vm774_vm2, %v1545_v29 }
 0x127   :  { %1435 = vmatprep.mubr.msk.bf16.mxu1 %vm774_vm2, %v1548_v32  ;;  %v532_v32 = vpop.permute.xlu0 %531 }
 0x12a   :  { %1428 = vmatmul.mubr.msk.bf16.gmra.mxu0 %vm774_vm2, %v1547_v10 }
 0x12e   :  { %1436 = vmatmul.mubr.msk.bf16.gmra.mxu1 %vm774_vm2, %v1549_v33 }
 0x1a2   :  { %v1291_v34 = vpop.f32.mrf.mxu0 }
 0x1a4   :  { %v1292_v35 = vpop.f32.mrf.mxu0 }
 0x1a5   :  { %v1293_v25 = vadd.f32 %v1292_v35, %v1291_v34 }
 0x1a6   :  { %v1294_v36 = vpop.f32.mrf.mxu0  ;;  %v1355_v37 = vpop.f32.mrf.mxu1 }
 0x1a8   :  { %v1295_v38 = vpop.f32.mrf.mxu0  ;;  %v1356_v39 = vpop.f32.mrf.mxu1 }
 0x1a9   :  { %v1296_v10 = vadd.f32 %v1295_v38, %v1294_v36 }
 0x1aa   :  { %v1297_v30 = vpop.f32.mrf.mxu0  ;;  %v1358_v13 = vpop.f32.mrf.mxu1 }
 0x1ac   :  { %v1298_v40 = vpop.f32.mrf.mxu0  ;;  %v1359_v31 = vpop.f32.mrf.mxu1 }
 0x1ad   :  { %v1299_v27 = vadd.f32 %v1298_v40, %v1297_v30  ;;  %v542_v30 = vpop.permute.xlu0 %541  ;;  %v837_v40 = vadd.f32 %v1296_v10, %v502_v20 }
 0x1ae   :  { %v1300_v41 = vpop.f32.mrf.mxu0  ;;  %v1361_v42 = vpop.f32.mrf.mxu1 }
 0x1b0   :  { %v1301_v44 = vpop.f32.mrf.mxu0  ;;  %v1362_v46 = vpop.f32.mrf.mxu1 }
 0x1b2   :  { %v1303_v47 = vpop.f32.mrf.mxu0  ;;  %v1364_v48 = vpop.f32.mrf.mxu1 }
 0x1b4   :  { %v1304_v49 = vpop.f32.mrf.mxu0  ;;  %v1365_v9 = vpop.f32.mrf.mxu1 }
 0x1b5   :  { %v1366_v35 = vadd.f32 %v1365_v9, %v1364_v48 }
 0x1b6   :  { %v1306_v11 = vpop.f32.mrf.mxu0  ;;  %v2119_v12 = vpop.f32.mrf.mxu1 }
 0x1b8   :  { %v1307_v14 = vpop.f32.mrf.mxu0  ;;  %v2121_v50 = vpop.f32.mrf.mxu1 }
 0x1b9   :  { %v1369_v48 = vadd.f32 %v2121_v50, %v2119_v12 }
 0x1ba   :  { %v1309_v51 = vpop.f32.mrf.mxu0  ;;  %v2123_v43 = vpop.f32.mrf.mxu1 }
 0x1bc   :  { %v1310_v45 = vpop.f32.mrf.mxu0  ;;  %v2125_v52 = vpop.f32.mrf.mxu1 }
 0x1bd   :  { %v1311_v36 = vadd.f32 %v1310_v45, %v1309_v51 }
 0x1be   :  { %v2127_v53 = vpop.f32.mrf.mxu0  ;;  %v2129_v54 = vpop.f32.mrf.mxu1 }
 0x1bf   :  { %v858_v45 = vadd.f32 %v1311_v36, %v527_v26 }
 0x1c0   :  { %v2131_v55 = vpop.f32.mrf.mxu0  ;;  %v2133_v18 = vpop.f32.mrf.mxu1 }
 0x1c1   :  { %v1314_v9 = vadd.f32 %v2131_v55, %v2127_v53 }
 0x1c2   :  { %v1315_v19 = vpop.f32.mrf.mxu0  ;;  %v2135_v16 = vpop.f32.mrf.mxu1 }
 0x1c3   :  { %2294 = vst [vmem:[#allocation2_spill] sm:$0xff] %v2135_v16  ;;  %v1363_v16 = vadd.f32 %v1362_v46, %v1361_v42 }
 0x1c4   :  { %v1316_v17 = vpop.f32.mrf.mxu0  ;;  %v2137_v56 = vpop.f32.mrf.mxu1 }
 0x1c5   :  { %2295 = vst [vmem:[#allocation3_spill] sm:$0xff] %v2137_v56  ;;  %v842_v56 = vadd.f32 %v1299_v27, %v507_v2 }
 0x1c6   :  { %v2139_v57 = vpop.f32.mrf.mxu0  ;;  %v2141_v58 = vpop.f32.mrf.mxu1 }
 0x1c7   :  { %2296 = vst [vmem:[#allocation4_spill] sm:$0xff] %v2141_v58  ;;  %v537_v58 = vpop.permute.xlu1 %536 }
 0x1c8   :  { %v2143_v59 = vpop.f32.mrf.mxu0  ;;  %v2145_v60 = vpop.f32.mrf.mxu1 }
 0x1c9   :  { %2297 = vst [vmem:[#allocation5_spill] sm:$0xff] %v2143_v59  ;;  %2298 = vst [vmem:[#allocation6_spill] sm:$0xff] %v2145_v60  ;;  %v1302_v60 = vadd.f32 %v1301_v44, %v1300_v41  ;;  %v1305_v59 = vadd.f32 %v1304_v49, %v1303_v47  ;;  %v939_v44 = vadd.f32 %v1363_v16, %v842_v56 }
 0x1ca   :  { %v1321_v21 = vpop.f32.mrf.mxu0  ;;  %v2147_v61 = vpop.f32.mrf.mxu1  ;;  %v1372_v49 = vadd.f32 %v2125_v52, %v2123_v43 }
 0x1cb   :  { %2299 = vst [vmem:[#allocation7_spill] sm:$0xff] %v2147_v61  ;;  %v834_v61 = vadd.f32 %v1293_v25, %v497_v62  ;;  %v552_v52 = vpop.permute.xlu0 %551 }
 0x1cc   :  { %v1322_v63 = vpop.f32.mrf.mxu0  ;;  %v2149_v0 = vpop.f32.mrf.mxu1  ;;  %v2308_v12 = vld [vmem:[#allocation3_spill] sm:$0xff] }
 0x1cd   :  { %2300 = vst [vmem:[#allocation8_spill] sm:$0xff] %v2149_v0  ;;  %v1357_v0 = vadd.f32 %v1356_v39, %v1355_v37  ;;  %v845_v37 = vadd.f32 %v1302_v60, %v512_v4  ;;  %v1317_v39 = vadd.f32 %v1316_v17, %v1315_v19  ;;  %v1323_v41 = vadd.f32 %v1322_v63, %v1321_v21  ;;  %v2307_v60 = vld [vmem:[#allocation2_spill] sm:$0xff] }
 0x1ce   :  { %v2151_v1 = vpop.f32.mrf.mxu0  ;;  %v1385_v3 = vpop.f32.mrf.mxu1  ;;  %v1375_v19 = vadd.f32 %v2133_v18, %v2129_v54  ;;  %v1378_v50 = vadd.f32 %v2308_v12, %v2307_v60  ;;  %v2309_v53 = vld [vmem:[#allocation4_spill] sm:$0xff] }
 0x1cf   :  { %2301 = vst [vmem:[#allocation9_spill] sm:$0xff] %v2151_v1  ;;  %v931_v46 = vadd.f32 %v1357_v0, %v834_v61  ;;  %v866_v20 = vadd.f32 %v1317_v39, %v537_v58 }
 0x1d0   :  { %v1325_v5 = vpop.f32.mrf.mxu0  ;;  %v1386_v6 = vpop.f32.mrf.mxu1  ;;  %v2306_v16 = vld [vmem:[#allocation5_spill] sm:$0xff]  ;;  %v2310_v55 = vld [vmem:[#allocation6_spill] sm:$0xff] }
 0x1d1   :  { %v1320_v17 = vadd.f32 %v2306_v16, %v2139_v57  ;;  %v1387_v21 = vadd.f32 %v1386_v6, %v1385_v3  ;;  %v1381_v61 = vadd.f32 %v2310_v55, %v2309_v53 }
 0x1d2   :  { %v1327_v8 = vpop.f32.mrf.mxu0  ;;  %v2153_v15 = vpop.f32.mrf.mxu1  ;;  %v2311_v62 = vld [vmem:[#allocation7_spill] sm:$0xff] }
 0x1d3   :  { %2302 = vst [vmem:[#allocation10_spill] sm:$0xff] %v2153_v15  ;;  %v1360_v15 = vadd.f32 %v1359_v31, %v1358_v13  ;;  %v850_v13 = vadd.f32 %v1305_v59, %v517_v7  ;;  %v861_v7 = vadd.f32 %v1314_v9, %v532_v32  ;;  %v869_v58 = vadd.f32 %v1320_v17, %v542_v30 }
 0x1d4   :  { %v1328_v23 = vpop.f32.mrf.mxu0  ;;  %v2155_v24 = vpop.f32.mrf.mxu1  ;;  %v2312_v63 = vld [vmem:[#allocation8_spill] sm:$0xff] }
 0x1d5   :  { %2303 = vst [vmem:[#allocation11_spill] sm:$0xff] %v2155_v24  ;;  %v934_v47 = vadd.f32 %v1360_v15, %v837_v40  ;;  %v1384_v0 = vadd.f32 %v2312_v63, %v2311_v62  ;;  %v1329_v18 = vadd.f32 %v1328_v23, %v1327_v8  ;;  %v958_v8 = vadd.f32 %v1378_v50, %v861_v7 }
 0x1d6   :  { %v1330_v28 = vpop.f32.mrf.mxu0  ;;  %v2157_v29 = vpop.f32.mrf.mxu1  ;;  %v2313_v2 = vld [vmem:[#allocation9_spill] sm:$0xff] }
 0x1d7   :  { %2304 = vst [vmem:[#allocation12_spill] sm:$0xff] %v2157_v29  ;;  %v1308_v29 = vadd.f32 %v1307_v14, %v1306_v11  ;;  %v547_v11 = vpop.permute.xlu1 %546  ;;  %v942_v14 = vadd.f32 %v1366_v35, %v845_v37  ;;  %v1326_v54 = vadd.f32 %v1325_v5, %v2313_v2  ;;  %v955_v35 = vadd.f32 %v1375_v19, %v858_v45 }
 0x1d8   :  { %v1331_v33 = vpop.f32.mrf.mxu0  ;;  %v2159_v1 = vpop.f32.mrf.mxu1  ;;  %v874_v43 = vadd.f32 %v1323_v41, %v547_v11 }
 0x1d9   :  { %2305 = vst [vmem:[#allocation13_spill] sm:$0xff] %v2159_v1  ;;  %v853_v51 = vadd.f32 %v1308_v29, %v522_v22  ;;  %v947_v22 = vadd.f32 %v1369_v48, %v850_v13  ;;  %v1332_v6 = vadd.f32 %v1331_v33, %v1330_v28  ;;  %v877_v23 = vadd.f32 %v1326_v54, %v552_v52  ;;  %v562_v48 = vpop.permute.xlu0 %561 }
 0x1da   :  { %v2161_v24 = vpop.f32.mrf.mxu0  ;;  %v2163_v34 = vpop.f32.mrf.mxu1  ;;  %v2314_v26 = vld [vmem:[#allocation10_spill] sm:$0xff]  ;;  %v971_v5 = vadd.f32 %v1387_v21, %v874_v43  ;;  %v963_v13 = vadd.f32 %v1381_v61, %v866_v20 }
 0x1db   :  { %v2190_v25 = vadd.f32 %v1372_v49, %v853_v51  ;;  %v557_v40 = vpop.permute.xlu1 %556  ;;  %v2194_v28 = vadd.f32 %v1332_v6, %v562_v48 }
 0x1dc   :  { %v2165_v38 = vpop.f32.mrf.mxu0  ;;  %v2167_v1 = vpop.f32.mrf.mxu1  ;;  %v2315_v27 = vld [vmem:[#allocation11_spill] sm:$0xff]  ;;  %v882_v39 = vadd.f32 %v1329_v18, %v557_v40 }
 0x1dd   :  { %v1390_v3 = vadd.f32 %v2315_v27, %v2314_v26  ;;  %v1396_v20 = vadd.f32 %v2167_v1, %v2163_v34 }
 0x1de   :  { %v2169_v31 = vpop.f32.mrf.mxu0  ;;  %v2171_v42 = vpop.f32.mrf.mxu1  ;;  %v2316_v33 = vld [vmem:[#allocation12_spill] sm:$0xff] }
 0x1df   :  { %v974_v17 = vadd.f32 %v1390_v3, %v877_v23  ;;  %v567_v53 = vpop.permute.xlu1 %566 }
 0x1e0   :  { %v1337_v56 = vpop.f32.mrf.mxu0  ;;  %v1398_v59 = vpop.f32.mrf.mxu1  ;;  %v2317_v51 = vld [vmem:[#allocation13_spill] sm:$0xff] }
 0x1e1   :  { %v1393_v45 = vadd.f32 %v2317_v51, %v2316_v33  ;;  %v1338_v43 = vadd.f32 %v1337_v56, %v2169_v31  ;;  %v1399_v52 = vadd.f32 %v1398_v59, %v2171_v42  ;;  %v572_v42 = vpop.permute.xlu0 %571 }
 0x1e2   :  { %v1400_v4 = vpop.f32.mrf.mxu1  ;;  %v1425_v57 = vpop.f32.mrf.mxu0 }
 0x1e3   :  { %v1036_v15 = vadd.f32 %v1425_v57, %v939_v44  ;;  %v966_v44 = vadd.f32 %v1384_v0, %v869_v58  ;;  %v979_v40 = vadd.f32 %v1393_v45, %v882_v39 }
 0x1e4   :  { %v1401_v29 = vpop.f32.mrf.mxu1  ;;  %v1027_v10 = vpop.f32.mrf.mxu0 }
 0x1e5   :  { %v1092_v36 = vmax.f32 %v1036_v15, 0.0  ;;  %v1028_v37 = vadd.f32 %v1027_v10, %v931_v46  ;;  %v1335_v46 = vadd.f32 %v2165_v38, %v2161_v24  ;;  %v1402_v0 = vadd.f32 %v1401_v29, %v1400_v4 }
 0x1e6   :  { %v1426_v32 = vpop.f32.mrf.mxu0  ;;  %v1433_v41 = vpop.f32.mrf.mxu1  ;;  %v893_v4 = vadd.f32 %v1338_v43, %v572_v42 }
 0x1e7   :  { %v1261_v30 = vpack.c.bf16 %v1092_v36, %v1092_v36  ;;  %v1090_v49 = vmax.f32 %v1028_v37, 0.0  ;;  %v1039_v9 = vadd.f32 %v1426_v32, %v942_v14  ;;  %v1068_v11 = vadd.f32 %v1433_v41, %v971_v5 }
 0x1e8   :  { %v1030_v19 = vpop.f32.mrf.mxu0  ;;  %v1059_v16 = vpop.f32.mrf.mxu1  ;;  %v890_v63 = vadd.f32 %v1335_v46, %v567_v53  ;;  %v990_v37 = vadd.f32 %v1402_v0, %v893_v4 }
 0x1e9   :  { %1173 = vst.msk [vmem:[%s2273_s3 + $0x8] sm:$0xf] %vm1170_vm3, %v1261_v30  ;;  %v1259_v60 = vpack.c.bf16 %v1090_v49, %v1090_v49  ;;  %v1093_v12 = vmax.f32 %v1039_v9, 0.0  ;;  %v1100_v14 = vmax.f32 %v1068_v11, 0.0  ;;  %v1031_v50 = vadd.f32 %v1030_v19, %v934_v47 }
 0x1ea   :  { %v1060_v24 = vadd.f32 %v1059_v16, %v963_v13  ;;  %v1429_v38 = vpop.f32.mrf.mxu0  ;;  %v1434_v21 = vpop.f32.mrf.mxu1  ;;  %v987_v58 = vadd.f32 %v1399_v52, %v890_v63  ;;  %v982_v30 = vadd.f32 %v1396_v20, %v2194_v28 }
 0x1eb   :  { %1171 = vst.msk [vmem:[%s2273_s3] sm:$0xf] %vm1170_vm3, %v1259_v60  ;;  %v1262_v55 = vpack.c.bf16 %v1093_v12, %v1093_v12  ;;  %v1269_v61 = vpack.c.bf16 %v1100_v14, %v1100_v14  ;;  %v1091_v62 = vmax.f32 %v1031_v50, 0.0  ;;  %v1052_v47 = vadd.f32 %v1429_v38, %v955_v35 }
 0x1ec   :  { %v1098_v1 = vmax.f32 %v1060_v24, 0.0  ;;  %v1071_v34 = vadd.f32 %v1434_v21, %v974_v17  ;;  %v1043_v31 = vpop.f32.mrf.mxu0  ;;  %v1062_v56 = vpop.f32.mrf.mxu1 }
 0x1ed   :  { %1174 = vst.msk [vmem:[%s2273_s3 + $0xc] sm:$0xf] %vm1170_vm3, %v1262_v55  ;;  %1181 = vst.msk [vmem:[%s2273_s3 + $0x28] sm:$0xf] %vm1170_vm3, %v1269_v61  ;;  %v1260_v59 = vpack.c.bf16 %v1091_v62, %v1091_v62  ;;  %v1096_v2 = vmax.f32 %v1052_v47, 0.0  ;;  %v1044_v54 = vadd.f32 %v1043_v31, %v947_v22  ;;  %v1063_v18 = vadd.f32 %v1062_v56, %v966_v44 }
 0x1ee   :  { %v1267_v57 = vpack.c.bf16 %v1098_v1, %v1098_v1  ;;  %v1101_v7 = vmax.f32 %v1071_v34, 0.0  ;;  %v1430_v15 = vpop.f32.mrf.mxu0  ;;  %v1437_v26 = vpop.f32.mrf.mxu1 }
 0x1ef   :  { %1172 = vst.msk [vmem:[%s2273_s3 + $0x4] sm:$0xf] %vm1170_vm3, %v1260_v59  ;;  %v1265_v27 = vpack.c.bf16 %v1096_v2, %v1096_v2  ;;  %v1094_v3 = vmax.f32 %v1044_v54, 0.0  ;;  %v1099_v6 = vmax.f32 %v1063_v18, 0.0  ;;  %v1055_v29 = vadd.f32 %v1430_v15, %v958_v8 }
 0x1f0   :  { %1179 = vst.msk [vmem:[%s2273_s3 + $0x20] sm:$0xf] %vm1170_vm3, %v1267_v57  ;;  %v1270_v22 = vpack.c.bf16 %v1101_v7, %v1101_v7  ;;  %v1084_v10 = vadd.f32 %v1437_v26, %v987_v58  ;;  %v1046_v35 = vpop.f32.mrf.mxu0  ;;  %v1075_v36 = vpop.f32.mrf.mxu1 }
 0x1f1   :  { %1177 = vst.msk [vmem:[%s2273_s3 + $0x18] sm:$0xf] %vm1170_vm3, %v1265_v27  ;;  %v1263_v5 = vpack.c.bf16 %v1094_v3, %v1094_v3  ;;  %v1268_v23 = vpack.c.bf16 %v1099_v6, %v1099_v6  ;;  %v1097_v32 = vmax.f32 %v1055_v29, 0.0  ;;  %v1047_v8 = vadd.f32 %v1046_v35, %v2190_v25 }
 0x1f2   :  { %1182 = vst.msk [vmem:[%s2273_s3 + $0x2c] sm:$0xf] %vm1170_vm3, %v1270_v22  ;;  %v1104_v41 = vmax.f32 %v1084_v10, 0.0  ;;  %v1076_v13 = vadd.f32 %v1075_v36, %v979_v40  ;;  %v1438_v39 = vpop.f32.mrf.mxu1 }
 0x1f3   :  { %1175 = vst.msk [vmem:[%s2273_s3 + $0x10] sm:$0xf] %vm1170_vm3, %v1263_v5  ;;  %1180 = vst.msk [vmem:[%s2273_s3 + $0x24] sm:$0xf] %vm1170_vm3, %v1268_v23  ;;  %v1266_v44 = vpack.c.bf16 %v1097_v32, %v1097_v32  ;;  %v1095_v25 = vmax.f32 %v1047_v8, 0.0  ;;  %v1087_v48 = vadd.f32 %v1438_v39, %v990_v37 }
 0x1f4   :  { %v1273_v49 = vpack.c.bf16 %v1104_v41, %v1104_v41  ;;  %v1102_v9 = vmax.f32 %v1076_v13, 0.0  ;;  %v1078_v11 = vpop.f32.mrf.mxu1 }
 0x1f5   :  { %1178 = vst.msk [vmem:[%s2273_s3 + $0x1c] sm:$0xf] %vm1170_vm3, %v1266_v44  ;;  %v1264_v33 = vpack.c.bf16 %v1095_v25, %v1095_v25  ;;  %v1105_v51 = vmax.f32 %v1087_v48, 0.0  ;;  %v1079_v45 = vadd.f32 %v1078_v11, %v982_v30 }
 0x1f6   :  { %1185 = vst.msk [vmem:[%s2273_s3 + $0x38] sm:$0xf] %vm1170_vm3, %v1273_v49  ;;  %v1271_v46 = vpack.c.bf16 %v1102_v9, %v1102_v9 }
 0x1f7   :  { %1176 = vst.msk [vmem:[%s2273_s3 + $0x14] sm:$0xf] %vm1170_vm3, %v1264_v33  ;;  %v1274_v28 = vpack.c.bf16 %v1105_v51, %v1105_v51  ;;  %v1103_v19 = vmax.f32 %v1079_v45, 0.0 }
 0x1f8   :  { %1183 = vst.msk [vmem:[%s2273_s3 + $0x30] sm:$0xf] %vm1170_vm3, %v1271_v46 }
 0x1f9   :  { %1186 = vst.msk [vmem:[%s2273_s3 + $0x3c] sm:$0xf] %vm1170_vm3, %v1274_v28  ;;  %v1272_v16 = vpack.c.bf16 %v1103_v19, %v1103_v19 }
 0x1fb   :  { %1184 = vst.msk [vmem:[%s2273_s3 + $0x34] sm:$0xf] %vm1170_vm3, %v1272_v16 }

// kernel: conv_vae_forward.12
= control target key start
LH: loop header
LB: loop body
LE: loop exit
PB: predicated region body
PF: predicated region fallthrough
CT: control target
= control target key end

     0   :  { %v691_v1 = vmov 0   ;;  %s692_s16 = smov 1   ;;  %s693_s17 = smov 120   ;;  %v21_v13 = vlaneseq  ;;  %s953_s0 = inlined_call_operand.vmem [shape: bf16[32,128], index: 0, kind: input, shape index: {}]   ;;  %s954_s1 = inlined_call_operand.vmem [shape: bf16[64,288], index: 1, kind: input, shape index: {}]   ;;  %s955_s2 = inlined_call_operand.vmem [shape: f32[64,1], index: 2, kind: input, shape index: {}]   ;;  %s956_s3 = inlined_call_operand.vmem [shape: bf16[64,128], index: 3, kind: output, shape index: {}]  }
   0x1   :  { %v723_v0 = vld [vmem:[%s953_s0 + $0x8] sm:$0xff]   ;;  %672 = vset.pattern.permute.xlu1 %v691_v1  ;;  %671 = vset.pattern.permute.xlu0 %v691_v1  ;;  %v730_v2 = vld [vmem:[%s953_s0] sm:$0xff]   ;;  %s694_s18 = smov 7   ;;  %s695_s19 = smov 121   ;;  %v216_v7 = vld [vmem:[%s955_s2 + $0x10] sm:$0xff] }
   0x2   :  { %100 = vrot.lane.b32.xlu0 %v723_v0, %s692_s16  ;;  %98 = vrot.lane.b32.xlu1 %v730_v2, %s692_s16  ;;  %s696_s0 = smov 8   ;;  %s697_s20 = smov 127   ;;  %v677_v3 = vld [vmem:[%s954_s1 + $0x4] ss:$12 sps:$4 sm:$0xff]   ;;  %v680_v4 = vld [vmem:[%s954_s1 + $0x4c] ss:$12 sps:$4 sm:$0xff]  }
   0x3   :  { %367 = vmatprep.mubr.bf16.mxu0 %v677_v3  ;;  %s698_s25 = smov 9   ;;  %391 = vmatprep.mubr.bf16.mxu1 %v680_v4  ;;  %s699_s26 = smov 119   ;;  %v215_v5 = vld [vmem:[%s955_s2 + $0x8] sm:$0xff]  ;;  %v214_v6 = vld [vmem:[%s955_s2] sm:$0xff]  ;;  %v217_v8 = vld [vmem:[%s955_s2 + $0x18] sm:$0xff]  ;;  %v22_v14 = vand.u32 127, %v21_v13 }
   0x4   :  { %v218_v9 = vld [vmem:[%s955_s2 + $0x20] sm:$0xff]  ;;  %v219_v10 = vld [vmem:[%s955_s2 + $0x28] sm:$0xff]  ;;  %v220_v11 = vld [vmem:[%s955_s2 + $0x30] sm:$0xff]  ;;  %v52_v19 = vshrl.u32 %v21_v13, 7 }
   0x5   :  { %v221_v12 = vld [vmem:[%s955_s2 + $0x38] sm:$0xff]  ;;  %v24_v15 = vshra.s32 %v22_v14, 3  ;;  %v23_v16 = vand.u32 7, %v22_v14  ;;  %v686_v13 = vld [vmem:[%s954_s1 + $0x34] ss:$12 sps:$4 sm:$0xff]  }
   0x6   :  { %159 = vrot.lane.b32.xlu0 %v723_v0, %s693_s17  ;;  %157 = vrot.lane.b32.xlu1 %v730_v2, %s693_s17  ;;  %v796_v21 = vsub.s32 0, %v52_v19  ;;  %v688_v14 = vld [vmem:[%s954_s1 + $0x38] ss:$12 sps:$4 sm:$0xff]  }
   0x7   :  { %v778_v17 = vand.u32 7, %v24_v15  ;;  %vm780_vm0 = vcmp.ge.s32.totalorder %v23_v16, 1  ;;  %vm789_vm4 = vcmp.lt.s32.totalorder %v23_v16, 7  ;;  %v689_v15 = vld [vmem:[%s954_s1 + $0x30] ss:$12 sps:$4 sm:$0xff]  }
   0x8   :  { %vm108_vm2 = vmpackc.low %vm780_vm0, %vm780_vm0  ;;  %v690_v16 = vld [vmem:[%s954_s1 + $0x50] ss:$12 sps:$4 sm:$0xff]  }
   0x9   :  { %vm144_vm1 = vcmp.lt.s32.totalorder %v778_v17, 7  ;;  %vm44_vm3 = vcmp.ge.s32.totalorder %v778_v17, 1  ;;  %v109_v22 = vsel %vm108_vm2, 65537, %v691_v1  ;;  %vm127_vm12 = vmpackc.low %vm789_vm4, %vm789_vm4 }
   0xa   :  { %79 = vrot.lane.b32.xlu0 %v723_v0, %s694_s18  ;;  %138 = vrot.lane.b32.xlu1 %v723_v0, %s695_s19  ;;  %vm167_vm5 = vmpackc.low %vm144_vm1, %vm144_vm1  ;;  %v113_v24 = vrot.slane %v109_v22, %v796_v21  ;;  %v128_v42 = vsel %vm127_vm12, 65537, %v691_v1 }
   0xb   :  { %vm86_vm6 = vmand %vm44_vm3, %vm789_vm4  ;;  %v168_v23 = vsel %vm167_vm5, 65537, %v691_v1  ;;  %v132_v47 = vrot.slane %v128_v42, %v796_v21 }
   0xc   :  { %vm145_vm7 = vmand %vm144_vm1, %vm780_vm0  ;;  %v172_v25 = vrot.slane %v168_v23, %v796_v21  ;;  %vm812_vm10 = vcmp.ne.s16.totalorder %v113_v24, 0 }
   0xd   :  { %vm89_vm8 = vmpackc.low %vm86_vm6, %vm86_vm6 }
   0xe   :  { %77 = vrot.lane.b32.xlu0 %v730_v2, %s694_s18  ;;  %136 = vrot.lane.b32.xlu1 %v730_v2, %s695_s19  ;;  %vm148_vm9 = vmpackc.low %vm145_vm7, %vm145_vm7  ;;  %v90_v28 = vsel %vm89_vm8, 65537, %v691_v1  ;;  %vm173_vm11 = vcmp.ne.s16.totalorder %v172_v25, 0 }
   0xf   :  { %v149_v29 = vsel %vm148_vm9, 65537, %v691_v1  ;;  %v94_v32 = vrot.slane %v90_v28, %v796_v21  ;;  %vm68_vm13 = vmpackc.low %vm44_vm3, %vm44_vm3 }
  0x10   :  { %v153_v33 = vrot.slane %v149_v29, %v796_v21  ;;  %v69_v41 = vsel %vm68_vm13, 65537, %v691_v1  ;;  %vm848_vm2 = vmand %vm44_vm3, %vm780_vm0  ;;  %vm867_vm3 = vcmp.ne.s16.totalorder %v132_v47, 0 }
  0x11   :  { %vm826_vm14 = vcmp.ne.s16.totalorder %v94_v32, 0  ;;  %v73_v46 = vrot.slane %v69_v41, %v796_v21  ;;  %vm49_vm5 = vmpackc.low %vm848_vm2, %vm848_vm2 }
  0x12   :  { %60 = vrot.lane.b32.xlu0 %v723_v0, %s696_s0  ;;  %119 = vrot.lane.b32.xlu1 %v723_v0, %s697_s20  ;;  %vm830_vm15 = vcmp.ne.s16.totalorder %v153_v33, 0  ;;  %v50_v54 = vsel %vm49_vm5, 65537, %v691_v1  ;;  %vm184_vm6 = vmand %vm144_vm1, %vm789_vm4  ;;  %vm322_vm4 = vcmask 261120  }
  0x13   :  { %vm863_vm0 = vcmp.ne.s16.totalorder %v73_v46, 0  ;;  %v54_v57 = vrot.slane %v50_v54, %v796_v21  ;;  %vm187_vm7 = vmpackc.low %vm184_vm6, %vm184_vm6 }
  0x14   :  { %v188_v61 = vsel %vm187_vm7, 65537, %v691_v1 }
  0x15   :  { %vm55_vm8 = vcmp.ne.s16.totalorder %v54_v57, 0  ;;  %v192_v3 = vrot.slane %v188_v61, %v796_v21 }
  0x16   :  { %58 = vrot.lane.b32.xlu0 %v730_v2, %s696_s0  ;;  %117 = vrot.lane.b32.xlu1 %v730_v2, %s697_s20 }
  0x17   :  { %vm895_vm1 = vcmp.ne.s16.totalorder %v192_v3, 0 }
  0x1a   :  { %38 = vrot.lane.b32.xlu0 %v723_v0, %s698_s25  ;;  %36 = vrot.lane.b32.xlu1 %v730_v2, %s698_s25 }
  0x1e   :  { %178 = vrot.lane.b32.xlu0 %v723_v0, %s699_s26  ;;  %176 = vrot.lane.b32.xlu1 %v730_v2, %s699_s26 }
  0x22   :  { %229 = vperm.xlu1 %672, %v215_v5   ;;  %224 = vperm.xlu0 %671, %v214_v6   ;;  %v675_v6 = vld [vmem:[%s954_s1] ss:$12 sps:$4 sm:$0xff]  }
  0x26   :  { %234 = vperm.xlu1 %672, %v216_v7   ;;  %239 = vperm.xlu0 %671, %v217_v8   ;;  %v681_v7 = vld [vmem:[%s954_s1 + $0x1c] ss:$12 sps:$4 sm:$0xff]  }
  0x27   :  { %v683_v8 = vld [vmem:[%s954_s1 + $0x8] ss:$12 sps:$4 sm:$0xff]  }
  0x2a   :  { %244 = vperm.xlu1 %672, %v218_v9   ;;  %249 = vperm.xlu0 %671, %v219_v10  }
  0x2e   :  { %254 = vperm.xlu1 %672, %v220_v11   ;;  %259 = vperm.xlu0 %671, %v221_v12   ;;  %v684_v11 = vld [vmem:[%s954_s1 + $0x18] ss:$12 sps:$4 sm:$0xff]   ;;  %v685_v12 = vld [vmem:[%s954_s1 + $0x20] ss:$12 sps:$4 sm:$0xff]  }
  0x74   :  { %v101_v26 = vpop.permute.xlu0 %100  ;;  %v99_v27 = vpop.permute.xlu1 %98 }
  0x75   :  { %v116_v34 = vsel %vm812_vm10, %v101_v26, 0  ;;  %v115_v39 = vsel %vm812_vm10, %v99_v27, 0 }
  0x78   :  { %v160_v31 = vpop.permute.xlu0 %159  ;;  %v158_v35 = vpop.permute.xlu1 %157 }
  0x79   :  { %648 = vmatprep.subr.msk.bf16.mxu0 %vm173_vm11, %v160_v31  ;;  %649 = vmatprep.subr.msk.bf16.mxu1 %vm173_vm11, %v160_v31 }
  0x7a   :  { %575 = vmatpush3.bf16.msra.mxu0 %v116_v34  ;;  %640 = vmatpush3.bf16.msra.mxu1 %v116_v34 }
  0x7b   :  { %650 = vmatprep.subr.msk.bf16.mxu0 %vm173_vm11, %v158_v35  ;;  %651 = vmatprep.subr.msk.bf16.mxu1 %vm173_vm11, %v158_v35 }
  0x7c   :  { %v80_v37 = vpop.permute.xlu0 %79  ;;  %v139_v40 = vpop.permute.xlu1 %138 }
  0x7d   :  { %v97_v43 = vsel %vm826_vm14, %v80_v37, 0 }
  0x7e   :  { %577 = vmatpush3.bf16.msra.mxu0 %v115_v39  ;;  %641 = vmatpush3.bf16.msra.mxu1 %v115_v39 }
  0x7f   :  { %652 = vmatprep.subr.msk.bf16.mxu0 %vm830_vm15, %v139_v40  ;;  %653 = vmatprep.subr.msk.bf16.mxu1 %vm830_vm15, %v139_v40 }
  0x80   :  { %v78_v45 = vpop.permute.xlu0 %77  ;;  %v137_v48 = vpop.permute.xlu1 %136 }
  0x81   :  { %v96_v49 = vsel %vm826_vm14, %v78_v45, 0 }
  0x82   :  { %579 = vmatpush3.bf16.msra.mxu0 %v97_v43  ;;  %642 = vmatpush3.bf16.msra.mxu1 %v97_v43 }
  0x83   :  { %654 = vmatprep.subr.msk.bf16.mxu0 %vm830_vm15, %v137_v48  ;;  %655 = vmatprep.subr.msk.bf16.mxu1 %vm830_vm15, %v137_v48 }
  0x84   :  { %v61_v51 = vpop.permute.xlu0 %60  ;;  %v120_v53 = vpop.permute.xlu1 %119 }
  0x85   :  { %v76_v55 = vsel %vm863_vm0, %v61_v51, 0 }
  0x86   :  { %581 = vmatpush3.bf16.msra.mxu0 %v96_v49  ;;  %643 = vmatpush3.bf16.msra.mxu1 %v96_v49 }
  0x87   :  { %656 = vmatprep.subr.msk.bf16.mxu0 %vm867_vm3, %v120_v53  ;;  %657 = vmatprep.subr.msk.bf16.mxu1 %vm867_vm3, %v120_v53 }
  0x88   :  { %v59_v56 = vpop.permute.xlu0 %58  ;;  %v118_v58 = vpop.permute.xlu1 %117 }
  0x89   :  { %v75_v59 = vsel %vm863_vm0, %v59_v56, 0 }
  0x8a   :  { %583 = vmatpush3.bf16.msra.mxu0 %v76_v55  ;;  %644 = vmatpush3.bf16.msra.mxu1 %v76_v55 }
  0x8b   :  { %658 = vmatprep.subr.msk.bf16.mxu0 %vm867_vm3, %v118_v58  ;;  %659 = vmatprep.subr.msk.bf16.mxu1 %vm867_vm3, %v118_v58 }
  0x8c   :  { %v39_v60 = vpop.permute.xlu0 %38  ;;  %v37_v63 = vpop.permute.xlu1 %36 }
  0x8d   :  { %v57_v62 = vsel %vm55_vm8, %v39_v60, 0  ;;  %v56_v4 = vsel %vm55_vm8, %v37_v63, 0 }
  0x8e   :  { %585 = vmatpush3.bf16.msra.mxu0 %v75_v59  ;;  %645 = vmatpush3.bf16.msra.mxu1 %v75_v59 }
  0x8f   :  { %586 = vmatprep.subr.bf16.mxu0 %v723_v0  ;;  %638 = vmatprep.subr.bf16.mxu1 %v723_v0  ;;  %v678_v0 = vld [vmem:[%s954_s1 + $0x48] ss:$12 sps:$4 sm:$0xff]  }
  0x90   :  { %v179_v1 = vpop.permute.xlu0 %178  ;;  %v177_v9 = vpop.permute.xlu1 %176 }
  0x91   :  { %v194_v10 = vsel %vm895_vm1, %v177_v9, 0 }
  0x92   :  { %587 = vmatpush3.bf16.msra.mxu0 %v57_v62  ;;  %646 = vmatpush3.bf16.msra.mxu1 %v57_v62 }
  0x93   :  { %588 = vmatprep.subr.bf16.mxu0 %v730_v2  ;;  %639 = vmatprep.subr.bf16.mxu1 %v730_v2  ;;  %v195_v2 = vsel %vm895_vm1, %v179_v1, 0 }
  0x96   :  { %589 = vmatpush3.bf16.msra.mxu0 %v56_v4  ;;  %647 = vmatpush3.bf16.msra.mxu1 %v56_v4 }
  0x97   :  { %660 = vmatprep.subr.msk.bf16.mxu1 %vm895_vm1, %v179_v1 }
  0x99   :  { %368 = vmatmul.mubr.bf16.vlgmr.msra.gmra.mxu0 %v675_v6  ;;  %392 = vmatmul.mubr.bf16.vlgmr.msra.gmra.mxu1 %v678_v0 }
  0x9a   :  { %621 = vmatpush3.bf16.msra.mxu1 %v195_v2  ;;  %375 = vmatprep.mubr.bf16.mxu0 %v681_v7 }
  0x9b   :  { %661 = vmatprep.subr.msk.bf16.mxu1 %vm895_vm1, %v177_v9  ;;  %624 = vmatprep.mubr.msk.bf16.mxu1 %vm322_vm4, %v683_v8 }
  0x9d   :  { %v230_v17 = vpop.permute.xlu1 %229  ;;  %v225_v18 = vpop.permute.xlu0 %224 }
  0x9e   :  { %623 = vmatpush3.bf16.msra.mxu1 %v194_v10 }
  0xa1   :  { %376 = vmatmul.mubr.bf16.gmra.mxu0 %v684_v11  ;;  %625 = vmatmul.mubr.msk.bf16.vlgmr.msra.gmra.mxu1 %vm322_vm4, %v685_v12  ;;  %v235_v21 = vpop.permute.xlu1 %234  ;;  %v240_v24 = vpop.permute.xlu0 %239 }
  0xa2   :  { %383 = vmatprep.mubr.bf16.mxu0 %v686_v13  ;;  %628 = vmatprep.mubr.msk.bf16.mxu1 %vm322_vm4, %v688_v14 }
  0xa5   :  { %v245_v30 = vpop.permute.xlu1 %244  ;;  %v250_v33 = vpop.permute.xlu0 %249 }
  0xa9   :  { %384 = vmatmul.mubr.bf16.gmra.mxu0 %v689_v15  ;;  %629 = vmatmul.mubr.msk.bf16.gmra.mxu1 %vm322_vm4, %v690_v16  ;;  %v255_v42 = vpop.permute.xlu1 %254  ;;  %v260_v49 = vpop.permute.xlu0 %259 }
 0x159   :  { %v590_v19 = vpop.f32.mrf.mxu0  ;;  %v608_v20 = vpop.f32.mrf.mxu1 }
 0x15b   :  { %v591_v22 = vpop.f32.mrf.mxu0  ;;  %v609_v23 = vpop.f32.mrf.mxu1 }
 0x15c   :  { %v592_v29 = vadd.f32 %v591_v22, %v590_v19  ;;  %v610_v39 = vadd.f32 %v609_v23, %v608_v20 }
 0x15d   :  { %v593_v25 = vpop.f32.mrf.mxu0  ;;  %v611_v26 = vpop.f32.mrf.mxu1 }
 0x15e   :  { %v370_v38 = vadd.f32 %v592_v29, %v225_v18  ;;  %v394_v52 = vadd.f32 %v610_v39, %v255_v42 }
 0x15f   :  { %v594_v27 = vpop.f32.mrf.mxu0  ;;  %v612_v28 = vpop.f32.mrf.mxu1 }
 0x160   :  { %v595_v34 = vadd.f32 %v594_v27, %v593_v25  ;;  %v613_v46 = vadd.f32 %v612_v28, %v611_v26 }
 0x161   :  { %v596_v31 = vpop.f32.mrf.mxu0  ;;  %v626_v32 = vpop.f32.mrf.mxu1 }
 0x162   :  { %v373_v45 = vadd.f32 %v595_v34, %v230_v17  ;;  %v397_v59 = vadd.f32 %v613_v46, %v260_v49 }
 0x163   :  { %v597_v35 = vpop.f32.mrf.mxu0  ;;  %v434_v36 = vpop.f32.mrf.mxu1 }
 0x164   :  { %v598_v37 = vadd.f32 %v597_v35, %v596_v31  ;;  %v435_v44 = vadd.f32 %v434_v36, %v370_v38 }
 0x165   :  { %v599_v40 = vpop.f32.mrf.mxu0  ;;  %v627_v41 = vpop.f32.mrf.mxu1 }
 0x166   :  { %v378_v43 = vadd.f32 %v598_v37, %v235_v21  ;;  %v465_v56 = vmax.f32 %v435_v44, 0.0 }
 0x167   :  { %v600_v47 = vpop.f32.mrf.mxu0  ;;  %v437_v48 = vpop.f32.mrf.mxu1 }
 0x168   :  { %v601_v50 = vadd.f32 %v600_v47, %v599_v40  ;;  %v438_v51 = vadd.f32 %v437_v48, %v373_v45  ;;  %v443_v55 = vadd.f32 %v626_v32, %v378_v43 }
 0x169   :  { %v602_v53 = vpop.f32.mrf.mxu0  ;;  %v630_v54 = vpop.f32.mrf.mxu1 }
 0x16a   :  { %v381_v57 = vadd.f32 %v601_v50, %v240_v24  ;;  %v466_v58 = vmax.f32 %v438_v51, 0.0  ;;  %v459_v3 = vadd.f32 %v630_v54, %v394_v52  ;;  %v467_v6 = vmax.f32 %v443_v55, 0.0 }
 0x16b   :  { %v603_v60 = vpop.f32.mrf.mxu0  ;;  %v450_v61 = vpop.f32.mrf.mxu1 }
 0x16c   :  { %v446_v62 = vadd.f32 %v627_v41, %v381_v57  ;;  %v554_v63 = vpack.c.bf16 %v466_v58, %v465_v56  ;;  %v604_v4 = vadd.f32 %v603_v60, %v602_v53  ;;  %v471_v10 = vmax.f32 %v459_v3, 0.0 }
 0x16d   :  { %v605_v5 = vpop.f32.mrf.mxu0  ;;  %v631_v1 = vpop.f32.mrf.mxu1 }
 0x16e   :  { %v468_v0 = vmax.f32 %v446_v62, 0.0  ;;  %555 = vst [vmem:[%s956_s3] sm:$0xff] %v554_v63   ;;  %v386_v7 = vadd.f32 %v604_v4, %v245_v30  ;;  %v462_v2 = vadd.f32 %v631_v1, %v397_v59 }
 0x16f   :  { %v606_v8 = vpop.f32.mrf.mxu0  ;;  %v453_v16 = vpop.f32.mrf.mxu1 }
 0x170   :  { %v559_v9 = vpack.c.bf16 %v468_v0, %v467_v6  ;;  %v472_v11 = vmax.f32 %v462_v2, 0.0  ;;  %v607_v12 = vadd.f32 %v606_v8, %v605_v5  ;;  %v451_v13 = vadd.f32 %v450_v61, %v386_v7 }
 0x172   :  { %571 = vst [vmem:[%s956_s3 + $0x8] sm:$0xff] %v559_v9   ;;  %v569_v14 = vpack.c.bf16 %v472_v11, %v471_v10  ;;  %v389_v15 = vadd.f32 %v607_v12, %v250_v33  ;;  %v469_v18 = vmax.f32 %v451_v13, 0.0 }
 0x174   :  { %573 = vst [vmem:[%s956_s3 + $0x18] sm:$0xff] %v569_v14   ;;  %v454_v17 = vadd.f32 %v453_v16, %v389_v15 }
 0x176   :  { %v470_v19 = vmax.f32 %v454_v17, 0.0 }
 0x178   :  { %v564_v20 = vpack.c.bf16 %v470_v19, %v469_v18 }
 0x17a   :  { %572 = vst [vmem:[%s956_s3 + $0x10] sm:$0xff] %v564_v20  }

// kernel: conv_vae_forward.13
= control target key start
LH: loop header
LB: loop body
LE: loop exit
PB: predicated region body
PF: predicated region fallthrough
CT: control target
= control target key end

     0   :  { %v726_v1 = vmov 0   ;;  %s727_s16 = smov 112   ;;  %s728_s21 = smov 113   ;;  %vm1234_vm0 = vcmask 130048   ;;  %v21_v8 = vlaneseq  ;;  %v1242_v27 = vmov 0  ;;  %s1226_s0 = inlined_call_operand.vmem [shape: bf16[16,512], index: 0, kind: input, shape index: {}]   ;;  %s1227_s1 = inlined_call_operand.vmem [shape: bf16[8,144], index: 1, kind: input, shape index: {}]   ;;  %s1228_s2 = inlined_call_operand.vmem [shape: f32[8,1], index: 2, kind: input, shape index: {}]   ;;  %s1229_s3 = inlined_call_operand.vmem [shape: f32[8,512], index: 3, kind: output, shape index: {}]  }
   0x1   :  { %v758_v0 = vld [vmem:[%s1226_s0 + $0x8] ss:$16 sps:$4 sm:$0xff]   ;;  %701 = vset.pattern.permute.xlu0 %v726_v1  ;;  %v764_v2 = vld [vmem:[%s1226_s0] ss:$16 sps:$4 sm:$0xff]   ;;  %v770_v3 = vld [vmem:[%s1226_s0 + $0xc] ss:$16 sps:$4 sm:$0xff]  }
   0x2   :  { %422 = vrot.lane.b32.xlu1 %v758_v0, %s727_s16  ;;  %418 = vrot.lane.b32.xlu0 %v764_v2, %s727_s16  ;;  %v776_v4 = vld [vmem:[%s1226_s0 + $0x4] ss:$16 sps:$4 sm:$0xff]   ;;  %s729_s22 = smov 127   ;;  %s730_s0 = smov 1   ;;  %v22_v9 = vand.u32 127, %v21_v8  ;;  %v99_v23 = vshrl.u32 %v21_v8, 7 }
   0x3   :  { %s731_s23 = smov 15   ;;  %s732_s24 = smov 16   ;;  %v805_v5 = vld [vmem:[%s1227_s1] sm:$0xff]  ;;  %v1244_v30 = vmov 0  ;;  %v1246_v32 = vmov 0  ;;  %v1266_v61 = vmov 0 }
   0x4   :  { %s733_s25 = smov 17   ;;  %v673_v6 = vcombine.high %v805_v5, %v805_v5  ;;  %s734_s28 = smov 111   ;;  %v539_v7 = vld [vmem:[%s1228_s2] sm:$0xff]  ;;  %v24_v10 = vadd.s32 256, %v22_v9  ;;  %v25_v11 = vadd.s32 384, %v22_v9  ;;  %v820_v12 = vadd.s32 128, %v22_v9 }
   0x5   :  { %v30_v15 = vshra.s32 %v22_v9, 4  ;;  %v26_v21 = vand.u32 15, %v22_v9  ;;  %v852_v28 = vsub.s32 0, %v99_v23  ;;  %v854_v29 = vsub.s32 4, %v99_v23 }
   0x6   :  { %424 = vrot.lane.b32.xlu1 %v770_v3, %s727_s16  ;;  %420 = vrot.lane.b32.xlu0 %v776_v4, %s727_s16  ;;  %v32_v13 = vshra.s32 %v24_v10, 4  ;;  %v33_v14 = vshra.s32 %v25_v11, 4  ;;  %v31_v16 = vshra.s32 %v820_v12, 4  ;;  %v28_v22 = vand.u32 15, %v24_v10 }
   0x7   :  { %682 = vmatprep.mubr.msk.bf16.mxu0 %vm1234_vm0, %v673_v6  ;;  %691 = vmatprep.mubr.msk.bf16.mxu1 %vm1234_vm0, %v673_v6  ;;  %v827_v19 = vand.u32 15, %v30_v15  ;;  %v29_v24 = vand.u32 15, %v25_v11  ;;  %v27_v25 = vand.u32 15, %v820_v12  ;;  %vm840_vm6 = vcmp.ge.s32.totalorder %v26_v21, 1 }
   0x8   :  { %v823_v17 = vand.u32 15, %v32_v13  ;;  %v825_v18 = vand.u32 15, %v33_v14  ;;  %v829_v20 = vand.u32 15, %v31_v16  ;;  %vm848_vm8 = vcmp.ge.s32.totalorder %v28_v22, 1 }
   0x9   :  { %vm1233_vm3 = vcmp.lt.s32.totalorder %v827_v19, 15  ;;  %v1243_v27 = vsel %vm848_vm8, 4294967295, %v1242_v27  ;;  %vm856_vm9 = vcmp.ge.s32.totalorder %v29_v24, 1  ;;  %vm861_vm10 = vcmp.ge.s32.totalorder %v27_v25, 1 }
   0xa   :  { %356 = vrot.lane.b32.xlu1 %v776_v4, %s728_s21  ;;  %354 = vrot.lane.b32.xlu0 %v764_v2, %s728_s21  ;;  %vm1232_vm1 = vcmp.lt.s32.totalorder %v823_v17, 15  ;;  %vm1231_vm2 = vcmp.lt.s32.totalorder %v825_v18, 15  ;;  %vm1230_vm4 = vcmp.lt.s32.totalorder %v829_v20, 15  ;;  %v1245_v30 = vsel %vm856_vm9, 4294967295, %v1244_v30  ;;  %vm869_vm11 = vmand %vm1233_vm3, %vm840_vm6 }
   0xb   :  { %vm447_vm5 = vmpackc.low %vm1231_vm2, %vm1232_vm1  ;;  %v1247_v32 = vsel %vm861_vm10, 4294967295, %v1246_v32 }
   0xc   :  { %vm446_vm7 = vmpackc.low %vm1230_vm4, %vm1233_vm3  ;;  %v449_v31 = vsel %vm447_vm5, 65537, %v726_v1  ;;  %vm426_vm5 = vcmask 916480  }
   0xd   :  { %v448_v34 = vsel %vm446_vm7, 65537, %v726_v1  ;;  %vm878_vm12 = vmand %vm1232_vm1, %vm848_vm8  ;;  %v465_v37 = vrot.slane %v449_v31, %v854_v29  ;;  %v461_v38 = vrot.slane %v449_v31, %v852_v28 }
   0xe   :  { %360 = vrot.lane.b32.xlu1 %v770_v3, %s728_s21  ;;  %358 = vrot.lane.b32.xlu0 %v758_v0, %s728_s21  ;;  %vm886_vm13 = vmand %vm1231_vm2, %vm856_vm9  ;;  %v457_v41 = vrot.slane %v448_v34, %v854_v29  ;;  %v453_v42 = vrot.slane %v448_v34, %v852_v28 }
   0xf   :  { %vm896_vm14 = vmand %vm1230_vm4, %vm861_vm10  ;;  %vm469_vm4 = vcmp.ne.s16.totalorder %v465_v37, 0  ;;  %vm910_vm2 = vcmp.ne.s16.totalorder %v461_v38, 0 }
  0x10   :  { %vm391_vm15 = vmpackc.low %vm886_vm13, %vm878_vm12  ;;  %vm467_vm1 = vcmp.ne.s16.totalorder %v457_v41, 0  ;;  %vm914_vm3 = vcmp.ne.s16.totalorder %v453_v42, 0  ;;  %vm919_vm12 = vcmp.lt.s32.totalorder %v26_v21, 15  ;;  %vm934_vm13 = vcmp.lt.s32.totalorder %v29_v24, 15 }
  0x11   :  { %vm390_vm7 = vmpackc.low %vm896_vm14, %vm869_vm11  ;;  %v393_v47 = vsel %vm391_vm15, 65537, %v726_v1  ;;  %vm926_vm11 = vcmp.lt.s32.totalorder %v28_v22, 15  ;;  %vm942_vm14 = vcmp.lt.s32.totalorder %v27_v25, 15 }
  0x12   :  { %300 = vrot.lane.b32.xlu1 %v776_v4, %s729_s22  ;;  %298 = vrot.lane.b32.xlu0 %v764_v2, %s729_s22  ;;  %v392_v52 = vsel %vm390_vm7, 65537, %v726_v1  ;;  %v409_v60 = vrot.slane %v393_v47, %v854_v29  ;;  %v1267_v61 = vsel %vm942_vm14, 4294967295, %v1266_v61  ;;  %v405_v6 = vrot.slane %v393_v47, %v852_v28 }
  0x13   :  { %v401_v59 = vrot.slane %v392_v52, %v854_v29  ;;  %v397_v63 = vrot.slane %v392_v52, %v852_v28 }
  0x14   :  { %vm413_vm15 = vcmp.ne.s16.totalorder %v409_v60, 0  ;;  %vm412_vm7 = vcmp.ne.s16.totalorder %v405_v6, 0 }
  0x16   :  { %304 = vrot.lane.b32.xlu1 %v770_v3, %s729_s22  ;;  %302 = vrot.lane.b32.xlu0 %v758_v0, %s729_s22 }
  0x1a   :  { %244 = vrot.lane.b32.xlu1 %v764_v2, %s730_s0  ;;  %242 = vrot.lane.b32.xlu0 %v770_v3, %s730_s0 }
  0x1e   :  { %248 = vrot.lane.b32.xlu1 %v758_v0, %s730_s0  ;;  %246 = vrot.lane.b32.xlu0 %v776_v4, %s730_s0 }
  0x22   :  { %180 = vrot.lane.b32.xlu1 %v764_v2, %s731_s23  ;;  %178 = vrot.lane.b32.xlu0 %v770_v3, %s731_s23 }
  0x26   :  { %184 = vrot.lane.b32.xlu1 %v758_v0, %s731_s23  ;;  %182 = vrot.lane.b32.xlu0 %v776_v4, %s731_s23 }
  0x2a   :  { %124 = vrot.lane.b32.xlu1 %v764_v2, %s732_s24  ;;  %122 = vrot.lane.b32.xlu0 %v770_v3, %s732_s24 }
  0x2e   :  { %128 = vrot.lane.b32.xlu1 %v758_v0, %s732_s24  ;;  %126 = vrot.lane.b32.xlu0 %v776_v4, %s732_s24 }
  0x32   :  { %56 = vrot.lane.b32.xlu1 %v764_v2, %s733_s25  ;;  %43 = vrot.lane.b32.xlu0 %v770_v3, %s733_s25 }
  0x36   :  { %60 = vrot.lane.b32.xlu1 %v758_v0, %s733_s25  ;;  %58 = vrot.lane.b32.xlu0 %v776_v4, %s733_s25 }
  0x3a   :  { %476 = vrot.lane.b32.xlu1 %v776_v4, %s734_s28  ;;  %474 = vrot.lane.b32.xlu0 %v764_v2, %s734_s28 }
  0x3e   :  { %480 = vrot.lane.b32.xlu1 %v770_v3, %s734_s28  ;;  %478 = vrot.lane.b32.xlu0 %v758_v0, %s734_s28 }
  0x42   :  { %542 = vperm.xlu0 %701, %v539_v7  }
  0x74   :  { %v423_v40 = vpop.permute.xlu1 %422  ;;  %v419_v43 = vpop.permute.xlu0 %418 }
  0x78   :  { %v425_v45 = vpop.permute.xlu1 %424  ;;  %v421_v49 = vpop.permute.xlu0 %420 }
  0x79   :  { %v436_v50 = vsel %vm426_vm5, %v425_v45, %v419_v43  ;;  %v429_v51 = vsel %vm426_vm5, %v423_v40, %v425_v45  ;;  %v428_v54 = vsel %vm426_vm5, %v421_v49, %v423_v40  ;;  %v427_v55 = vsel %vm426_vm5, %v419_v43, %v421_v49 }
  0x7a   :  { %683 = vmatprep.subr.msk.bf16.mxu1 %vm469_vm4, %v436_v50  ;;  %v472_v56 = vsel %vm910_vm2, %v429_v51, 0  ;;  %674 = vmatprep.subr.msk.bf16.mxu0 %vm467_vm1, %v428_v54  ;;  %v470_v58 = vsel %vm914_vm3, %v427_v55, 0  ;;  %vm362_vm2 = vcmask 924672   ;;  %vm327_vm1 = vmpackc.low %vm934_vm13, %vm926_vm11  ;;  %vm411_vm4 = vcmp.ne.s16.totalorder %v401_v59, 0 }
  0x7b   :  { %596 = vmatpush1.bf16.msra.mxu1 %v472_v56  ;;  %555 = vmatpush1.bf16.msra.mxu0 %v470_v58  ;;  %vm326_vm3 = vmpackc.low %vm942_vm14, %vm919_vm12  ;;  %vm410_vm5 = vcmp.ne.s16.totalorder %v397_v63, 0  ;;  %v329_v10 = vsel %vm327_vm1, 65537, %v726_v1  ;;  %vm1270_vm14 = vcmask 1039360   ;;  %vm1278_vm1 = vcmp.ge.s32.totalorder %v823_v17, 1 }
  0x7c   :  { %v357_v62 = vpop.permute.xlu1 %356  ;;  %v355_v7 = vpop.permute.xlu0 %354  ;;  %v328_v13 = vsel %vm326_vm3, 65537, %v726_v1  ;;  %v345_v23 = vrot.slane %v329_v10, %v854_v29  ;;  %v341_v31 = vrot.slane %v329_v10, %v852_v28 }
  0x7d   :  { %v363_v8 = vsel %vm362_vm2, %v355_v7, %v357_v62  ;;  %v337_v22 = vrot.slane %v328_v13, %v854_v29  ;;  %v333_v25 = vrot.slane %v328_v13, %v852_v28 }
  0x7e   :  { %v414_v16 = vsel %vm410_vm5, %v363_v8, 0 }
  0x7f   :  { %vm972_vm5 = vcmp.ne.s16.totalorder %v337_v22, 0  ;;  %vm979_vm3 = vcmp.ne.s16.totalorder %v333_v25, 0 }
  0x80   :  { %v361_v9 = vpop.permute.xlu1 %360  ;;  %v359_v12 = vpop.permute.xlu0 %358 }
  0x81   :  { %v372_v11 = vsel %vm362_vm2, %v361_v9, %v355_v7  ;;  %v364_v14 = vsel %vm362_vm2, %v357_v62, %v359_v12  ;;  %v365_v15 = vsel %vm362_vm2, %v359_v12, %v361_v9  ;;  %vm271_vm2 = vmpackc.low %vm856_vm9, %vm848_vm8  ;;  %vm983_vm9 = vcmp.ne.s16.totalorder %v341_v31, 0 }
  0x82   :  { %684 = vmatprep.subr.msk.bf16.mxu1 %vm413_vm15, %v372_v11  ;;  %675 = vmatprep.subr.msk.bf16.mxu0 %vm411_vm4, %v364_v14  ;;  %v416_v21 = vsel %vm412_vm7, %v365_v15, 0  ;;  %vm270_vm4 = vmpackc.low %vm861_vm10, %vm840_vm6  ;;  %vm349_vm7 = vcmp.ne.s16.totalorder %v345_v23, 0  ;;  %v273_v39 = vsel %vm271_vm2, 65537, %v726_v1  ;;  %vm1275_vm15 = vcmp.ge.s32.totalorder %v827_v19, 1 }
  0x83   :  { %557 = vmatpush1.bf16.msra.mxu0 %v414_v16  ;;  %598 = vmatpush1.bf16.msra.mxu1 %v416_v21  ;;  %vm992_vm0 = vmand %vm1275_vm15, %vm919_vm12  ;;  %v272_v43 = vsel %vm270_vm4, 65537, %v726_v1  ;;  %vm1283_vm15 = vcmp.ge.s32.totalorder %v825_v18, 1  ;;  %v289_v52 = vrot.slane %v273_v39, %v854_v29  ;;  %v285_v58 = vrot.slane %v273_v39, %v852_v28 }
  0x84   :  { %v301_v24 = vpop.permute.xlu1 %300  ;;  %v299_v33 = vpop.permute.xlu0 %298  ;;  %vm1002_vm8 = vmand %vm1278_vm1, %vm926_vm11  ;;  %v281_v51 = vrot.slane %v272_v43, %v854_v29  ;;  %vm1287_vm1 = vcmp.ge.s32.totalorder %v829_v20, 1  ;;  %v277_v56 = vrot.slane %v272_v43, %v852_v28 }
  0x85   :  { %v307_v35 = vsel %vm1270_vm14, %v299_v33, %v301_v24  ;;  %vm1281_vm2 = vmmov %vm1270_vm14 }
  0x86   :  { %vm1282_vm10 = vmmov %vm1281_vm2  ;;  %v350_v49 = vsel %vm979_vm3, %v307_v35, 0 }
  0x88   :  { %v305_v36 = vpop.permute.xlu1 %304  ;;  %v303_v42 = vpop.permute.xlu0 %302 }
  0x89   :  { %v316_v41 = vsel %vm1270_vm14, %v305_v36, %v299_v33  ;;  %v308_v45 = vsel %vm1281_vm2, %v301_v24, %v303_v42  ;;  %v309_v46 = vsel %vm1282_vm10, %v303_v42, %v305_v36  ;;  %vm1012_vm14 = vmand %vm1283_vm15, %vm934_vm13  ;;  %vm1286_vm10 = vnez %v1267_v61 }
  0x8a   :  { %685 = vmatprep.subr.msk.bf16.mxu1 %vm349_vm7, %v316_v41  ;;  %676 = vmatprep.subr.msk.bf16.mxu0 %vm972_vm5, %v308_v45  ;;  %v352_v50 = vsel %vm983_vm9, %v309_v46, 0  ;;  %vm1028_vm4 = vmand %vm1287_vm1, %vm1286_vm10  ;;  %vm250_vm9 = vcmask 7168   ;;  %vm291_vm7 = vcmp.ne.s16.totalorder %v281_v51, 0  ;;  %vm293_vm2 = vcmp.ne.s16.totalorder %v289_v52, 0 }
  0x8b   :  { %559 = vmatpush1.bf16.msra.mxu0 %v350_v49  ;;  %600 = vmatpush1.bf16.msra.mxu1 %v352_v50  ;;  %vm215_vm3 = vmpackc.low %vm1012_vm14, %vm1002_vm8  ;;  %vm290_vm15 = vcmp.ne.s16.totalorder %v277_v56, 0  ;;  %vm292_vm1 = vcmp.ne.s16.totalorder %v285_v58, 0  ;;  %vm1291_vm8 = vcmp.ge.s32.totalorder %v829_v20, 1 }
  0x8c   :  { %v245_v55 = vpop.permute.xlu1 %244  ;;  %v243_v59 = vpop.permute.xlu0 %242  ;;  %560 = vmatprep.subr.bf16.mxu0 %v776_v4  ;;  %601 = vmatprep.subr.bf16.mxu1 %v770_v3  ;;  %vm214_vm5 = vmpackc.low %vm1028_vm4, %vm992_vm0  ;;  %v217_v3 = vsel %vm215_vm3, 65537, %v726_v1  ;;  %vm1290_vm0 = vcmp.ge.s32.totalorder %v827_v19, 1  ;;  %vm186_vm4 = vcmask 121856   ;;  %vm1293_vm3 = vcmp.ge.s32.totalorder %v825_v18, 1 }
  0x8d   :  { %v260_v60 = vsel %vm250_vm9, %v243_v59, %v245_v55  ;;  %v216_v6 = vsel %vm214_vm5, 65537, %v726_v1  ;;  %v233_v10 = vrot.slane %v217_v3, %v854_v29  ;;  %v229_v13 = vrot.slane %v217_v3, %v852_v28  ;;  %vm150_vm14 = vmpackc.low %vm1291_vm8, %vm1290_vm0 }
  0x8e   :  { %v294_v9 = vsel %vm290_vm15, %v260_v60, 0  ;;  %v221_v12 = vrot.slane %v216_v6, %v852_v28  ;;  %v152_v16 = vsel %vm150_vm14, 65537, %v726_v1  ;;  %vm1296_vm15 = vmmov %vm1290_vm0  ;;  %vm1303_vm14 = vnez %v1247_v32 }
  0x8f   :  { %561 = vmatpush1.bf16.msra.mxu0 %v764_v2  ;;  %602 = vmatpush1.bf16.msra.mxu1 %v758_v0  ;;  %v225_v0 = vrot.slane %v216_v6, %v854_v29  ;;  %vm1082_vm8 = vcmp.ne.s16.totalorder %v229_v13, 0  ;;  %v157_v37 = vrot.slane %v152_v16, %v852_v28  ;;  %v161_v40 = vrot.slane %v152_v16, %v854_v29 }
  0x90   :  { %v249_v4 = vpop.permute.xlu1 %248  ;;  %v247_v63 = vpop.permute.xlu0 %246  ;;  %vm1078_vm0 = vcmp.ne.s16.totalorder %v221_v12, 0 }
  0x91   :  { %v253_v62 = vsel %vm250_vm9, %v249_v4, %v243_v59  ;;  %v251_v7 = vsel %vm250_vm9, %v245_v55, %v247_v63  ;;  %v252_v8 = vsel %vm250_vm9, %v247_v63, %v249_v4  ;;  %vm1292_vm9 = vcmp.ge.s32.totalorder %v823_v17, 1 }
  0x92   :  { %686 = vmatprep.subr.msk.bf16.mxu1 %vm293_vm2, %v253_v62  ;;  %677 = vmatprep.subr.msk.bf16.mxu0 %vm291_vm7, %v251_v7  ;;  %v296_v2 = vsel %vm292_vm1, %v252_v8, 0  ;;  %vm151_vm5 = vmpackc.low %vm1293_vm3, %vm1292_vm9  ;;  %vm1064_vm7 = vcmp.ne.s16.totalorder %v225_v0, 0  ;;  %vm237_vm2 = vcmp.ne.s16.totalorder %v233_v10, 0  ;;  %vm1307_vm3 = vnez %v1243_v27 }
  0x93   :  { %563 = vmatpush1.bf16.msra.mxu0 %v294_v9  ;;  %604 = vmatpush1.bf16.msra.mxu1 %v296_v2  ;;  %vm1073_vm1 = vmand %vm1296_vm15, %vm840_vm6  ;;  %v153_v31 = vsel %vm151_vm5, 65537, %v726_v1  ;;  %vm1304_vm6 = vcmp.ge.s32.totalorder %v829_v20, 1  ;;  %vm1308_vm15 = vcmp.ge.s32.totalorder %v823_v17, 1  ;;  %vm1311_vm5 = vnez %v1245_v30 }
  0x94   :  { %v181_v11 = vpop.permute.xlu1 %180  ;;  %v179_v14 = vpop.permute.xlu0 %178  ;;  %vm1091_vm9 = vmand %vm1304_vm6, %vm1303_vm14  ;;  %vm1312_vm14 = vcmp.ge.s32.totalorder %v825_v18, 1  ;;  %v169_v41 = vrot.slane %v153_v31, %v854_v29  ;;  %v165_v42 = vrot.slane %v153_v31, %v852_v28 }
  0x95   :  { %v196_v22 = vsel %vm186_vm4, %v179_v14, %v181_v11  ;;  %vm1100_vm10 = vmand %vm1308_vm15, %vm1307_vm3  ;;  %vm1319_vm3 = vcmask 130048  }
  0x96   :  { %vm1111_vm6 = vmand %vm1312_vm14, %vm1311_vm5  ;;  %v238_v27 = vsel %vm1078_vm0, %v196_v22, 0  ;;  %vm173_vm0 = vcmp.ne.s16.totalorder %v169_v41, 0  ;;  %vm1141_vm15 = vcmp.ne.s16.totalorder %v165_v42, 0  ;;  %vm1326_vm5 = vcmp.lt.s32.totalorder %v823_v17, 15 }
  0x97   :  { %vm1160_vm14 = vmand %vm1326_vm5, %vm926_vm11  ;;  %vm1334_vm11 = vnez %v1267_v61 }
  0x98   :  { %v185_v23 = vpop.permute.xlu1 %184  ;;  %v183_v34 = vpop.permute.xlu0 %182 }
  0x99   :  { %v189_v33 = vsel %vm186_vm4, %v185_v23, %v179_v14  ;;  %v187_v36 = vsel %vm186_vm4, %v181_v11, %v183_v34  ;;  %v188_v32 = vsel %vm186_vm4, %v183_v34, %v185_v23  ;;  %vm94_vm4 = vmpackc.low %vm1091_vm9, %vm1073_vm1 }
  0x9a   :  { %687 = vmatprep.subr.msk.bf16.mxu1 %vm237_vm2, %v189_v33  ;;  %678 = vmatprep.subr.msk.bf16.mxu0 %vm1064_vm7, %v187_v36  ;;  %v240_v39 = vsel %vm1082_vm8, %v188_v32, 0  ;;  %vm95_vm7 = vmpackc.low %vm1111_vm6, %vm1100_vm10  ;;  %vm1132_vm2 = vcmp.ne.s16.totalorder %v161_v40, 0  ;;  %vm1136_vm8 = vcmp.ne.s16.totalorder %v157_v37, 0  ;;  %v96_v50 = vsel %vm94_vm4, 65537, %v726_v1 }
  0x9b   :  { %565 = vmatpush1.bf16.msra.mxu0 %v238_v27  ;;  %606 = vmatpush1.bf16.msra.mxu1 %v240_v39  ;;  %v97_v51 = vsel %vm95_vm7, 65537, %v726_v1  ;;  %vm1322_vm10 = vcmp.lt.s32.totalorder %v827_v19, 15  ;;  %vm1325_vm9 = vmmov %vm1319_vm3  ;;  %v101_v60 = vrot.slane %v96_v50, %v852_v28  ;;  %v105_v4 = vrot.slane %v96_v50, %v854_v29 }
  0x9c   :  { %v125_v30 = vpop.permute.xlu1 %124  ;;  %v123_v43 = vpop.permute.xlu0 %122  ;;  %vm1151_vm1 = vmand %vm1322_vm10, %vm919_vm12  ;;  %vm1331_vm12 = vcmp.lt.s32.totalorder %v825_v18, 15  ;;  %v113_v59 = vrot.slane %v97_v51, %v854_v29  ;;  %v109_v3 = vrot.slane %v97_v51, %v852_v28  ;;  %v672_v33 = vcombine.low %v805_v5, %v805_v5 }
  0x9d   :  { %v140_v46 = vsel %vm1319_vm3, %v123_v43, %v125_v30  ;;  %vm1329_vm6 = vmmov %vm1319_vm3  ;;  %vm1200_vm10 = vcmp.ne.s16.totalorder %v101_v60, 0 }
  0x9e   :  { %vm1330_vm4 = vmmov %vm1319_vm3  ;;  %v174_v17 = vsel %vm1136_vm8, %v140_v46, 0  ;;  %vm116_vm5 = vcmp.ne.s16.totalorder %v109_v3, 0 }
  0x9f   :  { %vm1170_vm7 = vmand %vm1331_vm12, %vm934_vm13  ;;  %vm1335_vm13 = vcmp.lt.s32.totalorder %v829_v20, 15 }
  0xa0   :  { %v129_v47 = vpop.permute.xlu1 %128  ;;  %v127_v55 = vpop.permute.xlu0 %126  ;;  %vm507_vm8 = vmpackc.low %vm1170_vm7, %vm1160_vm14 }
  0xa1   :  { %v133_v54 = vsel %vm1325_vm9, %v129_v47, %v123_v43  ;;  %v131_v58 = vsel %vm1329_vm6, %v125_v30, %v127_v55  ;;  %v132_v48 = vsel %vm1330_vm4, %v127_v55, %v129_v47  ;;  %vm115_vm9 = vcmp.ne.s16.totalorder %v105_v4, 0 }
  0xa2   :  { %688 = vmatprep.subr.msk.bf16.mxu1 %vm173_vm0, %v133_v54  ;;  %679 = vmatprep.subr.msk.bf16.mxu0 %vm1132_vm2, %v131_v58  ;;  %v176_v53 = vsel %vm1141_vm15, %v132_v48, 0  ;;  %vm1186_vm0 = vmand %vm1335_vm13, %vm1334_vm11  ;;  %vm62_vm2 = vcmask 138240   ;;  %vm117_vm15 = vcmp.ne.s16.totalorder %v113_v59, 0  ;;  %v509_v6 = vsel %vm507_vm8, 65537, %v726_v1 }
  0xa3   :  { %567 = vmatpush1.bf16.msra.mxu0 %v174_v17  ;;  %608 = vmatpush1.bf16.msra.mxu1 %v176_v53  ;;  %vm506_vm3 = vmpackc.low %vm1186_vm0, %vm1151_vm1  ;;  %v525_v12 = vrot.slane %v509_v6, %v854_v29  ;;  %v521_v16 = vrot.slane %v509_v6, %v852_v28  ;;  %vm482_vm1 = vcmask 908288  }
  0xa4   :  { %v57_v57 = vpop.permute.xlu1 %56  ;;  %v44_v62 = vpop.permute.xlu0 %43  ;;  %v508_v9 = vsel %vm506_vm3, 65537, %v726_v1 }
  0xa5   :  { %v72_v61 = vsel %vm62_vm2, %v44_v62, %v57_v57  ;;  %v517_v14 = vrot.slane %v508_v9, %v854_v29  ;;  %v513_v15 = vrot.slane %v508_v9, %v852_v28  ;;  %vm529_vm14 = vcmp.ne.s16.totalorder %v525_v12, 0 }
  0xa6   :  { %v118_v10 = vsel %vm1200_vm10, %v72_v61, 0  ;;  %vm528_vm12 = vcmp.ne.s16.totalorder %v521_v16, 0 }
  0xa7   :  { %vm527_vm6 = vcmp.ne.s16.totalorder %v517_v14, 0  ;;  %vm526_vm4 = vcmp.ne.s16.totalorder %v513_v15, 0 }
  0xa8   :  { %v61_v63 = vpop.permute.xlu1 %60  ;;  %v59_v8 = vpop.permute.xlu0 %58 }
  0xa9   :  { %v65_v7 = vsel %vm62_vm2, %v61_v63, %v44_v62  ;;  %v63_v2 = vsel %vm62_vm2, %v57_v57, %v59_v8  ;;  %v64_v0 = vsel %vm62_vm2, %v59_v8, %v61_v63 }
  0xaa   :  { %689 = vmatprep.subr.msk.bf16.mxu1 %vm117_vm15, %v65_v7  ;;  %680 = vmatprep.subr.msk.bf16.mxu0 %vm115_vm9, %v63_v2  ;;  %v120_v11 = vsel %vm116_vm5, %v64_v0, 0 }
  0xab   :  { %569 = vmatpush1.bf16.msra.mxu0 %v118_v10  ;;  %610 = vmatpush1.bf16.msra.mxu1 %v120_v11 }
  0xac   :  { %v477_v13 = vpop.permute.xlu1 %476  ;;  %v475_v1 = vpop.permute.xlu0 %474 }
  0xad   :  { %v483_v21 = vsel %vm482_vm1, %v475_v1, %v477_v13 }
  0xae   :  { %v530_v26 = vsel %vm526_vm4, %v483_v21, 0 }
  0xb0   :  { %v481_v22 = vpop.permute.xlu1 %480  ;;  %v479_v24 = vpop.permute.xlu0 %478 }
  0xb1   :  { %v492_v23 = vsel %vm482_vm1, %v481_v22, %v475_v1  ;;  %v484_v25 = vsel %vm482_vm1, %v477_v13, %v479_v24  ;;  %v485_v31 = vsel %vm482_vm1, %v479_v24, %v481_v22 }
  0xb2   :  { %690 = vmatprep.subr.msk.bf16.mxu1 %vm529_vm14, %v492_v23  ;;  %681 = vmatprep.subr.msk.bf16.mxu0 %vm527_vm6, %v484_v25  ;;  %v532_v29 = vsel %vm528_vm12, %v485_v31, 0 }
  0xb3   :  { %585 = vmatpush2.bf16.msra.mxu0 %v530_v26  ;;  %626 = vmatpush2.bf16.msra.mxu1 %v532_v29 }
  0xb6   :  { %587 = vmatmul.mubr.bf16.vlgmr.msra.gmra.mxu0 %v672_v33  ;;  %628 = vmatmul.mubr.bf16.vlgmr.msra.gmra.mxu1 %v672_v33 }
  0xbd   :  { %v543_v28 = vpop.permute.xlu0 %542 }
 0x176   :  { %v588_v34 = vpop.f32.mrf.mxu0  ;;  %v629_v35 = vpop.f32.mrf.mxu1 }
 0x177   :  { %v589_v36 = vadd.f32 %v588_v34, %v543_v28  ;;  %v630_v32 = vadd.f32 %v629_v35, %v543_v28 }
 0x178   :  { %v590_v37 = vpop.f32.mrf.mxu0  ;;  %v631_v38 = vpop.f32.mrf.mxu1 }
 0x179   :  { %v636_v27 = vsub.f32 0.0, %v589_v36  ;;  %v638_v39 = vsub.f32 0.0, %v630_v32  ;;  %v591_v40 = vadd.f32 %v590_v37, %v543_v28  ;;  %v632_v41 = vadd.f32 %v631_v38, %v543_v28 }
 0x17a   :  { %v592_v30 = vpop.f32.mrf.mxu0  ;;  %v633_v42 = vpop.f32.mrf.mxu1 }
 0x17b   :  { %v640_v43 = vmul.f32 1.442695, %v636_v27  ;;  %v644_v44 = vmul.f32 1.442695, %v638_v39  ;;  %v637_v5 = vsub.f32 0.0, %v591_v40  ;;  %v639_v45 = vsub.f32 0.0, %v632_v41 }
 0x17c   :  { %v593_v46 = vpop.f32.mrf.mxu0  ;;  %v634_v47 = vpop.f32.mrf.mxu1 }
 0x17d   :  { %710 = vpow2.f32 %v640_v43  ;;  %v642_v49 = vmul.f32 1.442695, %v637_v5  ;;  %v646_v50 = vmul.f32 1.442695, %v639_v45 }
 0x17e   :  { %712 = vpow2.f32 %v644_v44 }
 0x17f   :  { %714 = vpow2.f32 %v642_v49 }
 0x180   :  { %716 = vpow2.f32 %v646_v50 }
 0x18a   :  { %v711_v51 = vpop.eup %710 }
 0x18b   :  { %v713_v52 = vpop.eup %712  ;;  %v648_v54 = vadd.f32 1.0, %v711_v51 }
 0x18c   :  { %v715_v55 = vpop.eup %714  ;;  %v650_v56 = vadd.f32 1.0, %v713_v52 }
 0x18d   :  { %v717_v58 = vpop.eup %716  ;;  %718 = vrcp.f32 %v648_v54  ;;  %v649_v48 = vadd.f32 1.0, %v715_v55 }
 0x18e   :  { %720 = vrcp.f32 %v650_v56  ;;  %v651_v19 = vadd.f32 1.0, %v717_v58 }
 0x18f   :  { %722 = vrcp.f32 %v649_v48 }
 0x190   :  { %724 = vrcp.f32 %v651_v19 }
 0x19a   :  { %v719_v17 = vpop.eup %718 }
 0x19b   :  { %v721_v53 = vpop.eup %720  ;;  %660 = vst [vmem:[%s1229_s3] sm:$0xff] %v719_v17 }
 0x19c   :  { %v723_v59 = vpop.eup %722  ;;  %662 = vst [vmem:[%s1229_s3 + $0x10] sm:$0xff] %v721_v53 }
 0x19d   :  { %v725_v60 = vpop.eup %724  ;;  %661 = vst [vmem:[%s1229_s3 + $0x8] sm:$0xff] %v723_v59 }
 0x19e   :  { %663 = vst [vmem:[%s1229_s3 + $0x18] sm:$0xff] %v725_v60 }

</bundles_post_ra>
